<compile_context>
chip_gen: v7x
topology: tpu7x:2x2x1
jax: 0.10.0
libtpu: 0.0.40
codegen_flags: <defaults>
</compile_context>

<pallas_src>
import functools

import jax
import jax.numpy as jnp
from jax.experimental import pallas as pl
from jax.experimental.pallas import tpu as pltpu

_PREC = jax.lax.Precision.HIGHEST


def _seq_kernel(x_ref, w_ih1_ref, w_hh1_ref, b1_ref, w_ih2_ref, w_hh2_ref,
                b2_ref, w_lin_ref, b_lin_ref, out_ref, gx_ref, h2s_ref,
                *, nh, steps, batch):
    """Single grid step. Recurrence as fori_loop; state (h/c) lives in vregs.

    Packed params (built by pack_params): gate columns ordered (i, f, o, g),
    i/f/o columns and biases pre-scaled by 0.5 for the single-tanh activation.
    """
    B = batch
    TB = steps * B

    w_hh1 = w_hh1_ref[...]
    w_ih2 = w_ih2_ref[...]
    w_hh2 = w_hh2_ref[...]

    # ---- Preamble: cell-1 input projection hoisted out of the recurrence.
    # One MXU pass with M = T*B rows (vs T underfed 8-row pushes); bias folded in.
    gx = jnp.dot(x_ref[...], w_ih1_ref[...],
                 preferred_element_type=jnp.float32, precision=_PREC)
    gx_ref[...] = gx + jnp.broadcast_to(b1_ref[...], (TB, 4 * nh))

    # Hoisted bias broadcast (JAX does not CSE broadcasts inside the loop).
    b2 = jnp.broadcast_to(b2_ref[...], (B, 4 * nh))

    def activations(gates, c):
        # Gate columns are (i, f, o, g) with i/f/o weights+biases pre-scaled by
        # 0.5, so ONE full-vreg tanh covers all four gates:
        #   sigmoid(z) == 0.5 * tanh(z/2) + 0.5   (one cheap VPU FMA fixup)
        #   g          == tanh(z_g)               (its column was left unscaled)
        t = jnp.tanh(gates)
        s = t[:, :3 * nh] * 0.5 + 0.5
        i = s[:, 0 * nh:1 * nh]
        f = s[:, 1 * nh:2 * nh]
        o = s[:, 2 * nh:3 * nh]
        g = t[:, 3 * nh:]
        c_new = f * c + i * g
        h_new = o * jnp.tanh(c_new)
        return h_new, c_new

    def body(t, carry):
        h1, c1, h2, c2 = carry
        row = pl.multiple_of(t * B, 8)
        # Cell 1: input projection precomputed; only h1 @ w_hh1 (K = nh) is on
        # the serial chain.  No [x_t, h1] lane concat, no bias add.
        gates1 = gx_ref[pl.ds(row, B), :] + jnp.dot(
            h1, w_hh1, preferred_element_type=jnp.float32, precision=_PREC)
        h1, c1 = activations(gates1, c1)
        # Cell 2: two back-to-back MXU pushes instead of a dependent [h1, h2]
        # lane concat feeding one fused matmul.
        gates2 = (jnp.dot(h1, w_ih2, preferred_element_type=jnp.float32,
                          precision=_PREC)
                  + jnp.dot(h2, w_hh2, preferred_element_type=jnp.float32,
                            precision=_PREC)
                  + b2)
        h2, c2 = activations(gates2, c2)
        # Stash h2 for the batched Linear after the loop (store does not feed
        # the recurrence -> off the critical path).
        h2s_ref[pl.ds(row, B), :] = h2
        return h1, c1, h2, c2

    z = jnp.zeros((B, nh), jnp.float32)
    jax.lax.fori_loop(0, steps, body, (z, z, z, z),
                      unroll=steps if steps <= 8 else 8)

    # ---- Epilogue: ONE batched Linear over all T steps (M = T*B), then assemble
    # the (B, T+1) output with static slices and a single store.
    lin = jnp.dot(h2s_ref[...], w_lin_ref[...],
                  preferred_element_type=jnp.float32, precision=_PREC)
    lin = lin + jnp.broadcast_to(b_lin_ref[...], (TB, 2))
    cols = [lin[t * B:(t + 1) * B, 0:1] for t in range(steps)]
    cols.append(lin[(steps - 1) * B:steps * B, 1:2])
    # TODO(synk): for large T keep the output lane-dense (pad T+1 to 128 or lay
    # the long axis last) instead of a width-(T+1) masked store.
    out_ref[...] = jnp.concatenate(cols, axis=1)


def pack_params(params, *, nh):
    """Pack PyTorch-style params into kernel format.

    Keeps w_ih / w_hh separate (no per-step concat in the kernel), permutes gate
    columns (i,f,g,o) -> (i,f,o,g), and pre-scales the i/f/o columns and biases
    by 0.5 so the kernel uses a single tanh for all four gates.  Any checkpoint
    imported from PyTorch must go through this same transform.
    """
    (w_ih1, w_hh1, b1, w_ih2, w_hh2, b2, w_lin, b_lin) = params

    def prep(w):   # columns i,f,g,o  ->  0.5*i, 0.5*f, 0.5*o, g
        i, f, g, o = jnp.split(w, 4, axis=-1)
        return jnp.concatenate([0.5 * i, 0.5 * f, 0.5 * o, g], axis=-1)

    return (prep(w_ih1), prep(w_hh1), prep(b1),
            prep(w_ih2), prep(w_hh2), prep(b2), w_lin, b_lin)


def sequence_forward(x, params, *, ninp, nh):
    """x: (B, T*ninp) float32. Returns (B, T+1) float32."""
    B, L = x.shape
    assert L % ninp == 0
    T = L // ninp
    assert T >= 1, "need at least one time step"

    # Pad batch to the f32 sublane multiple (8); lay x time-major so the kernel
    # can run the hoisted input projection as one M = T*Bp matmul.
    Bp = ((B + 7) // 8) * 8
    x_t = x.reshape(B, T, ninp).transpose(1, 0, 2)          # (T, B, ninp)
    if Bp != B:
        x_t = jnp.pad(x_t, ((0, 0), (0, Bp - B), (0, 0)))
    x_flat = x_t.reshape(T * Bp, ninp)                       # row t*Bp + b

    w_ih1, w_hh1, b1, w_ih2, w_hh2, b2, w_lin, b_lin = pack_params(params, nh=nh)

    full = lambda shape: pl.BlockSpec(shape, lambda i: (0, 0))
    kernel = functools.partial(_seq_kernel, nh=nh, steps=T, batch=Bp)

    out = pl.pallas_call(
        kernel,
        out_shape=jax.ShapeDtypeStruct((Bp, T + 1), jnp.float32),
        grid_spec=pltpu.PrefetchScalarGridSpec(
            num_scalar_prefetch=0,
            grid=(1,),                          # single invocation; loop in-kernel
            in_specs=[
                full((T * Bp, ninp)),           # x, time-major
                full((ninp, 4 * nh)),           # w_ih1 (i,f,o,g; i/f/o *0.5)
                full((nh, 4 * nh)),             # w_hh1
                full((1, 4 * nh)),              # b1
                full((nh, 4 * nh)),             # w_ih2
                full((nh, 4 * nh)),             # w_hh2
                full((1, 4 * nh)),              # b2
                full((nh, 2)),                  # w_lin
                full((1, 2)),                   # b_lin
            ],
            out_specs=full((Bp, T + 1)),
            scratch_shapes=[
                pltpu.VMEM((T * Bp, 4 * nh), jnp.float32),   # Gx = x @ w_ih1 + b1
                pltpu.VMEM((T * Bp, nh), jnp.float32),       # h2 stash for Linear
            ],
        ),
        compiler_params=pltpu.CompilerParams(
            dimension_semantics=("arbitrary",),
        ),
    )(x_flat, w_ih1, w_hh1, b1, w_ih2, w_hh2, b2, w_lin, b_lin)

    return out[:B]


# ---------------- pure-JAX reference (mirrors the PyTorch forward) ----------------
def sequence_reference(x, params, *, ninp, nh):
    (w_ih1, w_hh1, b1, w_ih2, w_hh2, b2, w_lin, b_lin) = params
    B, L = x.shape
    T = L // ninp
    h1 = c1 = h2 = c2 = jnp.zeros((B, nh), jnp.float32)

    def cell(x_t, h, c, w_ih, w_hh, b):
        gates = (jnp.dot(x_t, w_ih, precision=_PREC)
                 + jnp.dot(h, w_hh, precision=_PREC) + b)  # gate order: i, f, g, o
        i = jax.nn.sigmoid(gates[:, 0 * nh:1 * nh])
        f = jax.nn.sigmoid(gates[:, 1 * nh:2 * nh])
        g = jnp.tanh(gates[:, 2 * nh:3 * nh])
        o = jax.nn.sigmoid(gates[:, 3 * nh:4 * nh])
        c_new = f * c + i * g
        return o * jnp.tanh(c_new), c_new

    cols = []
    out = None
    for t in range(T):
        x_t = x[:, t * ninp:(t + 1) * ninp]
        h1, c1 = cell(x_t, h1, c1, w_ih1, w_hh1, b1)
        h2, c2 = cell(h1, h2, c2, w_ih2, w_hh2, b2)
        out = jnp.dot(h2, w_lin, precision=_PREC) + b_lin
        cols.append(out[:, 0:1])
    cols.append(out[:, 1:2])
    return jnp.concatenate(cols, axis=1)


def init_params(key, ninp, nh):
    """PyTorch-style uniform(-1/sqrt(nh), 1/sqrt(nh)) init; weights stored
    pre-transposed, gate order (i, f, g, o) as in nn.LSTMCell."""
    bound = 1.0 / jnp.sqrt(jnp.float32(nh))
    ks = jax.random.split(key, 10)
    u = lambda k, shape: jax.random.uniform(k, shape, jnp.float32, -bound, bound)
    w_ih1 = u(ks[0], (ninp, 4 * nh))
    w_hh1 = u(ks[1], (nh, 4 * nh))
    b1 = (u(ks[2], (1, 4 * nh)) + u(ks[3], (1, 4 * nh)))   # bias_ih + bias_hh
    w_ih2 = u(ks[4], (nh, 4 * nh))
    w_hh2 = u(ks[5], (nh, 4 * nh))
    b2 = (u(ks[6], (1, 4 * nh)) + u(ks[7], (1, 4 * nh)))
    w_lin = u(ks[8], (nh, 2))
    b_lin = u(ks[9], (1, 2))
    return (w_ih1, w_hh1, b1, w_ih2, w_hh2, b2, w_lin, b_lin)


if __name__ == "__main__":
    B, NINP, NH, STEPS = 2, 4, 32, 8       # input: (B, STEPS*NINP) = (2, 32)
    key = jax.random.PRNGKey(0)
    k_x, k_p = jax.random.split(key)
    x = jax.random.normal(k_x, (B, STEPS * NINP), jnp.float32)
    params = init_params(k_p, NINP, NH)

    out = sequence_forward(x, params, ninp=NINP, nh=NH)
    out = jax.block_until_ready(out)

    ref = sequence_reference(x, params, ninp=NINP, nh=NH)
    assert out.shape == (B, STEPS + 1), out.shape
    # f32 recurrence; kernel uses the tanh-form sigmoid and reassociated matmuls,
    # so allow a slightly wider (still tight) tolerance than bit-level equality.
    assert jnp.allclose(out, ref, atol=1e-4, rtol=1e-4), "mismatch vs reference"

    print("KERNEL_OK")
</pallas_src>

<mosaic_0001>
module attributes {stable_mosaic.version = 11 : i64} {
  func.func @_seq_kernel(%arg0: i32, %arg1: memref<64x4xf32, #tpu.memory_space<vmem>>, %arg2: memref<4x128xf32, #tpu.memory_space<vmem>>, %arg3: memref<32x128xf32, #tpu.memory_space<vmem>>, %arg4: memref<1x128xf32, #tpu.memory_space<vmem>>, %arg5: memref<32x128xf32, #tpu.memory_space<vmem>>, %arg6: memref<32x128xf32, #tpu.memory_space<vmem>>, %arg7: memref<1x128xf32, #tpu.memory_space<vmem>>, %arg8: memref<32x2xf32, #tpu.memory_space<vmem>>, %arg9: memref<1x2xf32, #tpu.memory_space<vmem>>, %arg10: memref<8x9xf32, #tpu.memory_space<vmem>>, %arg11: memref<64x128xf32, #tpu.memory_space<vmem>>, %arg12: memref<64x32xf32, #tpu.memory_space<vmem>>) attributes {dimension_semantics = [#tpu.dimension_semantics<arbitrary>], iteration_bounds = array<i64: 1>, scalar_prefetch = 0 : i64, scratch_operands = 2 : i64, tpu.core_type = #tpu.core_type<tc>, window_params = [{pipeline_mode = #tpu.pipeline_mode<synchronous>, transform_indices = @transform_0, window_bounds = array<i64: 64, 4>}, {pipeline_mode = #tpu.pipeline_mode<synchronous>, transform_indices = @transform_1, window_bounds = array<i64: 4, 128>}, {pipeline_mode = #tpu.pipeline_mode<synchronous>, transform_indices = @transform_2, window_bounds = array<i64: 32, 128>}, {pipeline_mode = #tpu.pipeline_mode<synchronous>, transform_indices = @transform_3, window_bounds = array<i64: 1, 128>}, {pipeline_mode = #tpu.pipeline_mode<synchronous>, transform_indices = @transform_4, window_bounds = array<i64: 32, 128>}, {pipeline_mode = #tpu.pipeline_mode<synchronous>, transform_indices = @transform_5, window_bounds = array<i64: 32, 128>}, {pipeline_mode = #tpu.pipeline_mode<synchronous>, transform_indices = @transform_6, window_bounds = array<i64: 1, 128>}, {pipeline_mode = #tpu.pipeline_mode<synchronous>, transform_indices = @transform_7, window_bounds = array<i64: 32, 2>}, {pipeline_mode = #tpu.pipeline_mode<synchronous>, transform_indices = @transform_8, window_bounds = array<i64: 1, 2>}, {pipeline_mode = #tpu.pipeline_mode<synchronous>, transform_indices = @transform_9, window_bounds = array<i64: 8, 9>}]} {
    %c0 = arith.constant 0 : index
    %c0_0 = arith.constant 0 : index
    %0 = vector.load %arg3[%c0, %c0_0] : memref<32x128xf32, #tpu.memory_space<vmem>>, vector<32x128xf32>
    %c0_1 = arith.constant 0 : index
    %c0_2 = arith.constant 0 : index
    %1 = vector.load %arg5[%c0_1, %c0_2] : memref<32x128xf32, #tpu.memory_space<vmem>>, vector<32x128xf32>
    %c0_3 = arith.constant 0 : index
    %c0_4 = arith.constant 0 : index
    %2 = vector.load %arg6[%c0_3, %c0_4] : memref<32x128xf32, #tpu.memory_space<vmem>>, vector<32x128xf32>
    %c0_5 = arith.constant 0 : index
    %c0_6 = arith.constant 0 : index
    %3 = vector.load %arg1[%c0_5, %c0_6] : memref<64x4xf32, #tpu.memory_space<vmem>>, vector<64x4xf32>
    %c0_7 = arith.constant 0 : index
    %c0_8 = arith.constant 0 : index
    %4 = vector.load %arg2[%c0_7, %c0_8] : memref<4x128xf32, #tpu.memory_space<vmem>>, vector<4x128xf32>
    %cst = arith.constant dense<0.000000e+00> : vector<64x128xf32>
    %5 = tpu.matmul %3, %4, %cst {dimension_numbers = #tpu.dot_dimension_numbers<[1], [0], [0], [1], [0, 0, 1, 1], [], []>, precision = #tpu.contract_precision<fp32>} : vector<64x4xf32>, vector<4x128xf32>, vector<64x128xf32> -> vector<64x128xf32>
    %c0_9 = arith.constant 0 : index
    %c0_10 = arith.constant 0 : index
    %6 = vector.load %arg4[%c0_9, %c0_10] : memref<1x128xf32, #tpu.memory_space<vmem>>, vector<1x128xf32>
    %7 = vector.shape_cast %6 : vector<1x128xf32> to vector<1x128xf32>
    %8 = vector.broadcast %7 : vector<1x128xf32> to vector<64x128xf32>
    %9 = arith.addf %5, %8 : vector<64x128xf32>
    %c0_11 = arith.constant 0 : index
    %c0_12 = arith.constant 0 : index
    %10 = vector.load %arg11[%c0_11, %c0_12] : memref<64x128xf32, #tpu.memory_space<vmem>>, vector<64x128xf32>
    tpu.vector_store %arg11[%c0_11, %c0_12], %9 {strides = array<i32>} : memref<64x128xf32, #tpu.memory_space<vmem>>, vector<64x128xf32>,
    %c0_13 = arith.constant 0 : index
    %c0_14 = arith.constant 0 : index
    %11 = vector.load %arg7[%c0_13, %c0_14] : memref<1x128xf32, #tpu.memory_space<vmem>>, vector<1x128xf32>
    %12 = vector.shape_cast %11 : vector<1x128xf32> to vector<1x128xf32>
    %13 = vector.broadcast %12 : vector<1x128xf32> to vector<8x128xf32>
    %cst_15 = arith.constant 0.000000e+00 : f32
    %14 = vector.broadcast %cst_15 : f32 to vector<8x32xf32>
    %c0_i32 = arith.constant 0 : i32
    %c8_i32 = arith.constant 8 : i32
    %15 = arith.muli %c0_i32, %c8_i32 : i32
    %16 = tpu.assume_multiple %15, 8 : i32
    %17 = arith.index_cast %16 : i32 to index
    %c0_16 = arith.constant 0 : index
    %18 = vector.load %arg11[%17, %c0_16] : memref<64x128xf32, #tpu.memory_space<vmem>>, vector<8x128xf32>
    %cst_17 = arith.constant dense<0.000000e+00> : vector<8x128xf32>
    %19 = tpu.matmul %14, %0, %cst_17 {dimension_numbers = #tpu.dot_dimension_numbers<[1], [0], [0], [1], [0, 0, 1, 1], [], []>, precision = #tpu.contract_precision<fp32>} : vector<8x32xf32>, vector<32x128xf32>, vector<8x128xf32> -> vector<8x128xf32>
    %20 = arith.addf %18, %19 : vector<8x128xf32>
    %21 = math.tanh %20 : vector<8x128xf32>
    %22 = vector.extract_strided_slice %21 {offsets = [0, 0], sizes = [8, 96], strides = [1, 1]} : vector<8x128xf32> to vector<8x96xf32>
    %cst_18 = arith.constant 5.000000e-01 : f32
    %23 = vector.broadcast %cst_18 : f32 to vector<8x96xf32>
    %24 = arith.mulf %22, %23 : vector<8x96xf32>
    %cst_19 = arith.constant 5.000000e-01 : f32
    %25 = vector.broadcast %cst_19 : f32 to vector<8x96xf32>
    %26 = arith.addf %24, %25 : vector<8x96xf32>
    %27 = vector.extract_strided_slice %26 {offsets = [0, 0], sizes = [8, 32], strides = [1, 1]} : vector<8x96xf32> to vector<8x32xf32>
    %28 = vector.extract_strided_slice %26 {offsets = [0, 32], sizes = [8, 32], strides = [1, 1]} : vector<8x96xf32> to vector<8x32xf32>
    %29 = vector.extract_strided_slice %26 {offsets = [0, 64], sizes = [8, 32], strides = [1, 1]} : vector<8x96xf32> to vector<8x32xf32>
    %30 = vector.extract_strided_slice %21 {offsets = [0, 96], sizes = [8, 32], strides = [1, 1]} : vector<8x128xf32> to vector<8x32xf32>
    %31 = arith.mulf %28, %14 : vector<8x32xf32>
    %32 = arith.mulf %27, %30 : vector<8x32xf32>
    %33 = arith.addf %31, %32 : vector<8x32xf32>
    %34 = math.tanh %33 : vector<8x32xf32>
    %35 = arith.mulf %29, %34 : vector<8x32xf32>
    %cst_20 = arith.constant dense<0.000000e+00> : vector<8x128xf32>
    %36 = tpu.matmul %35, %1, %cst_20 {dimension_numbers = #tpu.dot_dimension_numbers<[1], [0], [0], [1], [0, 0, 1, 1], [], []>, precision = #tpu.contract_precision<fp32>} : vector<8x32xf32>, vector<32x128xf32>, vector<8x128xf32> -> vector<8x128xf32>
    %cst_21 = arith.constant dense<0.000000e+00> : vector<8x128xf32>
    %37 = tpu.matmul %14, %2, %cst_21 {dimension_numbers = #tpu.dot_dimension_numbers<[1], [0], [0], [1], [0, 0, 1, 1], [], []>, precision = #tpu.contract_precision<fp32>} : vector<8x32xf32>, vector<32x128xf32>, vector<8x128xf32> -> vector<8x128xf32>
    %38 = arith.addf %36, %37 : vector<8x128xf32>
    %39 = arith.addf %38, %13 : vector<8x128xf32>
    %40 = math.tanh %39 : vector<8x128xf32>
    %41 = vector.extract_strided_slice %40 {offsets = [0, 0], sizes = [8, 96], strides = [1, 1]} : vector<8x128xf32> to vector<8x96xf32>
    %cst_22 = arith.constant 5.000000e-01 : f32
    %42 = vector.broadcast %cst_22 : f32 to vector<8x96xf32>
    %43 = arith.mulf %41, %42 : vector<8x96xf32>
    %cst_23 = arith.constant 5.000000e-01 : f32
    %44 = vector.broadcast %cst_23 : f32 to vector<8x96xf32>
    %45 = arith.addf %43, %44 : vector<8x96xf32>
    %46 = vector.extract_strided_slice %45 {offsets = [0, 0], sizes = [8, 32], strides = [1, 1]} : vector<8x96xf32> to vector<8x32xf32>
    %47 = vector.extract_strided_slice %45 {offsets = [0, 32], sizes = [8, 32], strides = [1, 1]} : vector<8x96xf32> to vector<8x32xf32>
    %48 = vector.extract_strided_slice %45 {offsets = [0, 64], sizes = [8, 32], strides = [1, 1]} : vector<8x96xf32> to vector<8x32xf32>
    %49 = vector.extract_strided_slice %40 {offsets = [0, 96], sizes = [8, 32], strides = [1, 1]} : vector<8x128xf32> to vector<8x32xf32>
    %50 = arith.mulf %47, %14 : vector<8x32xf32>
    %51 = arith.mulf %46, %49 : vector<8x32xf32>
    %52 = arith.addf %50, %51 : vector<8x32xf32>
    %53 = math.tanh %52 : vector<8x32xf32>
    %54 = arith.mulf %48, %53 : vector<8x32xf32>
    %55 = arith.index_cast %16 : i32 to index
    %c0_24 = arith.constant 0 : index
    %56 = vector.load %arg12[%55, %c0_24] : memref<64x32xf32, #tpu.memory_space<vmem>>, vector<8x32xf32>
    tpu.vector_store %arg12[%55, %c0_24], %54 {strides = array<i32>} : memref<64x32xf32, #tpu.memory_space<vmem>>, vector<8x32xf32>,
    %c1_i32 = arith.constant 1 : i32
    %c8_i32_25 = arith.constant 8 : i32
    %57 = arith.muli %c1_i32, %c8_i32_25 : i32
    %58 = tpu.assume_multiple %57, 8 : i32
    %59 = arith.index_cast %58 : i32 to index
    %c0_26 = arith.constant 0 : index
    %60 = vector.load %arg11[%59, %c0_26] : memref<64x128xf32, #tpu.memory_space<vmem>>, vector<8x128xf32>
    %cst_27 = arith.constant dense<0.000000e+00> : vector<8x128xf32>
    %61 = tpu.matmul %35, %0, %cst_27 {dimension_numbers = #tpu.dot_dimension_numbers<[1], [0], [0], [1], [0, 0, 1, 1], [], []>, precision = #tpu.contract_precision<fp32>} : vector<8x32xf32>, vector<32x128xf32>, vector<8x128xf32> -> vector<8x128xf32>
    %62 = arith.addf %60, %61 : vector<8x128xf32>
    %63 = math.tanh %62 : vector<8x128xf32>
    %64 = vector.extract_strided_slice %63 {offsets = [0, 0], sizes = [8, 96], strides = [1, 1]} : vector<8x128xf32> to vector<8x96xf32>
    %cst_28 = arith.constant 5.000000e-01 : f32
    %65 = vector.broadcast %cst_28 : f32 to vector<8x96xf32>
    %66 = arith.mulf %64, %65 : vector<8x96xf32>
    %cst_29 = arith.constant 5.000000e-01 : f32
    %67 = vector.broadcast %cst_29 : f32 to vector<8x96xf32>
    %68 = arith.addf %66, %67 : vector<8x96xf32>
    %69 = vector.extract_strided_slice %68 {offsets = [0, 0], sizes = [8, 32], strides = [1, 1]} : vector<8x96xf32> to vector<8x32xf32>
    %70 = vector.extract_strided_slice %68 {offsets = [0, 32], sizes = [8, 32], strides = [1, 1]} : vector<8x96xf32> to vector<8x32xf32>
    %71 = vector.extract_strided_slice %68 {offsets = [0, 64], sizes = [8, 32], strides = [1, 1]} : vector<8x96xf32> to vector<8x32xf32>
    %72 = vector.extract_strided_slice %63 {offsets = [0, 96], sizes = [8, 32], strides = [1, 1]} : vector<8x128xf32> to vector<8x32xf32>
    %73 = arith.mulf %70, %33 : vector<8x32xf32>
    %74 = arith.mulf %69, %72 : vector<8x32xf32>
    %75 = arith.addf %73, %74 : vector<8x32xf32>
    %76 = math.tanh %75 : vector<8x32xf32>
    %77 = arith.mulf %71, %76 : vector<8x32xf32>
    %cst_30 = arith.constant dense<0.000000e+00> : vector<8x128xf32>
    %78 = tpu.matmul %77, %1, %cst_30 {dimension_numbers = #tpu.dot_dimension_numbers<[1], [0], [0], [1], [0, 0, 1, 1], [], []>, precision = #tpu.contract_precision<fp32>} : vector<8x32xf32>, vector<32x128xf32>, vector<8x128xf32> -> vector<8x128xf32>
    %cst_31 = arith.constant dense<0.000000e+00> : vector<8x128xf32>
    %79 = tpu.matmul %54, %2, %cst_31 {dimension_numbers = #tpu.dot_dimension_numbers<[1], [0], [0], [1], [0, 0, 1, 1], [], []>, precision = #tpu.contract_precision<fp32>} : vector<8x32xf32>, vector<32x128xf32>, vector<8x128xf32> -> vector<8x128xf32>
    %80 = arith.addf %78, %79 : vector<8x128xf32>
    %81 = arith.addf %80, %13 : vector<8x128xf32>
    %82 = math.tanh %81 : vector<8x128xf32>
    %83 = vector.extract_strided_slice %82 {offsets = [0, 0], sizes = [8, 96], strides = [1, 1]} : vector<8x128xf32> to vector<8x96xf32>
    %cst_32 = arith.constant 5.000000e-01 : f32
    %84 = vector.broadcast %cst_32 : f32 to vector<8x96xf32>
    %85 = arith.mulf %83, %84 : vector<8x96xf32>
    %cst_33 = arith.constant 5.000000e-01 : f32
    %86 = vector.broadcast %cst_33 : f32 to vector<8x96xf32>
    %87 = arith.addf %85, %86 : vector<8x96xf32>
    %88 = vector.extract_strided_slice %87 {offsets = [0, 0], sizes = [8, 32], strides = [1, 1]} : vector<8x96xf32> to vector<8x32xf32>
    %89 = vector.extract_strided_slice %87 {offsets = [0, 32], sizes = [8, 32], strides = [1, 1]} : vector<8x96xf32> to vector<8x32xf32>
    %90 = vector.extract_strided_slice %87 {offsets = [0, 64], sizes = [8, 32], strides = [1, 1]} : vector<8x96xf32> to vector<8x32xf32>
    %91 = vector.extract_strided_slice %82 {offsets = [0, 96], sizes = [8, 32], strides = [1, 1]} : vector<8x128xf32> to vector<8x32xf32>
    %92 = arith.mulf %89, %52 : vector<8x32xf32>
    %93 = arith.mulf %88, %91 : vector<8x32xf32>
    %94 = arith.addf %92, %93 : vector<8x32xf32>
    %95 = math.tanh %94 : vector<8x32xf32>
    %96 = arith.mulf %90, %95 : vector<8x32xf32>
    %97 = arith.index_cast %58 : i32 to index
    %c0_34 = arith.constant 0 : index
    %98 = vector.load %arg12[%97, %c0_34] : memref<64x32xf32, #tpu.memory_space<vmem>>, vector<8x32xf32>
    tpu.vector_store %arg12[%97, %c0_34], %96 {strides = array<i32>} : memref<64x32xf32, #tpu.memory_space<vmem>>, vector<8x32xf32>,
    %c2_i32 = arith.constant 2 : i32
    %c8_i32_35 = arith.constant 8 : i32
    %99 = arith.muli %c2_i32, %c8_i32_35 : i32
    %100 = tpu.assume_multiple %99, 8 : i32
    %101 = arith.index_cast %100 : i32 to index
    %c0_36 = arith.constant 0 : index
    %102 = vector.load %arg11[%101, %c0_36] : memref<64x128xf32, #tpu.memory_space<vmem>>, vector<8x128xf32>
    %cst_37 = arith.constant dense<0.000000e+00> : vector<8x128xf32>
    %103 = tpu.matmul %77, %0, %cst_37 {dimension_numbers = #tpu.dot_dimension_numbers<[1], [0], [0], [1], [0, 0, 1, 1], [], []>, precision = #tpu.contract_precision<fp32>} : vector<8x32xf32>, vector<32x128xf32>, vector<8x128xf32> -> vector<8x128xf32>
    %104 = arith.addf %102, %103 : vector<8x128xf32>
    %105 = math.tanh %104 : vector<8x128xf32>
    %106 = vector.extract_strided_slice %105 {offsets = [0, 0], sizes = [8, 96], strides = [1, 1]} : vector<8x128xf32> to vector<8x96xf32>
    %cst_38 = arith.constant 5.000000e-01 : f32
    %107 = vector.broadcast %cst_38 : f32 to vector<8x96xf32>
    %108 = arith.mulf %106, %107 : vector<8x96xf32>
    %cst_39 = arith.constant 5.000000e-01 : f32
    %109 = vector.broadcast %cst_39 : f32 to vector<8x96xf32>
    %110 = arith.addf %108, %109 : vector<8x96xf32>
    %111 = vector.extract_strided_slice %110 {offsets = [0, 0], sizes = [8, 32], strides = [1, 1]} : vector<8x96xf32> to vector<8x32xf32>
    %112 = vector.extract_strided_slice %110 {offsets = [0, 32], sizes = [8, 32], strides = [1, 1]} : vector<8x96xf32> to vector<8x32xf32>
    %113 = vector.extract_strided_slice %110 {offsets = [0, 64], sizes = [8, 32], strides = [1, 1]} : vector<8x96xf32> to vector<8x32xf32>
    %114 = vector.extract_strided_slice %105 {offsets = [0, 96], sizes = [8, 32], strides = [1, 1]} : vector<8x128xf32> to vector<8x32xf32>
    %115 = arith.mulf %112, %75 : vector<8x32xf32>
    %116 = arith.mulf %111, %114 : vector<8x32xf32>
    %117 = arith.addf %115, %116 : vector<8x32xf32>
    %118 = math.tanh %117 : vector<8x32xf32>
    %119 = arith.mulf %113, %118 : vector<8x32xf32>
    %cst_40 = arith.constant dense<0.000000e+00> : vector<8x128xf32>
    %120 = tpu.matmul %119, %1, %cst_40 {dimension_numbers = #tpu.dot_dimension_numbers<[1], [0], [0], [1], [0, 0, 1, 1], [], []>, precision = #tpu.contract_precision<fp32>} : vector<8x32xf32>, vector<32x128xf32>, vector<8x128xf32> -> vector<8x128xf32>
    %cst_41 = arith.constant dense<0.000000e+00> : vector<8x128xf32>
    %121 = tpu.matmul %96, %2, %cst_41 {dimension_numbers = #tpu.dot_dimension_numbers<[1], [0], [0], [1], [0, 0, 1, 1], [], []>, precision = #tpu.contract_precision<fp32>} : vector<8x32xf32>, vector<32x128xf32>, vector<8x128xf32> -> vector<8x128xf32>
    %122 = arith.addf %120, %121 : vector<8x128xf32>
    %123 = arith.addf %122, %13 : vector<8x128xf32>
    %124 = math.tanh %123 : vector<8x128xf32>
    %125 = vector.extract_strided_slice %124 {offsets = [0, 0], sizes = [8, 96], strides = [1, 1]} : vector<8x128xf32> to vector<8x96xf32>
    %cst_42 = arith.constant 5.000000e-01 : f32
    %126 = vector.broadcast %cst_42 : f32 to vector<8x96xf32>
    %127 = arith.mulf %125, %126 : vector<8x96xf32>
    %cst_43 = arith.constant 5.000000e-01 : f32
    %128 = vector.broadcast %cst_43 : f32 to vector<8x96xf32>
    %129 = arith.addf %127, %128 : vector<8x96xf32>
    %130 = vector.extract_strided_slice %129 {offsets = [0, 0], sizes = [8, 32], strides = [1, 1]} : vector<8x96xf32> to vector<8x32xf32>
    %131 = vector.extract_strided_slice %129 {offsets = [0, 32], sizes = [8, 32], strides = [1, 1]} : vector<8x96xf32> to vector<8x32xf32>
    %132 = vector.extract_strided_slice %129 {offsets = [0, 64], sizes = [8, 32], strides = [1, 1]} : vector<8x96xf32> to vector<8x32xf32>
    %133 = vector.extract_strided_slice %124 {offsets = [0, 96], sizes = [8, 32], strides = [1, 1]} : vector<8x128xf32> to vector<8x32xf32>
    %134 = arith.mulf %131, %94 : vector<8x32xf32>
    %135 = arith.mulf %130, %133 : vector<8x32xf32>
    %136 = arith.addf %134, %135 : vector<8x32xf32>
    %137 = math.tanh %136 : vector<8x32xf32>
    %138 = arith.mulf %132, %137 : vector<8x32xf32>
    %139 = arith.index_cast %100 : i32 to index
    %c0_44 = arith.constant 0 : index
    %140 = vector.load %arg12[%139, %c0_44] : memref<64x32xf32, #tpu.memory_space<vmem>>, vector<8x32xf32>
    tpu.vector_store %arg12[%139, %c0_44], %138 {strides = array<i32>} : memref<64x32xf32, #tpu.memory_space<vmem>>, vector<8x32xf32>,
    %c3_i32 = arith.constant 3 : i32
    %c8_i32_45 = arith.constant 8 : i32
    %141 = arith.muli %c3_i32, %c8_i32_45 : i32
    %142 = tpu.assume_multiple %141, 8 : i32
    %143 = arith.index_cast %142 : i32 to index
    %c0_46 = arith.constant 0 : index
    %144 = vector.load %arg11[%143, %c0_46] : memref<64x128xf32, #tpu.memory_space<vmem>>, vector<8x128xf32>
    %cst_47 = arith.constant dense<0.000000e+00> : vector<8x128xf32>
    %145 = tpu.matmul %119, %0, %cst_47 {dimension_numbers = #tpu.dot_dimension_numbers<[1], [0], [0], [1], [0, 0, 1, 1], [], []>, precision = #tpu.contract_precision<fp32>} : vector<8x32xf32>, vector<32x128xf32>, vector<8x128xf32> -> vector<8x128xf32>
    %146 = arith.addf %144, %145 : vector<8x128xf32>
    %147 = math.tanh %146 : vector<8x128xf32>
    %148 = vector.extract_strided_slice %147 {offsets = [0, 0], sizes = [8, 96], strides = [1, 1]} : vector<8x128xf32> to vector<8x96xf32>
    %cst_48 = arith.constant 5.000000e-01 : f32
    %149 = vector.broadcast %cst_48 : f32 to vector<8x96xf32>
    %150 = arith.mulf %148, %149 : vector<8x96xf32>
    %cst_49 = arith.constant 5.000000e-01 : f32
    %151 = vector.broadcast %cst_49 : f32 to vector<8x96xf32>
    %152 = arith.addf %150, %151 : vector<8x96xf32>
    %153 = vector.extract_strided_slice %152 {offsets = [0, 0], sizes = [8, 32], strides = [1, 1]} : vector<8x96xf32> to vector<8x32xf32>
    %154 = vector.extract_strided_slice %152 {offsets = [0, 32], sizes = [8, 32], strides = [1, 1]} : vector<8x96xf32> to vector<8x32xf32>
    %155 = vector.extract_strided_slice %152 {offsets = [0, 64], sizes = [8, 32], strides = [1, 1]} : vector<8x96xf32> to vector<8x32xf32>
    %156 = vector.extract_strided_slice %147 {offsets = [0, 96], sizes = [8, 32], strides = [1, 1]} : vector<8x128xf32> to vector<8x32xf32>
    %157 = arith.mulf %154, %117 : vector<8x32xf32>
    %158 = arith.mulf %153, %156 : vector<8x32xf32>
    %159 = arith.addf %157, %158 : vector<8x32xf32>
    %160 = math.tanh %159 : vector<8x32xf32>
    %161 = arith.mulf %155, %160 : vector<8x32xf32>
    %cst_50 = arith.constant dense<0.000000e+00> : vector<8x128xf32>
    %162 = tpu.matmul %161, %1, %cst_50 {dimension_numbers = #tpu.dot_dimension_numbers<[1], [0], [0], [1], [0, 0, 1, 1], [], []>, precision = #tpu.contract_precision<fp32>} : vector<8x32xf32>, vector<32x128xf32>, vector<8x128xf32> -> vector<8x128xf32>
    %cst_51 = arith.constant dense<0.000000e+00> : vector<8x128xf32>
    %163 = tpu.matmul %138, %2, %cst_51 {dimension_numbers = #tpu.dot_dimension_numbers<[1], [0], [0], [1], [0, 0, 1, 1], [], []>, precision = #tpu.contract_precision<fp32>} : vector<8x32xf32>, vector<32x128xf32>, vector<8x128xf32> -> vector<8x128xf32>
    %164 = arith.addf %162, %163 : vector<8x128xf32>
    %165 = arith.addf %164, %13 : vector<8x128xf32>
    %166 = math.tanh %165 : vector<8x128xf32>
    %167 = vector.extract_strided_slice %166 {offsets = [0, 0], sizes = [8, 96], strides = [1, 1]} : vector<8x128xf32> to vector<8x96xf32>
    %cst_52 = arith.constant 5.000000e-01 : f32
    %168 = vector.broadcast %cst_52 : f32 to vector<8x96xf32>
    %169 = arith.mulf %167, %168 : vector<8x96xf32>
    %cst_53 = arith.constant 5.000000e-01 : f32
    %170 = vector.broadcast %cst_53 : f32 to vector<8x96xf32>
    %171 = arith.addf %169, %170 : vector<8x96xf32>
    %172 = vector.extract_strided_slice %171 {offsets = [0, 0], sizes = [8, 32], strides = [1, 1]} : vector<8x96xf32> to vector<8x32xf32>
    %173 = vector.extract_strided_slice %171 {offsets = [0, 32], sizes = [8, 32], strides = [1, 1]} : vector<8x96xf32> to vector<8x32xf32>
    %174 = vector.extract_strided_slice %171 {offsets = [0, 64], sizes = [8, 32], strides = [1, 1]} : vector<8x96xf32> to vector<8x32xf32>
    %175 = vector.extract_strided_slice %166 {offsets = [0, 96], sizes = [8, 32], strides = [1, 1]} : vector<8x128xf32> to vector<8x32xf32>
    %176 = arith.mulf %173, %136 : vector<8x32xf32>
    %177 = arith.mulf %172, %175 : vector<8x32xf32>
    %178 = arith.addf %176, %177 : vector<8x32xf32>
    %179 = math.tanh %178 : vector<8x32xf32>
    %180 = arith.mulf %174, %179 : vector<8x32xf32>
    %181 = arith.index_cast %142 : i32 to index
    %c0_54 = arith.constant 0 : index
    %182 = vector.load %arg12[%181, %c0_54] : memref<64x32xf32, #tpu.memory_space<vmem>>, vector<8x32xf32>
    tpu.vector_store %arg12[%181, %c0_54], %180 {strides = array<i32>} : memref<64x32xf32, #tpu.memory_space<vmem>>, vector<8x32xf32>,
    %c4_i32 = arith.constant 4 : i32
    %c8_i32_55 = arith.constant 8 : i32
    %183 = arith.muli %c4_i32, %c8_i32_55 : i32
    %184 = tpu.assume_multiple %183, 8 : i32
    %185 = arith.index_cast %184 : i32 to index
    %c0_56 = arith.constant 0 : index
    %186 = vector.load %arg11[%185, %c0_56] : memref<64x128xf32, #tpu.memory_space<vmem>>, vector<8x128xf32>
    %cst_57 = arith.constant dense<0.000000e+00> : vector<8x128xf32>
    %187 = tpu.matmul %161, %0, %cst_57 {dimension_numbers = #tpu.dot_dimension_numbers<[1], [0], [0], [1], [0, 0, 1, 1], [], []>, precision = #tpu.contract_precision<fp32>} : vector<8x32xf32>, vector<32x128xf32>, vector<8x128xf32> -> vector<8x128xf32>
    %188 = arith.addf %186, %187 : vector<8x128xf32>
    %189 = math.tanh %188 : vector<8x128xf32>
    %190 = vector.extract_strided_slice %189 {offsets = [0, 0], sizes = [8, 96], strides = [1, 1]} : vector<8x128xf32> to vector<8x96xf32>
    %cst_58 = arith.constant 5.000000e-01 : f32
    %191 = vector.broadcast %cst_58 : f32 to vector<8x96xf32>
    %192 = arith.mulf %190, %191 : vector<8x96xf32>
    %cst_59 = arith.constant 5.000000e-01 : f32
    %193 = vector.broadcast %cst_59 : f32 to vector<8x96xf32>
    %194 = arith.addf %192, %193 : vector<8x96xf32>
    %195 = vector.extract_strided_slice %194 {offsets = [0, 0], sizes = [8, 32], strides = [1, 1]} : vector<8x96xf32> to vector<8x32xf32>
    %196 = vector.extract_strided_slice %194 {offsets = [0, 32], sizes = [8, 32], strides = [1, 1]} : vector<8x96xf32> to vector<8x32xf32>
    %197 = vector.extract_strided_slice %194 {offsets = [0, 64], sizes = [8, 32], strides = [1, 1]} : vector<8x96xf32> to vector<8x32xf32>
    %198 = vector.extract_strided_slice %189 {offsets = [0, 96], sizes = [8, 32], strides = [1, 1]} : vector<8x128xf32> to vector<8x32xf32>
    %199 = arith.mulf %196, %159 : vector<8x32xf32>
    %200 = arith.mulf %195, %198 : vector<8x32xf32>
    %201 = arith.addf %199, %200 : vector<8x32xf32>
    %202 = math.tanh %201 : vector<8x32xf32>
    %203 = arith.mulf %197, %202 : vector<8x32xf32>
    %cst_60 = arith.constant dense<0.000000e+00> : vector<8x128xf32>
    %204 = tpu.matmul %203, %1, %cst_60 {dimension_numbers = #tpu.dot_dimension_numbers<[1], [0], [0], [1], [0, 0, 1, 1], [], []>, precision = #tpu.contract_precision<fp32>} : vector<8x32xf32>, vector<32x128xf32>, vector<8x128xf32> -> vector<8x128xf32>
    %cst_61 = arith.constant dense<0.000000e+00> : vector<8x128xf32>
    %205 = tpu.matmul %180, %2, %cst_61 {dimension_numbers = #tpu.dot_dimension_numbers<[1], [0], [0], [1], [0, 0, 1, 1], [], []>, precision = #tpu.contract_precision<fp32>} : vector<8x32xf32>, vector<32x128xf32>, vector<8x128xf32> -> vector<8x128xf32>
    %206 = arith.addf %204, %205 : vector<8x128xf32>
    %207 = arith.addf %206, %13 : vector<8x128xf32>
    %208 = math.tanh %207 : vector<8x128xf32>
    %209 = vector.extract_strided_slice %208 {offsets = [0, 0], sizes = [8, 96], strides = [1, 1]} : vector<8x128xf32> to vector<8x96xf32>
    %cst_62 = arith.constant 5.000000e-01 : f32
    %210 = vector.broadcast %cst_62 : f32 to vector<8x96xf32>
    %211 = arith.mulf %209, %210 : vector<8x96xf32>
    %cst_63 = arith.constant 5.000000e-01 : f32
    %212 = vector.broadcast %cst_63 : f32 to vector<8x96xf32>
    %213 = arith.addf %211, %212 : vector<8x96xf32>
    %214 = vector.extract_strided_slice %213 {offsets = [0, 0], sizes = [8, 32], strides = [1, 1]} : vector<8x96xf32> to vector<8x32xf32>
    %215 = vector.extract_strided_slice %213 {offsets = [0, 32], sizes = [8, 32], strides = [1, 1]} : vector<8x96xf32> to vector<8x32xf32>
    %216 = vector.extract_strided_slice %213 {offsets = [0, 64], sizes = [8, 32], strides = [1, 1]} : vector<8x96xf32> to vector<8x32xf32>
    %217 = vector.extract_strided_slice %208 {offsets = [0, 96], sizes = [8, 32], strides = [1, 1]} : vector<8x128xf32> to vector<8x32xf32>
    %218 = arith.mulf %215, %178 : vector<8x32xf32>
    %219 = arith.mulf %214, %217 : vector<8x32xf32>
    %220 = arith.addf %218, %219 : vector<8x32xf32>
    %221 = math.tanh %220 : vector<8x32xf32>
    %222 = arith.mulf %216, %221 : vector<8x32xf32>
    %223 = arith.index_cast %184 : i32 to index
    %c0_64 = arith.constant 0 : index
    %224 = vector.load %arg12[%223, %c0_64] : memref<64x32xf32, #tpu.memory_space<vmem>>, vector<8x32xf32>
    tpu.vector_store %arg12[%223, %c0_64], %222 {strides = array<i32>} : memref<64x32xf32, #tpu.memory_space<vmem>>, vector<8x32xf32>,
    %c5_i32 = arith.constant 5 : i32
    %c8_i32_65 = arith.constant 8 : i32
    %225 = arith.muli %c5_i32, %c8_i32_65 : i32
    %226 = tpu.assume_multiple %225, 8 : i32
    %227 = arith.index_cast %226 : i32 to index
    %c0_66 = arith.constant 0 : index
    %228 = vector.load %arg11[%227, %c0_66] : memref<64x128xf32, #tpu.memory_space<vmem>>, vector<8x128xf32>
    %cst_67 = arith.constant dense<0.000000e+00> : vector<8x128xf32>
    %229 = tpu.matmul %203, %0, %cst_67 {dimension_numbers = #tpu.dot_dimension_numbers<[1], [0], [0], [1], [0, 0, 1, 1], [], []>, precision = #tpu.contract_precision<fp32>} : vector<8x32xf32>, vector<32x128xf32>, vector<8x128xf32> -> vector<8x128xf32>
    %230 = arith.addf %228, %229 : vector<8x128xf32>
    %231 = math.tanh %230 : vector<8x128xf32>
    %232 = vector.extract_strided_slice %231 {offsets = [0, 0], sizes = [8, 96], strides = [1, 1]} : vector<8x128xf32> to vector<8x96xf32>
    %cst_68 = arith.constant 5.000000e-01 : f32
    %233 = vector.broadcast %cst_68 : f32 to vector<8x96xf32>
    %234 = arith.mulf %232, %233 : vector<8x96xf32>
    %cst_69 = arith.constant 5.000000e-01 : f32
    %235 = vector.broadcast %cst_69 : f32 to vector<8x96xf32>
    %236 = arith.addf %234, %235 : vector<8x96xf32>
    %237 = vector.extract_strided_slice %236 {offsets = [0, 0], sizes = [8, 32], strides = [1, 1]} : vector<8x96xf32> to vector<8x32xf32>
    %238 = vector.extract_strided_slice %236 {offsets = [0, 32], sizes = [8, 32], strides = [1, 1]} : vector<8x96xf32> to vector<8x32xf32>
    %239 = vector.extract_strided_slice %236 {offsets = [0, 64], sizes = [8, 32], strides = [1, 1]} : vector<8x96xf32> to vector<8x32xf32>
    %240 = vector.extract_strided_slice %231 {offsets = [0, 96], sizes = [8, 32], strides = [1, 1]} : vector<8x128xf32> to vector<8x32xf32>
    %241 = arith.mulf %238, %201 : vector<8x32xf32>
    %242 = arith.mulf %237, %240 : vector<8x32xf32>
    %243 = arith.addf %241, %242 : vector<8x32xf32>
    %244 = math.tanh %243 : vector<8x32xf32>
    %245 = arith.mulf %239, %244 : vector<8x32xf32>
    %cst_70 = arith.constant dense<0.000000e+00> : vector<8x128xf32>
    %246 = tpu.matmul %245, %1, %cst_70 {dimension_numbers = #tpu.dot_dimension_numbers<[1], [0], [0], [1], [0, 0, 1, 1], [], []>, precision = #tpu.contract_precision<fp32>} : vector<8x32xf32>, vector<32x128xf32>, vector<8x128xf32> -> vector<8x128xf32>
    %cst_71 = arith.constant dense<0.000000e+00> : vector<8x128xf32>
    %247 = tpu.matmul %222, %2, %cst_71 {dimension_numbers = #tpu.dot_dimension_numbers<[1], [0], [0], [1], [0, 0, 1, 1], [], []>, precision = #tpu.contract_precision<fp32>} : vector<8x32xf32>, vector<32x128xf32>, vector<8x128xf32> -> vector<8x128xf32>
    %248 = arith.addf %246, %247 : vector<8x128xf32>
    %249 = arith.addf %248, %13 : vector<8x128xf32>
    %250 = math.tanh %249 : vector<8x128xf32>
    %251 = vector.extract_strided_slice %250 {offsets = [0, 0], sizes = [8, 96], strides = [1, 1]} : vector<8x128xf32> to vector<8x96xf32>
    %cst_72 = arith.constant 5.000000e-01 : f32
    %252 = vector.broadcast %cst_72 : f32 to vector<8x96xf32>
    %253 = arith.mulf %251, %252 : vector<8x96xf32>
    %cst_73 = arith.constant 5.000000e-01 : f32
    %254 = vector.broadcast %cst_73 : f32 to vector<8x96xf32>
    %255 = arith.addf %253, %254 : vector<8x96xf32>
    %256 = vector.extract_strided_slice %255 {offsets = [0, 0], sizes = [8, 32], strides = [1, 1]} : vector<8x96xf32> to vector<8x32xf32>
    %257 = vector.extract_strided_slice %255 {offsets = [0, 32], sizes = [8, 32], strides = [1, 1]} : vector<8x96xf32> to vector<8x32xf32>
    %258 = vector.extract_strided_slice %255 {offsets = [0, 64], sizes = [8, 32], strides = [1, 1]} : vector<8x96xf32> to vector<8x32xf32>
    %259 = vector.extract_strided_slice %250 {offsets = [0, 96], sizes = [8, 32], strides = [1, 1]} : vector<8x128xf32> to vector<8x32xf32>
    %260 = arith.mulf %257, %220 : vector<8x32xf32>
    %261 = arith.mulf %256, %259 : vector<8x32xf32>
    %262 = arith.addf %260, %261 : vector<8x32xf32>
    %263 = math.tanh %262 : vector<8x32xf32>
    %264 = arith.mulf %258, %263 : vector<8x32xf32>
    %265 = arith.index_cast %226 : i32 to index
    %c0_74 = arith.constant 0 : index
    %266 = vector.load %arg12[%265, %c0_74] : memref<64x32xf32, #tpu.memory_space<vmem>>, vector<8x32xf32>
    tpu.vector_store %arg12[%265, %c0_74], %264 {strides = array<i32>} : memref<64x32xf32, #tpu.memory_space<vmem>>, vector<8x32xf32>,
    %c6_i32 = arith.constant 6 : i32
    %c8_i32_75 = arith.constant 8 : i32
    %267 = arith.muli %c6_i32, %c8_i32_75 : i32
    %268 = tpu.assume_multiple %267, 8 : i32
    %269 = arith.index_cast %268 : i32 to index
    %c0_76 = arith.constant 0 : index
    %270 = vector.load %arg11[%269, %c0_76] : memref<64x128xf32, #tpu.memory_space<vmem>>, vector<8x128xf32>
    %cst_77 = arith.constant dense<0.000000e+00> : vector<8x128xf32>
    %271 = tpu.matmul %245, %0, %cst_77 {dimension_numbers = #tpu.dot_dimension_numbers<[1], [0], [0], [1], [0, 0, 1, 1], [], []>, precision = #tpu.contract_precision<fp32>} : vector<8x32xf32>, vector<32x128xf32>, vector<8x128xf32> -> vector<8x128xf32>
    %272 = arith.addf %270, %271 : vector<8x128xf32>
    %273 = math.tanh %272 : vector<8x128xf32>
    %274 = vector.extract_strided_slice %273 {offsets = [0, 0], sizes = [8, 96], strides = [1, 1]} : vector<8x128xf32> to vector<8x96xf32>
    %cst_78 = arith.constant 5.000000e-01 : f32
    %275 = vector.broadcast %cst_78 : f32 to vector<8x96xf32>
    %276 = arith.mulf %274, %275 : vector<8x96xf32>
    %cst_79 = arith.constant 5.000000e-01 : f32
    %277 = vector.broadcast %cst_79 : f32 to vector<8x96xf32>
    %278 = arith.addf %276, %277 : vector<8x96xf32>
    %279 = vector.extract_strided_slice %278 {offsets = [0, 0], sizes = [8, 32], strides = [1, 1]} : vector<8x96xf32> to vector<8x32xf32>
    %280 = vector.extract_strided_slice %278 {offsets = [0, 32], sizes = [8, 32], strides = [1, 1]} : vector<8x96xf32> to vector<8x32xf32>
    %281 = vector.extract_strided_slice %278 {offsets = [0, 64], sizes = [8, 32], strides = [1, 1]} : vector<8x96xf32> to vector<8x32xf32>
    %282 = vector.extract_strided_slice %273 {offsets = [0, 96], sizes = [8, 32], strides = [1, 1]} : vector<8x128xf32> to vector<8x32xf32>
    %283 = arith.mulf %280, %243 : vector<8x32xf32>
    %284 = arith.mulf %279, %282 : vector<8x32xf32>
    %285 = arith.addf %283, %284 : vector<8x32xf32>
    %286 = math.tanh %285 : vector<8x32xf32>
    %287 = arith.mulf %281, %286 : vector<8x32xf32>
    %cst_80 = arith.constant dense<0.000000e+00> : vector<8x128xf32>
    %288 = tpu.matmul %287, %1, %cst_80 {dimension_numbers = #tpu.dot_dimension_numbers<[1], [0], [0], [1], [0, 0, 1, 1], [], []>, precision = #tpu.contract_precision<fp32>} : vector<8x32xf32>, vector<32x128xf32>, vector<8x128xf32> -> vector<8x128xf32>
    %cst_81 = arith.constant dense<0.000000e+00> : vector<8x128xf32>
    %289 = tpu.matmul %264, %2, %cst_81 {dimension_numbers = #tpu.dot_dimension_numbers<[1], [0], [0], [1], [0, 0, 1, 1], [], []>, precision = #tpu.contract_precision<fp32>} : vector<8x32xf32>, vector<32x128xf32>, vector<8x128xf32> -> vector<8x128xf32>
    %290 = arith.addf %288, %289 : vector<8x128xf32>
    %291 = arith.addf %290, %13 : vector<8x128xf32>
    %292 = math.tanh %291 : vector<8x128xf32>
    %293 = vector.extract_strided_slice %292 {offsets = [0, 0], sizes = [8, 96], strides = [1, 1]} : vector<8x128xf32> to vector<8x96xf32>
    %cst_82 = arith.constant 5.000000e-01 : f32
    %294 = vector.broadcast %cst_82 : f32 to vector<8x96xf32>
    %295 = arith.mulf %293, %294 : vector<8x96xf32>
    %cst_83 = arith.constant 5.000000e-01 : f32
    %296 = vector.broadcast %cst_83 : f32 to vector<8x96xf32>
    %297 = arith.addf %295, %296 : vector<8x96xf32>
    %298 = vector.extract_strided_slice %297 {offsets = [0, 0], sizes = [8, 32], strides = [1, 1]} : vector<8x96xf32> to vector<8x32xf32>
    %299 = vector.extract_strided_slice %297 {offsets = [0, 32], sizes = [8, 32], strides = [1, 1]} : vector<8x96xf32> to vector<8x32xf32>
    %300 = vector.extract_strided_slice %297 {offsets = [0, 64], sizes = [8, 32], strides = [1, 1]} : vector<8x96xf32> to vector<8x32xf32>
    %301 = vector.extract_strided_slice %292 {offsets = [0, 96], sizes = [8, 32], strides = [1, 1]} : vector<8x128xf32> to vector<8x32xf32>
    %302 = arith.mulf %299, %262 : vector<8x32xf32>
    %303 = arith.mulf %298, %301 : vector<8x32xf32>
    %304 = arith.addf %302, %303 : vector<8x32xf32>
    %305 = math.tanh %304 : vector<8x32xf32>
    %306 = arith.mulf %300, %305 : vector<8x32xf32>
    %307 = arith.index_cast %268 : i32 to index
    %c0_84 = arith.constant 0 : index
    %308 = vector.load %arg12[%307, %c0_84] : memref<64x32xf32, #tpu.memory_space<vmem>>, vector<8x32xf32>
    tpu.vector_store %arg12[%307, %c0_84], %306 {strides = array<i32>} : memref<64x32xf32, #tpu.memory_space<vmem>>, vector<8x32xf32>,
    %c7_i32 = arith.constant 7 : i32
    %c8_i32_85 = arith.constant 8 : i32
    %309 = arith.muli %c7_i32, %c8_i32_85 : i32
    %310 = tpu.assume_multiple %309, 8 : i32
    %311 = arith.index_cast %310 : i32 to index
    %c0_86 = arith.constant 0 : index
    %312 = vector.load %arg11[%311, %c0_86] : memref<64x128xf32, #tpu.memory_space<vmem>>, vector<8x128xf32>
    %cst_87 = arith.constant dense<0.000000e+00> : vector<8x128xf32>
    %313 = tpu.matmul %287, %0, %cst_87 {dimension_numbers = #tpu.dot_dimension_numbers<[1], [0], [0], [1], [0, 0, 1, 1], [], []>, precision = #tpu.contract_precision<fp32>} : vector<8x32xf32>, vector<32x128xf32>, vector<8x128xf32> -> vector<8x128xf32>
    %314 = arith.addf %312, %313 : vector<8x128xf32>
    %315 = math.tanh %314 : vector<8x128xf32>
    %316 = vector.extract_strided_slice %315 {offsets = [0, 0], sizes = [8, 96], strides = [1, 1]} : vector<8x128xf32> to vector<8x96xf32>
    %cst_88 = arith.constant 5.000000e-01 : f32
    %317 = vector.broadcast %cst_88 : f32 to vector<8x96xf32>
    %318 = arith.mulf %316, %317 : vector<8x96xf32>
    %cst_89 = arith.constant 5.000000e-01 : f32
    %319 = vector.broadcast %cst_89 : f32 to vector<8x96xf32>
    %320 = arith.addf %318, %319 : vector<8x96xf32>
    %321 = vector.extract_strided_slice %320 {offsets = [0, 0], sizes = [8, 32], strides = [1, 1]} : vector<8x96xf32> to vector<8x32xf32>
    %322 = vector.extract_strided_slice %320 {offsets = [0, 32], sizes = [8, 32], strides = [1, 1]} : vector<8x96xf32> to vector<8x32xf32>
    %323 = vector.extract_strided_slice %320 {offsets = [0, 64], sizes = [8, 32], strides = [1, 1]} : vector<8x96xf32> to vector<8x32xf32>
    %324 = vector.extract_strided_slice %315 {offsets = [0, 96], sizes = [8, 32], strides = [1, 1]} : vector<8x128xf32> to vector<8x32xf32>
    %325 = arith.mulf %322, %285 : vector<8x32xf32>
    %326 = arith.mulf %321, %324 : vector<8x32xf32>
    %327 = arith.addf %325, %326 : vector<8x32xf32>
    %328 = math.tanh %327 : vector<8x32xf32>
    %329 = arith.mulf %323, %328 : vector<8x32xf32>
    %cst_90 = arith.constant dense<0.000000e+00> : vector<8x128xf32>
    %330 = tpu.matmul %329, %1, %cst_90 {dimension_numbers = #tpu.dot_dimension_numbers<[1], [0], [0], [1], [0, 0, 1, 1], [], []>, precision = #tpu.contract_precision<fp32>} : vector<8x32xf32>, vector<32x128xf32>, vector<8x128xf32> -> vector<8x128xf32>
    %cst_91 = arith.constant dense<0.000000e+00> : vector<8x128xf32>
    %331 = tpu.matmul %306, %2, %cst_91 {dimension_numbers = #tpu.dot_dimension_numbers<[1], [0], [0], [1], [0, 0, 1, 1], [], []>, precision = #tpu.contract_precision<fp32>} : vector<8x32xf32>, vector<32x128xf32>, vector<8x128xf32> -> vector<8x128xf32>
    %332 = arith.addf %330, %331 : vector<8x128xf32>
    %333 = arith.addf %332, %13 : vector<8x128xf32>
    %334 = math.tanh %333 : vector<8x128xf32>
    %335 = vector.extract_strided_slice %334 {offsets = [0, 0], sizes = [8, 96], strides = [1, 1]} : vector<8x128xf32> to vector<8x96xf32>
    %cst_92 = arith.constant 5.000000e-01 : f32
    %336 = vector.broadcast %cst_92 : f32 to vector<8x96xf32>
    %337 = arith.mulf %335, %336 : vector<8x96xf32>
    %cst_93 = arith.constant 5.000000e-01 : f32
    %338 = vector.broadcast %cst_93 : f32 to vector<8x96xf32>
    %339 = arith.addf %337, %338 : vector<8x96xf32>
    %340 = vector.extract_strided_slice %339 {offsets = [0, 0], sizes = [8, 32], strides = [1, 1]} : vector<8x96xf32> to vector<8x32xf32>
    %341 = vector.extract_strided_slice %339 {offsets = [0, 32], sizes = [8, 32], strides = [1, 1]} : vector<8x96xf32> to vector<8x32xf32>
    %342 = vector.extract_strided_slice %339 {offsets = [0, 64], sizes = [8, 32], strides = [1, 1]} : vector<8x96xf32> to vector<8x32xf32>
    %343 = vector.extract_strided_slice %334 {offsets = [0, 96], sizes = [8, 32], strides = [1, 1]} : vector<8x128xf32> to vector<8x32xf32>
    %344 = arith.mulf %341, %304 : vector<8x32xf32>
    %345 = arith.mulf %340, %343 : vector<8x32xf32>
    %346 = arith.addf %344, %345 : vector<8x32xf32>
    %347 = math.tanh %346 : vector<8x32xf32>
    %348 = arith.mulf %342, %347 : vector<8x32xf32>
    %349 = arith.index_cast %310 : i32 to index
    %c0_94 = arith.constant 0 : index
    %350 = vector.load %arg12[%349, %c0_94] : memref<64x32xf32, #tpu.memory_space<vmem>>, vector<8x32xf32>
    tpu.vector_store %arg12[%349, %c0_94], %348 {strides = array<i32>} : memref<64x32xf32, #tpu.memory_space<vmem>>, vector<8x32xf32>,
    %c8_i32_95 = arith.constant 8 : i32
    %c0_96 = arith.constant 0 : index
    %c0_97 = arith.constant 0 : index
    %351 = vector.load %arg12[%c0_96, %c0_97] : memref<64x32xf32, #tpu.memory_space<vmem>>, vector<64x32xf32>
    %c0_98 = arith.constant 0 : index
    %c0_99 = arith.constant 0 : index
    %352 = vector.load %arg8[%c0_98, %c0_99] : memref<32x2xf32, #tpu.memory_space<vmem>>, vector<32x2xf32>
    %cst_100 = arith.constant dense<0.000000e+00> : vector<64x2xf32>
    %353 = tpu.matmul %351, %352, %cst_100 {dimension_numbers = #tpu.dot_dimension_numbers<[1], [0], [0], [1], [0, 0, 1, 1], [], []>, precision = #tpu.contract_precision<fp32>} : vector<64x32xf32>, vector<32x2xf32>, vector<64x2xf32> -> vector<64x2xf32>
    %c0_101 = arith.constant 0 : index
    %c0_102 = arith.constant 0 : index
    %354 = vector.load %arg9[%c0_101, %c0_102] : memref<1x2xf32, #tpu.memory_space<vmem>>, vector<1x2xf32>
    %355 = vector.shape_cast %354 : vector<1x2xf32> to vector<1x2xf32>
    %356 = vector.broadcast %355 : vector<1x2xf32> to vector<64x2xf32>
    %357 = arith.addf %353, %356 : vector<64x2xf32>
    %358 = vector.extract_strided_slice %357 {offsets = [0, 0], sizes = [8, 1], strides = [1, 1]} : vector<64x2xf32> to vector<8x1xf32>
    %359 = vector.extract_strided_slice %357 {offsets = [8, 0], sizes = [8, 1], strides = [1, 1]} : vector<64x2xf32> to vector<8x1xf32>
    %360 = vector.extract_strided_slice %357 {offsets = [16, 0], sizes = [8, 1], strides = [1, 1]} : vector<64x2xf32> to vector<8x1xf32>
    %361 = vector.extract_strided_slice %357 {offsets = [24, 0], sizes = [8, 1], strides = [1, 1]} : vector<64x2xf32> to vector<8x1xf32>
    %362 = vector.extract_strided_slice %357 {offsets = [32, 0], sizes = [8, 1], strides = [1, 1]} : vector<64x2xf32> to vector<8x1xf32>
    %363 = vector.extract_strided_slice %357 {offsets = [40, 0], sizes = [8, 1], strides = [1, 1]} : vector<64x2xf32> to vector<8x1xf32>
    %364 = vector.extract_strided_slice %357 {offsets = [48, 0], sizes = [8, 1], strides = [1, 1]} : vector<64x2xf32> to vector<8x1xf32>
    %365 = vector.extract_strided_slice %357 {offsets = [56, 0], sizes = [8, 1], strides = [1, 1]} : vector<64x2xf32> to vector<8x1xf32>
    %366 = vector.extract_strided_slice %357 {offsets = [56, 1], sizes = [8, 1], strides = [1, 1]} : vector<64x2xf32> to vector<8x1xf32>
    %367 = tpu.concatenate %358, %359, %360, %361, %362, %363, %364, %365, %366 in 1 : vector<8x1xf32>, vector<8x1xf32>, vector<8x1xf32>, vector<8x1xf32>, vector<8x1xf32>, vector<8x1xf32>, vector<8x1xf32>, vector<8x1xf32>, vector<8x1xf32> -> vector<8x9xf32>
    %c0_103 = arith.constant 0 : index
    %c0_104 = arith.constant 0 : index
    %368 = vector.load %arg10[%c0_103, %c0_104] : memref<8x9xf32, #tpu.memory_space<vmem>>, vector<8x9xf32>
    tpu.vector_store %arg10[%c0_103, %c0_104], %367 {strides = array<i32>} : memref<8x9xf32, #tpu.memory_space<vmem>>, vector<8x9xf32>,
    return
  }
  func.func @transform_0(%arg0: i32) -> (i32, i32) {
    %c0_i32 = arith.constant 0 : i32
    %c0_i32_0 = arith.constant 0 : i32
    %c0_i32_1 = arith.constant 0 : i32
    return %c0_i32, %c0_i32_0 : i32, i32
  }
  func.func @transform_1(%arg0: i32) -> (i32, i32) {
    %c0_i32 = arith.constant 0 : i32
    %c0_i32_0 = arith.constant 0 : i32
    %c0_i32_1 = arith.constant 0 : i32
    return %c0_i32, %c0_i32_0 : i32, i32
  }
  func.func @transform_2(%arg0: i32) -> (i32, i32) {
    %c0_i32 = arith.constant 0 : i32
    %c0_i32_0 = arith.constant 0 : i32
    %c0_i32_1 = arith.constant 0 : i32
    return %c0_i32, %c0_i32_0 : i32, i32
  }
  func.func @transform_3(%arg0: i32) -> (i32, i32) {
    %c0_i32 = arith.constant 0 : i32
    %c0_i32_0 = arith.constant 0 : i32
    %c0_i32_1 = arith.constant 0 : i32
    return %c0_i32, %c0_i32_0 : i32, i32
  }
  func.func @transform_4(%arg0: i32) -> (i32, i32) {
    %c0_i32 = arith.constant 0 : i32
    %c0_i32_0 = arith.constant 0 : i32
    %c0_i32_1 = arith.constant 0 : i32
    return %c0_i32, %c0_i32_0 : i32, i32
  }
  func.func @transform_5(%arg0: i32) -> (i32, i32) {
    %c0_i32 = arith.constant 0 : i32
    %c0_i32_0 = arith.constant 0 : i32
    %c0_i32_1 = arith.constant 0 : i32
    return %c0_i32, %c0_i32_0 : i32, i32
  }
  func.func @transform_6(%arg0: i32) -> (i32, i32) {
    %c0_i32 = arith.constant 0 : i32
    %c0_i32_0 = arith.constant 0 : i32
    %c0_i32_1 = arith.constant 0 : i32
    return %c0_i32, %c0_i32_0 : i32, i32
  }
  func.func @transform_7(%arg0: i32) -> (i32, i32) {
    %c0_i32 = arith.constant 0 : i32
    %c0_i32_0 = arith.constant 0 : i32
    %c0_i32_1 = arith.constant 0 : i32
    return %c0_i32, %c0_i32_0 : i32, i32
  }
  func.func @transform_8(%arg0: i32) -> (i32, i32) {
    %c0_i32 = arith.constant 0 : i32
    %c0_i32_0 = arith.constant 0 : i32
    %c0_i32_1 = arith.constant 0 : i32
    return %c0_i32, %c0_i32_0 : i32, i32
  }
  func.func @transform_9(%arg0: i32) -> (i32, i32) {
    %c0_i32 = arith.constant 0 : i32
    %c0_i32_0 = arith.constant 0 : i32
    %c0_i32_1 = arith.constant 0 : i32
    return %c0_i32, %c0_i32_0 : i32, i32
  }
}

</mosaic_0001>

<bundles_post_ra>
// kernel: tpu_custom_call.1
= control target key start
LH: loop header
LB: loop body
LE: loop exit
PB: predicated region body
PF: predicated region fallthrough
CT: control target
= control target key end

     0   :  { %vm86_vm0 = vcmask 1043456   ;;  %vm61_vm1 = vcmask 31744   ;;  %s19394_s0 = inlined_call_operand.vmem [shape: f32[64,4], index: 0, kind: input, shape index: {}]   ;;  %s19395_s1 = inlined_call_operand.vmem [shape: f32[4,128], index: 1, kind: input, shape index: {}]   ;;  %s19396_s2 = inlined_call_operand.vmem [shape: f32[32,128], index: 2, kind: input, shape index: {}]   ;;  %s19397_s3 = inlined_call_operand.vmem [shape: f32[1,128], index: 3, kind: input, shape index: {}]   ;;  %s19398_s4 = inlined_call_operand.vmem [shape: f32[32,128], index: 4, kind: input, shape index: {}]   ;;  %s19399_s5 = inlined_call_operand.vmem [shape: f32[32,128], index: 5, kind: input, shape index: {}]   ;;  %s19400_s6 = inlined_call_operand.vmem [shape: f32[1,128], index: 6, kind: input, shape index: {}]   ;;  %s19401_s7 = inlined_call_operand.vmem [shape: f32[32,2], index: 7, kind: input, shape index: {}]   ;;  %s19402_s8 = inlined_call_operand.vmem [shape: f32[1,2], index: 8, kind: input, shape index: {}]   ;;  %s19403_s9 = inlined_call_operand.hbm [shape: f32[8,9], index: 9, kind: output, shape index: {}]  }
   0x1   :  { %v53_v0 = vld [vmem:[%s19395_s1] sm:$0xf]  ;;  %v46_v2 = vld [vmem:[%s19394_s0 + $0x8] sm:$0xff]  ;;  %v47_v6 = vld [vmem:[%s19394_s0 + $0x10] sm:$0xff] }
   0x2   :  { %v45_v1 = vld [vmem:[%s19394_s0] sm:$0xff]  ;;  %v88_v3 = vsel %vm86_vm0, %v53_v0, 0  ;;  %v66_v5 = vsel %vm61_vm1, %v46_v2, 0  ;;  %v48_v7 = vld [vmem:[%s19394_s0 + $0x18] sm:$0xff]  ;;  %v69_v12 = vsel %vm61_vm1, %v47_v6, 0  ;;  %v50_v13 = vld [vmem:[%s19394_s0 + $0x28] sm:$0xff] }
   0x3   :  { %v63_v4 = vsel %vm61_vm1, %v45_v1, 0  ;;  %v49_v8 = vld [vmem:[%s19394_s0 + $0x20] sm:$0xff]  ;;  %v17747_v9 = vand.u32 4294901760, %v88_v3  ;;  %v17751_v11 = vand.u32 4294901760, %v66_v5  ;;  %v51_v14 = vld [vmem:[%s19394_s0 + $0x30] sm:$0xff]  ;;  %v17760_v15 = vand.u32 4294901760, %v69_v12 }
   0x4   :  { %v17749_v10 = vand.u32 4294901760, %v63_v4  ;;  %v72_v16 = vsel %vm61_vm1, %v48_v7, 0  ;;  %v75_v17 = vsel %vm61_vm1, %v49_v8, 0  ;;  %v78_v18 = vsel %vm61_vm1, %v50_v13, 0 }
   0x5   :  { %14685 = vmatprep.subr.mxu1 %v17747_v9  ;;  %v17770_v20 = vsub.f32 %v88_v3, %v17747_v9  ;;  %v17773_v21 = vsub.f32 %v66_v5, %v17751_v11  ;;  %14727 = vmatprep.subr.mxu0 %v17747_v9  ;;  %v17776_v22 = vand.u32 4294901760, %v72_v16  ;;  %v17781_v23 = vsub.f32 %v69_v12, %v17760_v15 }
   0x6   :  { %v17767_v19 = vsub.f32 %v63_v4, %v17749_v10  ;;  %14686 = vmatpush3.msra.mxu1 %v17747_v9  ;;  %14728 = vmatpush3.msra.mxu0 %v17747_v9  ;;  %v17783_v24 = vand.u32 4294901760, %v75_v17  ;;  %v17785_v25 = vand.u32 4294901760, %v78_v18  ;;  %v81_v26 = vsel %vm61_vm1, %v51_v14, 0 }
   0x7   :  { %v239_v28 = vand.u32 4294901760, %v17770_v20  ;;  %v168_v29 = vand.u32 4294901760, %v17773_v21  ;;  %v17792_v30 = vsub.f32 %v72_v16, %v17776_v22 }
   0x8   :  { %v158_v27 = vand.u32 4294901760, %v17767_v19 }
   0x9   :  { %14 = vsyncpa [#allocation5], 0  ;;  %v178_v31 = vand.u32 4294901760, %v17781_v23  ;;  %v17796_v32 = vsub.f32 %v75_v17, %v17783_v24  ;;  %v17799_v33 = vsub.f32 %v78_v18, %v17785_v25  ;;  %v17801_v34 = vand.u32 4294901760, %v81_v26  ;;  %14741 = vmatprep.subr.mxu0 %v239_v28  ;;  %v52_v43 = vld [vmem:[%s19394_s0 + $0x38] sm:$0xff]  ;;  %v33_v0 = vld [vmem:[%s19396_s2] sm:$0xff] }
   0xa   :  { %v159_v35 = vsub.f32 %v17767_v19, %v158_v27  ;;  %v240_v36 = vsub.f32 %v17770_v20, %v239_v28  ;;  %v169_v37 = vsub.f32 %v17773_v21, %v168_v29  ;;  %14729 = vmatprep.mubr.f32.mxu0 %v158_v27  ;;  %v188_v38 = vand.u32 4294901760, %v17792_v30  ;;  %v34_v1 = vld [vmem:[%s19396_s2 + $0x8] sm:$0xff]  ;;  %v35_v4 = vld [vmem:[%s19396_s2 + $0x10] sm:$0xff]  ;;  %v36_v5 = vld [vmem:[%s19396_s2 + $0x18] sm:$0xff]  ;;  %s17669_s1 = smov 1   ;;  %s17670_s17 = smov 3  }
   0xb   :  { %14730 = vmatmul.mubr.f32.vlgmr.msra.gmra.mrb[0].mxu0 %v168_v29  ;;  %v179_v39 = vsub.f32 %v17781_v23, %v178_v31  ;;  %v198_v40 = vand.u32 4294901760, %v17796_v32  ;;  %v208_v41 = vand.u32 4294901760, %v17799_v33  ;;  %v17811_v42 = vsub.f32 %v81_v26, %v17801_v34  ;;  %s17671_s18 = smov 2   ;;  %s17672_s19 = smov 5  }
   0xc   :  { %v160_v44 = vand.u32 4294901760, %v159_v35  ;;  %v241_v45 = vand.u32 4294901760, %v240_v36  ;;  %v170_v46 = vand.u32 4294901760, %v169_v37  ;;  %v189_v47 = vsub.f32 %v17792_v30, %v188_v38  ;;  %14732 = vmatprep.mubr.f32.mxu0 %v178_v31  ;;  %14742 = vmatpush3.msra.mxu0 %v239_v28  ;;  %v13836_v35 = vld [vmem:[%s19397_s3] ss:$0 sm:$0xff]  ;;  %s17667_s3 = smov 32  }
   0xd   :  { %v180_v48 = vand.u32 4294901760, %v179_v39  ;;  %v199_v49 = vsub.f32 %v17796_v32, %v198_v40  ;;  %v218_v50 = vand.u32 4294901760, %v17811_v42  ;;  %14755 = vmatprep.subr.mxu0 %v17747_v9  ;;  %v84_v51 = vsel %vm61_vm1, %v52_v43, 0  ;;  %s17674_s20 = smov 7   ;;  %s17675_s21 = smov 6  }
   0xe   :  { %14687 = vmatprep.mubr.f32.mxu1 %v160_v44  ;;  %14699 = vmatprep.subr.mxu1 %v241_v45  ;;  %v190_v52 = vand.u32 4294901760, %v189_v47  ;;  %v209_v53 = vsub.f32 %v17799_v33, %v208_v41  ;;  %v17822_v54 = vand.u32 4294901760, %v84_v51  ;;  %v17664_v63 = vmov 0.0|0.0   ;;  %s17676_s22 = smov [#allocation4]  }
   0xf   :  { %14688 = vmatmul.mubr.f32.vlgmr.msra.gmra.mrb[0].mxu1 %v170_v46  ;;  %14733 = vmatmul.mubr.f32.gmra.mrb[2].mxu0 %v188_v38  ;;  %v200_v55 = vand.u32 4294901760, %v199_v49  ;;  %v219_v56 = vsub.f32 %v17811_v42, %v218_v50  ;;  %v858_v2 = vand.u32 4294901760, %v33_v0  ;;  %v861_v3 = vand.u32 4294901760, %v34_v1  ;;  %s13828_s23 = sshll.u32 %s17676_s22, 4  ;;  %s13829_s23 = int_to_ptr.vmem [resolvable:$true] %s13828_s23 }
  0x10   :  { %14700 = vmatpush3.msra.mxu1 %v241_v45  ;;  %14690 = vmatprep.mubr.f32.mxu1 %v180_v48  ;;  %v17826_v57 = vsub.f32 %v84_v51, %v17822_v54  ;;  %v210_v58 = vand.u32 4294901760, %v209_v53  ;;  %v864_v6 = vand.u32 4294901760, %v35_v4  ;;  %v867_v7 = vand.u32 4294901760, %v36_v5  ;;  %p17645_p1 = scmp.lt.s32.totalorder %s13829_s23, %s13829_s23 }
  0x11   :  { %14735 = vmatprep.mubr.f32.mxu0 %v198_v40  ;;  %14713 = vmatprep.subr.mxu1 %v17770_v20  ;;  %v220_v60 = vand.u32 4294901760, %v219_v56  ;;  %v17866_v8 = vpack.c.bf16 %v861_v3, %v858_v2  ;;  %vm17665_vm2 = vmmov 0   ;;  %vm853_vm3 = vcmask 261120  }
  0x12   :  { %v228_v59 = vand.u32 4294901760, %v17826_v57  ;;  %v17871_v12 = vpack.c.bf16 %v867_v7, %v864_v6  ;;  %v952_v14 = vsub.f32 %v35_v4, %v864_v6  ;;  %v959_v16 = vsub.f32 %v36_v5, %v867_v7 }
  0x13   :  { %14691 = vmatmul.mubr.f32.gmra.mrb[2].mxu1 %v190_v52  ;;  %14736 = vmatmul.mubr.f32.gmra.mrb[4].mxu0 %v208_v41  ;;  %vm13805_vm4 = vcmask 7168   ;;  %vm13807_vm5 = vcmask 15360   ;;  %vm13809_vm6 = vcmask 23552   ;;  %vm13812_vm7 = vcmask 39936  }
  0x14   :  { %14693 = vmatprep.mubr.f32.mxu1 %v200_v55  ;;  %14738 = vmatprep.mubr.f32.mxu0 %v218_v50  ;;  %v229_v61 = vsub.f32 %v17826_v57, %v228_v59  ;;  %v953_v18 = vand.u32 4294901760, %v952_v14  ;;  %vm13814_vm8 = vcmask 48128   ;;  %vm13816_vm9 = vcmask 56320  }
  0x15   :  { %vm13818_vm10 = vcmask 64512   ;;  %vm13820_vm11 = vcmask 72704  }
  0x16   :  { %v230_v62 = vand.u32 4294901760, %v229_v61 }
  0x17   :  { %14694 = vmatmul.mubr.f32.gmra.mrb[4].mxu1 %v210_v58  ;;  %14739 = vmatmul.mubr.f32.gmra.mrb[6].mxu0 %v228_v59 }
  0x18   :  { %14696 = vmatprep.mubr.f32.mxu1 %v220_v60  ;;  %14743 = vmatprep.mubr.f32.mxu0 %v17749_v10 }
  0x1b   :  { %14697 = vmatmul.mubr.f32.gmra.mrb[6].mxu1 %v230_v62  ;;  %14744 = vmatmul.mubr.f32.vlgmr.msra.gmra.mrb[0].mxu0 %v17751_v11 }
  0x1c   :  { %14701 = vmatprep.mubr.f32.mxu1 %v17749_v10  ;;  %14746 = vmatprep.mubr.f32.mxu0 %v17760_v15 }
  0x1d   :  { %14756 = vmatpush3.msra.mxu0 %v17747_v9  ;;  %v938_v9 = vsub.f32 %v33_v0, %v858_v2 }
  0x1e   :  { %16545 = vmatprep.subr.bf16.mxu0 %v17664_v63 }
  0x1f   :  { %14702 = vmatmul.mubr.f32.vlgmr.msra.gmra.mrb[0].mxu1 %v17751_v11  ;;  %14747 = vmatmul.mubr.f32.gmra.mrb[2].mxu0 %v17776_v22 }
  0x20   :  { %14714 = vmatpush3.msra.mxu1 %v17770_v20  ;;  %14704 = vmatprep.mubr.f32.mxu1 %v17760_v15 }
  0x21   :  { %14749 = vmatprep.mubr.f32.mxu0 %v17783_v24  ;;  %16473 = vmatprep.subr.bf16.mxu1 %v17664_v63 }
  0x23   :  { %14705 = vmatmul.mubr.f32.gmra.mrb[2].mxu1 %v17776_v22  ;;  %14750 = vmatmul.mubr.f32.gmra.mrb[4].mxu0 %v17785_v25 }
  0x24   :  { %14707 = vmatprep.mubr.f32.mxu1 %v17783_v24  ;;  %14752 = vmatprep.mubr.f32.mxu0 %v17801_v34 }
  0x27   :  { %14708 = vmatmul.mubr.f32.gmra.mrb[4].mxu1 %v17785_v25  ;;  %14753 = vmatmul.mubr.f32.gmra.mrb[6].mxu0 %v17822_v54 }
  0x28   :  { %14710 = vmatprep.mubr.f32.mxu1 %v17801_v34  ;;  %14757 = vmatprep.mubr.f32.mxu0 %v17749_v10  ;;  %v945_v10 = vsub.f32 %v34_v1, %v861_v3 }
  0x2a   :  { %v946_v13 = vand.u32 4294901760, %v945_v10  ;;  %v17901_v29 = vpack.c.bf16 %v945_v10, %v938_v9 }
  0x2b   :  { %14711 = vmatmul.mubr.f32.gmra.mrb[6].mxu1 %v17822_v54  ;;  %14758 = vmatmul.mubr.f32.vlgmr.msra.gmra.mrb[0].mxu0 %v17751_v11  ;;  %v939_v11 = vand.u32 4294901760, %v938_v9 }
  0x2c   :  { %14715 = vmatprep.mubr.f32.mxu1 %v17767_v19  ;;  %14760 = vmatprep.mubr.f32.mxu0 %v17760_v15  ;;  %v947_v17 = vsub.f32 %v945_v10, %v946_v13  ;;  %v960_v19 = vand.u32 4294901760, %v959_v16 }
  0x2d   :  { %v940_v15 = vsub.f32 %v938_v9, %v939_v11  ;;  %v17919_v31 = vpack.c.bf16 %v946_v13, %v939_v11 }
  0x2f   :  { %14716 = vmatmul.mubr.f32.vlgmr.msra.gmra.mrb[0].mxu1 %v17773_v21  ;;  %14761 = vmatmul.mubr.f32.gmra.mrb[2].mxu0 %v17776_v22  ;;  %v941_v20 = vand.u32 4294901760, %v940_v15  ;;  %v948_v21 = vand.u32 4294901760, %v947_v17  ;;  %v954_v22 = vsub.f32 %v952_v14, %v953_v18  ;;  %v41_v15 = vld [vmem:[%s19399_s5] sm:$0xff]  ;;  %v42_v17 = vld [vmem:[%s19399_s5 + $0x8] sm:$0xff] }
  0x30   :  { %16475 = vmatpush3.bf16.msra.mxu1 %v17866_v8  ;;  %14718 = vmatprep.mubr.f32.mxu1 %v17781_v23  ;;  %v961_v23 = vsub.f32 %v959_v16, %v960_v19 }
  0x31   :  { %16476 = vmatprep.subr.bf16.mxu1 %v17664_v63  ;;  %14763 = vmatprep.mubr.f32.mxu0 %v17783_v24  ;;  %v17666_v24 = vmov 0.0   ;;  %v955_v26 = vand.u32 4294901760, %v954_v22 }
  0x32   :  { %v962_v27 = vand.u32 4294901760, %v961_v23  ;;  %v37_v23 = vld [vmem:[%s19398_s4] sm:$0xff] }
  0x33   :  { %14719 = vmatmul.mubr.f32.gmra.mrb[2].mxu1 %v17792_v30  ;;  %14764 = vmatmul.mubr.f32.gmra.mrb[4].mxu0 %v17785_v25  ;;  %v17891_v25 = vpack.c.bf16 %v948_v21, %v941_v20  ;;  %v17906_v30 = vpack.c.bf16 %v959_v16, %v952_v14  ;;  %v1367_v20 = vand.u32 4294901760, %v42_v17  ;;  %v44_v21 = vld [vmem:[%s19399_s5 + $0x18] sm:$0xff] }
  0x34   :  { %14721 = vmatprep.mubr.f32.mxu1 %v17796_v32  ;;  %16478 = vmatpush3.bf16.msra.mxu1 %v17871_v12  ;;  %v17895_v28 = vpack.c.bf16 %v962_v27, %v955_v26  ;;  %v17924_v32 = vpack.c.bf16 %v960_v19, %v953_v18  ;;  %v43_v18 = vld [vmem:[%s19399_s5 + $0x10] sm:$0xff]  ;;  %v1364_v19 = vand.u32 4294901760, %v41_v15  ;;  %v38_v26 = vld [vmem:[%s19398_s4 + $0x8] sm:$0xff]  ;;  %v1373_v27 = vand.u32 4294901760, %v44_v21  ;;  %s17640_s5 = scalar_lea.vmem %s13829_s23, 128 }
  0x35   :  { %14766 = vmatprep.mubr.f32.mxu0 %v17801_v34  ;;  %16479 = vmatprep.subr.bf16.mxu1 %v17664_v63  ;;  %v1370_v22 = vand.u32 4294901760, %v43_v18  ;;  %p17641_p0 = scmp.ne.s32.totalorder %s13829_s23, %s17640_s5  ;;  %p17646_p2 = scmp.lt.s32.totalorder %s17640_s5, %s17640_s5 }
  0x37   :  { %14722 = vmatmul.mubr.f32.gmra.mrb[4].mxu1 %v17799_v33  ;;  %14767 = vmatmul.mubr.f32.gmra.mrb[6].mxu0 %v17822_v54  ;;  %p17647_p3 = por %p17646_p2, %p17645_p1 }
  0x38   :  { %14724 = vmatprep.mubr.f32.mxu1 %v17811_v42  ;;  %14909 = vmatprep.mubr.msk.f32.mxu0 %vm17665_vm2, %v17666_v24 }
  0x39   :  { %p17648_p4 = pnand %p17647_p3, %p17641_p0 }
  0x3b   :  { %14725 = vmatmul.mubr.f32.gmra.mrb[6].mxu1 %v17826_v57 }
  0x3c   :  { %14777 = vmatprep.mubr.msk.f32.mxu1 %vm17665_vm2, %v17666_v24 }
  0x3f   :  { %14778 = vmatmul.mubr.f32.vlgmr.msra.gmra.mrb[8].mxu1 %v17666_v24 }
  0x40   :  { %16481 = vmatpush3.bf16.msra.mxu1 %v17891_v25  ;;  %14788 = vmatprep.mubr.msk.f32.mxu1 %vm17665_vm2, %v17666_v24 }
  0x41   :  { %16482 = vmatprep.subr.bf16.mxu1 %v17664_v63 }
  0x44   :  { %16484 = vmatpush3.bf16.msra.mxu1 %v17895_v28 }
  0x45   :  { %16485 = vmatprep.subr.bf16.mxu1 %v17664_v63 }
  0x47   :  { %14789 = vmatmul.mubr.f32.vlgmr.msra.gmra.mrb[8].mxu1 %v17666_v24 }
  0x48   :  { %16487 = vmatpush3.bf16.msra.mxu1 %v17901_v29  ;;  %14799 = vmatprep.mubr.msk.f32.mxu1 %vm17665_vm2, %v17666_v24 }
  0x49   :  { %16488 = vmatprep.subr.bf16.mxu1 %v17664_v63 }
  0x4c   :  { %16490 = vmatpush3.bf16.msra.mxu1 %v17906_v30 }
  0x4d   :  { %16491 = vmatprep.subr.bf16.mxu1 %v17664_v63 }
  0x4f   :  { %14800 = vmatmul.mubr.f32.vlgmr.msra.gmra.mrb[8].mxu1 %v17666_v24 }
  0x50   :  { %16493 = vmatpush3.bf16.msra.mxu1 %v17866_v8  ;;  %14810 = vmatprep.mubr.msk.f32.mxu1 %vm17665_vm2, %v17666_v24 }
  0x51   :  { %16494 = vmatprep.subr.bf16.mxu1 %v17664_v63 }
  0x54   :  { %16496 = vmatpush3.bf16.msra.mxu1 %v17871_v12 }
  0x55   :  { %16497 = vmatprep.subr.bf16.mxu1 %v17664_v63 }
  0x57   :  { %14811 = vmatmul.mubr.f32.vlgmr.msra.gmra.mrb[8].mxu1 %v17666_v24 }
  0x58   :  { %16499 = vmatpush3.bf16.msra.mxu1 %v17919_v31  ;;  %14821 = vmatprep.mubr.msk.f32.mxu1 %vm17665_vm2, %v17666_v24 }
  0x59   :  { %16500 = vmatprep.subr.bf16.mxu1 %v17664_v63 }
  0x5c   :  { %16502 = vmatpush3.bf16.msra.mxu1 %v17924_v32 }
  0x5d   :  { %16503 = vmatprep.subr.bf16.mxu1 %v17664_v63 }
  0x5f   :  { %14822 = vmatmul.mubr.f32.vlgmr.msra.gmra.mrb[8].mxu1 %v17666_v24 }
  0x60   :  { %16505 = vmatpush3.bf16.msra.mxu1 %v17866_v8  ;;  %14832 = vmatprep.mubr.msk.f32.mxu1 %vm17665_vm2, %v17666_v24 }
  0x61   :  { %16506 = vmatprep.subr.bf16.mxu1 %v17664_v63 }
  0x64   :  { %16508 = vmatpush3.bf16.msra.mxu1 %v17871_v12 }
  0x65   :  { %16509 = vmatprep.subr.bf16.mxu1 %v17664_v63 }
  0x67   :  { %14833 = vmatmul.mubr.f32.vlgmr.msra.gmra.mrb[8].mxu1 %v17666_v24 }
  0x68   :  { %14843 = vmatprep.mubr.msk.f32.mxu1 %vm17665_vm2, %v17666_v24 }
  0xfe   :  { %v14759_v33 = vpop.f32.mrb[0].mxu0 }
  0xff   :  { %v791_v34 = vpop.f32.mrb[1].mxu0 }
 0x102   :  { %v14717_v36 = vpop.f32.mrb[0].mxu1  ;;  %v14762_v37 = vpop.f32.mrb[2].mxu0 }
 0x103   :  { %v17385_v38 = vadd.f32 %v14717_v36, %v13836_v35  ;;  %v424_v39 = vpop.f32.mrb[1].mxu1  ;;  %v803_v40 = vpop.f32.mrb[3].mxu0  ;;  %v1444_v36 = vsub.f32 %v41_v15, %v1364_v19 }
 0x104   :  { %v17387_v41 = vadd.f32 %v13836_v35, %v424_v39  ;;  %v1465_v39 = vsub.f32 %v44_v21, %v1373_v27 }
 0x105   :  { %v17944_v42 = vadd.f32 %v17385_v38, %v14759_v33  ;;  %v1854_v33 = vand.u32 4294901760, %v37_v23  ;;  %v1458_v38 = vsub.f32 %v43_v18, %v1370_v22 }
 0x106   :  { %v17388_v43 = vadd.f32 %v17387_v41, %v791_v34  ;;  %v14720_v44 = vpop.f32.mrb[2].mxu1  ;;  %v14765_v45 = vpop.f32.mrb[4].mxu0  ;;  %v1857_v34 = vand.u32 4294901760, %v38_v26  ;;  %v17990_v41 = vpack.c.bf16 %v1373_v27, %v1370_v22 }
 0x107   :  { %v17389_v46 = vadd.f32 %v14720_v44, %v13836_v35  ;;  %v438_v47 = vpop.f32.mrb[3].mxu1  ;;  %v815_v48 = vpop.f32.mrb[5].mxu0 }
 0x108   :  { %v17391_v49 = vadd.f32 %v13836_v35, %v438_v47 }
 0x109   :  { %v17946_v50 = vadd.f32 %v17389_v46, %v14762_v37  ;;  %v1451_v37 = vsub.f32 %v42_v17, %v1367_v20  ;;  %v1466_v46 = vand.u32 4294901760, %v1465_v39 }
 0x10a   :  { %v17948_v51 = vadd.f32 %v17391_v49, %v803_v40  ;;  %v14723_v52 = vpop.f32.mrb[4].mxu1  ;;  %v14768_v53 = vpop.f32.mrb[6].mxu0  ;;  %v17987_v40 = vpack.c.bf16 %v1857_v34, %v1854_v33 }
 0x10b   :  { %v17393_v54 = vadd.f32 %v14723_v52, %v13836_v35  ;;  %v452_v55 = vpop.f32.mrb[5].mxu1  ;;  %v827_v56 = vpop.f32.mrb[7].mxu0  ;;  %v1452_v44 = vand.u32 4294901760, %v1451_v37  ;;  %v39_v52 = vld [vmem:[%s19398_s4 + $0x10] sm:$0xff] }
 0x10c   :  { %v17395_v57 = vadd.f32 %v13836_v35, %v452_v55  ;;  %16547 = vmatpush3.bf16.msra.mxu0 %v17987_v40 }
 0x10d   :  { %v17950_v58 = vadd.f32 %v17393_v54, %v14765_v45  ;;  %v1459_v45 = vand.u32 4294901760, %v1458_v38  ;;  %16548 = vmatprep.subr.bf16.mxu0 %v17664_v63  ;;  %v1467_v54 = vsub.f32 %v1465_v39, %v1466_v46 }
 0x10e   :  { %v17952_v59 = vadd.f32 %v17395_v57, %v815_v48  ;;  %v14726_v60 = vpop.f32.mrb[6].mxu1  ;;  %v1453_v48 = vsub.f32 %v1451_v37, %v1452_v44 }
 0x10f   :  { %v17397_v61 = vadd.f32 %v14726_v60, %v13836_v35  ;;  %v466_v62 = vpop.f32.mrb[7].mxu1  ;;  %v1460_v49 = vsub.f32 %v1458_v38, %v1459_v45  ;;  %v18046_v15 = vpack.c.bf16 %v1466_v46, %v1459_v45 }
 0x110   :  { %v17399_v0 = vadd.f32 %v13836_v35, %v466_v62  ;;  %v17985_v35 = vpack.c.bf16 %v1367_v20, %v1364_v19  ;;  %v1860_v62 = vand.u32 4294901760, %v39_v52 }
 0x111   :  { %v17954_v1 = vadd.f32 %v17397_v61, %v14768_v53  ;;  %v40_v53 = vld [vmem:[%s19398_s4 + $0x18] sm:$0xff]  ;;  %v1461_v57 = vand.u32 4294901760, %v1460_v49  ;;  %v1468_v61 = vand.u32 4294901760, %v1467_v54  ;;  %s17668_s4 = smov 64  }
 0x112   :  { %v17956_v2 = vadd.f32 %v17399_v0, %v827_v56  ;;  %16511 = vmatpush3.bf16.msra.mxu1 %v17985_v35  ;;  %v1454_v56 = vand.u32 4294901760, %v1453_v48  ;;  %v1863_v0 = vand.u32 4294901760, %v40_v53  ;;  %v18051_v18 = vsub.f32 %v39_v52, %v1860_v62 }
 0x113   :  { %16512 = vmatprep.subr.bf16.mxu1 %v17664_v63 }
 0x114   :  { %v18053_v19 = vsub.f32 %v40_v53, %v1863_v0  ;;  %v1949_v22 = vand.u32 4294901760, %v18051_v18 }
 0x116   :  { %16514 = vmatpush3.bf16.msra.mxu1 %v17990_v41 }
 0x117   :  { %16515 = vmatprep.subr.bf16.mxu1 %v17664_v63 }
 0x119   :  { %14844 = vmatmul.mubr.f32.vlgmr.msra.gmra.mrb[10].mxu1 %v17666_v24 }
 0x11a   :  { %14854 = vmatprep.mubr.msk.f32.mxu1 %vm17665_vm2, %v17666_v24 }
 0x13a   :  { %v1338_v3 = vpop.f32.mrb[8].mxu1 }
 0x13b   :  { %v1342_v4 = vadd.f32 %v17388_v43, %v1338_v3  ;;  %v14834_v5 = vpop.f32.mrb[9].mxu1  ;;  %v1445_v43 = vand.u32 4294901760, %v1444_v36 }
 0x13c   :  { %v18010_v5 = vpack.c.bf16 %v1468_v61, %v1461_v57 }
 0x13d   :  { %17574 = vtanh.f32 %v1342_v4  ;;  %v1446_v47 = vsub.f32 %v1444_v36, %v1445_v43  ;;  %v18007_v4 = vpack.c.bf16 %v1863_v0, %v1860_v62 }
 0x13f   :  { %v1447_v55 = vand.u32 4294901760, %v1446_v47  ;;  %16550 = vmatpush3.bf16.msra.mxu0 %v18007_v4 }
 0x140   :  { %16557 = vmatprep.subr.bf16.mxu0 %v17664_v63 }
 0x141   :  { %v18004_v3 = vpack.c.bf16 %v1454_v56, %v1447_v55 }
 0x143   :  { %16517 = vmatpush3.bf16.msra.mxu1 %v18004_v3 }
 0x144   :  { %16518 = vmatprep.subr.bf16.mxu1 %v17664_v63 }
 0x147   :  { %v17575_v6 = vpop.eup %17574  ;;  %16520 = vmatpush3.bf16.msra.mxu1 %v18010_v5 }
 0x148   :  { %1348 = vrot.lane.b32.xlu0 %v17575_v6, %s17667_s3  ;;  %v1344_v7 = vmul.f32 0.5, %v17575_v6  ;;  %v18018_v6 = vpack.c.bf16 %v1451_v37, %v1444_v36  ;;  %16521 = vmatprep.subr.bf16.mxu1 %v17664_v63 }
 0x14a   :  { %v17959_v9 = vadd.f32 0.5, %v1344_v7  ;;  %14855 = vmatmul.mubr.f32.vlgmr.msra.gmra.mrb[12].mxu1 %v17666_v24  ;;  %v18023_v7 = vpack.c.bf16 %v1465_v39, %v1458_v38 }
 0x14b   :  { %16523 = vmatpush3.bf16.msra.mxu1 %v18018_v6  ;;  %14865 = vmatprep.mubr.msk.f32.mxu1 %vm17665_vm2, %v17666_v24 }
 0x14c   :  { %v1346_v13 = vmul.f32 0.0, %v17959_v9  ;;  %16524 = vmatprep.subr.bf16.mxu1 %v17664_v63 }
 0x14f   :  { %16526 = vmatpush3.bf16.msra.mxu1 %v18023_v7 }
 0x150   :  { %16527 = vmatprep.subr.bf16.mxu1 %v17664_v63 }
 0x152   :  { %14866 = vmatmul.mubr.f32.vlgmr.msra.gmra.mrb[14].mxu1 %v17666_v24 }
 0x153   :  { %16529 = vmatpush3.bf16.msra.mxu1 %v17985_v35  ;;  %14876 = vmatprep.mubr.msk.f32.mxu1 %vm17665_vm2, %v17666_v24 }
 0x154   :  { %16530 = vmatprep.subr.bf16.mxu1 %v17664_v63 }
 0x157   :  { %16532 = vmatpush3.bf16.msra.mxu1 %v17990_v41 }
 0x158   :  { %16533 = vmatprep.subr.bf16.mxu1 %v17664_v63 }
 0x15a   :  { %14877 = vmatmul.mubr.f32.vlgmr.msra.gmra.mrb[16].mxu1 %v17666_v24 }
 0x15b   :  { %14887 = vmatprep.mubr.msk.f32.mxu1 %vm17665_vm2, %v17666_v24 }
 0x1ba   :  { %v1349_v10 = vpop.permute.xlu0 %1348 }
 0x1bb   :  { %v1351_v11 = vmul.f32 %v1349_v10, %v17959_v9  ;;  %v18035_v10 = vsub.f32 %v37_v23, %v1854_v33  ;;  %v1956_v23 = vand.u32 4294901760, %v18053_v19  ;;  %v1950_v33 = vsub.f32 %v18051_v18, %v1949_v22 }
 0x1bd   :  { %1353 = vrot.lane.b32.xlu0 %v1351_v11, %s17667_s3  ;;  %v18038_v11 = vpack.c.bf16 %v1452_v44, %v1445_v43  ;;  %v1951_v37 = vand.u32 4294901760, %v1950_v33 }
 0x1bf   :  { %16535 = vmatpush3.bf16.msra.mxu1 %v18038_v11 }
 0x1c0   :  { %16536 = vmatprep.subr.bf16.mxu1 %v17664_v63 }
 0x1c3   :  { %16538 = vmatpush3.bf16.msra.mxu1 %v18046_v15 }
 0x1c4   :  { %16539 = vmatprep.subr.bf16.mxu1 %v17664_v63 }
 0x1c6   :  { %14888 = vmatmul.mubr.f32.vlgmr.msra.gmra.mrb[18].mxu1 %v17666_v24 }
 0x1c7   :  { %16541 = vmatpush3.bf16.msra.mxu1 %v17985_v35  ;;  %14898 = vmatprep.mubr.msk.f32.mxu1 %vm17665_vm2, %v17666_v24 }
 0x1c8   :  { %16542 = vmatprep.subr.bf16.mxu1 %v17664_v63 }
 0x1cb   :  { %16544 = vmatpush3.bf16.msra.mxu1 %v17990_v41 }
 0x1cc   :  { %16551 = vmatprep.subr.bf16.mxu1 %v17664_v63 }
 0x1ce   :  { %14899 = vmatmul.mubr.f32.vlgmr.msra.gmra.mrb[20].mxu1 %v17666_v24 }
 0x1cf   :  { %14920 = vmatprep.mubr.msk.f32.mxu1 %vm17665_vm2, %v17666_v24 }
 0x1ec   :  { %v1438_v45 = vpop.f32.mrb[10].mxu1 }
 0x1ed   :  { %v14845_v46 = vpop.f32.mrb[11].mxu1 }
 0x21d   :  { %v1529_v47 = vpop.f32.mrb[12].mxu1 }
 0x21e   :  { %v1530_v48 = vadd.f32 %v1529_v47, %v1438_v45  ;;  %v14856_v49 = vpop.f32.mrb[13].mxu1 }
 0x225   :  { %v1609_v52 = vpop.f32.mrb[14].mxu1 }
 0x226   :  { %v1610_v53 = vadd.f32 %v1609_v52, %v1530_v48  ;;  %v14867_v54 = vpop.f32.mrb[15].mxu1 }
 0x22f   :  { %v1354_v14 = vpop.permute.xlu0 %1353 }
 0x230   :  { %v17964_v16 = vadd.f32 %v1354_v14, %v1346_v13  ;;  %v18040_v13 = vsub.f32 %v38_v26, %v1857_v34  ;;  %v1935_v14 = vand.u32 4294901760, %v18035_v10  ;;  %v1957_v34 = vsub.f32 %v18053_v19, %v1956_v23 }
 0x232   :  { %17576 = vtanh.f32 %v17964_v16  ;;  %v1942_v17 = vand.u32 4294901760, %v18040_v13  ;;  %v1936_v20 = vsub.f32 %v18035_v10, %v1935_v14  ;;  %v1958_v38 = vand.u32 4294901760, %v1957_v34 }
 0x234   :  { %v1943_v21 = vsub.f32 %v18040_v13, %v1942_v17  ;;  %v1937_v26 = vand.u32 4294901760, %v1936_v20  ;;  %v18083_v39 = vpack.c.bf16 %v1958_v38, %v1951_v37  ;;  %v18133_v38 = vpack.c.bf16 %v1942_v17, %v1935_v14 }
 0x236   :  { %v1944_v27 = vand.u32 4294901760, %v1943_v21  ;;  %v18111_v21 = vpack.c.bf16 %v18040_v13, %v18035_v10 }
 0x238   :  { %v18078_v36 = vpack.c.bf16 %v1944_v27, %v1937_v26  ;;  %v18119_v27 = vpack.c.bf16 %v18053_v19, %v18051_v18 }
 0x23a   :  { %16553 = vmatpush3.bf16.msra.mxu1 %v18078_v36 }
 0x23b   :  { %16554 = vmatprep.subr.bf16.mxu1 %v17664_v63 }
 0x23c   :  { %v17577_v60 = vpop.eup %17576 }
 0x23d   :  { %1359 = vrot.lane.b32.xlu1 %v17577_v60, %s17667_s3 }
 0x23e   :  { %16556 = vmatpush3.bf16.msra.mxu1 %v18083_v39 }
 0x23f   :  { %16563 = vmatprep.subr.bf16.mxu1 %v17664_v63 }
 0x2af   :  { %v1360_v43 = vpop.permute.xlu1 %1359 }
 0x2b0   :  { %v1362_v44 = vmul.f32 %v1360_v43, %v17959_v9  ;;  %v1686_v9 = vpop.f32.mrb[16].mxu1  ;;  %v18144_v43 = vpack.c.bf16 %v1956_v23, %v1949_v22 }
 0x2b1   :  { %v1687_v62 = vadd.f32 %v1686_v9, %v1610_v53  ;;  %v14878_v0 = vpop.f32.mrb[17].mxu1 }
 0x2b2   :  { %1849 = vrot.lane.b32.xlu1 %v1362_v44, %s17668_s4  ;;  %v1769_v33 = vpop.f32.mrb[18].mxu1 }
 0x2b3   :  { %v1770_v34 = vadd.f32 %v1769_v33, %v1687_v62  ;;  %v14889_v37 = vpop.f32.mrb[19].mxu1 }
 0x2b4   :  { %v1844_v10 = vpop.f32.mrb[20].mxu1 }
 0x2b5   :  { %v1845_v13 = vadd.f32 %v1844_v10, %v1770_v34  ;;  %v14900_v14 = vpop.f32.mrb[21].mxu1 }
 0x324   :  { %v1850_v55 = vpop.permute.xlu1 %1849 }
 0x325   :  { %v1851_v56 = vsel %vm853_vm3, %v1850_v55, 0 }
 0x326   :  { %v18093_v57 = vand.u32 4294901760, %v1851_v56 }
 0x328   :  { %v18096_v60 = vsub.f32 %v1851_v56, %v18093_v57  ;;  %14921 = vmatmul.mubr.f32.vlgmr.msra.gmra.mrb[22].mxu1 %v18093_v57 }
 0x329   :  { %16565 = vmatpush3.bf16.msra.mxu1 %v17987_v40  ;;  %14942 = vmatprep.mubr.msk.f32.mxu1 %vm17665_vm2, %v17666_v24 }
 0x32a   :  { %16566 = vmatprep.subr.bf16.mxu1 %v17664_v63  ;;  %v18104_v61 = vand.u32 4294901760, %v18096_v60 }
 0x32c   :  { %v1925_v20 = vsub.f32 %v18096_v60, %v18104_v61 }
 0x32d   :  { %16568 = vmatpush3.bf16.msra.mxu1 %v18007_v4 }
 0x32e   :  { %16575 = vmatprep.subr.bf16.mxu1 %v17664_v63  ;;  %v1926_v26 = vand.u32 4294901760, %v1925_v20 }
 0x330   :  { %14943 = vmatmul.mubr.f32.vlgmr.msra.gmra.mrb[24].mxu1 %v18104_v61  ;;  %14910 = vmatmul.mubr.f32.vlgmr.msra.gmra.mrb[8].mxu0 %v1926_v26 }
 0x331   :  { %16559 = vmatpush3.bf16.msra.mxu0 %v18111_v21  ;;  %16577 = vmatpush3.bf16.msra.mxu1 %v17987_v40 }
 0x332   :  { %16560 = vmatprep.subr.bf16.mxu0 %v17664_v63  ;;  %16578 = vmatprep.subr.bf16.mxu1 %v17664_v63 }
 0x333   :  { %14931 = vmatprep.mubr.msk.f32.mxu0 %vm17665_vm2, %v17666_v24  ;;  %14964 = vmatprep.mubr.msk.f32.mxu1 %vm17665_vm2, %v17666_v24 }
 0x335   :  { %16562 = vmatpush3.bf16.msra.mxu0 %v18119_v27  ;;  %16580 = vmatpush3.bf16.msra.mxu1 %v18007_v4 }
 0x336   :  { %16569 = vmatprep.subr.bf16.mxu0 %v17664_v63  ;;  %16617 = vmatprep.subr.bf16.mxu1 %v17664_v63 }
 0x338   :  { %14932 = vmatmul.mubr.f32.vlgmr.msra.gmra.mrb[10].mxu0 %v18096_v60  ;;  %14965 = vmatmul.mubr.f32.vlgmr.msra.gmra.mrb[26].mxu1 %v18093_v57 }
 0x339   :  { %16571 = vmatpush3.bf16.msra.mxu0 %v18133_v38  ;;  %14953 = vmatprep.mubr.msk.f32.mxu0 %vm17665_vm2, %v17666_v24 }
 0x33a   :  { %16572 = vmatprep.subr.bf16.mxu0 %v17664_v63  ;;  %16619 = vmatpush3.bf16.msra.mxu1 %v17985_v35 }
 0x33b   :  { %16620 = vmatprep.subr.bf16.mxu1 %v17664_v63  ;;  %15041 = vmatprep.mubr.msk.f32.mxu1 %vm17665_vm2, %v17666_v24 }
 0x33d   :  { %16574 = vmatpush3.bf16.msra.mxu0 %v18144_v43 }
 0x33e   :  { %16581 = vmatprep.subr.bf16.mxu0 %v17664_v63  ;;  %16622 = vmatpush3.bf16.msra.mxu1 %v17990_v41 }
 0x33f   :  { %16623 = vmatprep.subr.bf16.mxu1 %v17664_v63 }
 0x340   :  { %14954 = vmatmul.mubr.f32.vlgmr.msra.gmra.mrb[12].mxu0 %v18093_v57 }
 0x341   :  { %16583 = vmatpush3.bf16.msra.mxu0 %v17866_v8  ;;  %14975 = vmatprep.mubr.msk.f32.mxu0 %vm17665_vm2, %v17666_v24 }
 0x342   :  { %16584 = vmatprep.subr.bf16.mxu0 %v17664_v63 }
 0x345   :  { %16586 = vmatpush3.bf16.msra.mxu0 %v17871_v12 }
 0x346   :  { %16587 = vmatprep.subr.bf16.mxu0 %v17664_v63 }
 0x348   :  { %14976 = vmatmul.mubr.f32.vlgmr.msra.gmra.mrb[14].mxu0 %v1926_v26 }
 0x349   :  { %16589 = vmatpush3.bf16.msra.mxu0 %v17891_v25  ;;  %14986 = vmatprep.mubr.msk.f32.mxu0 %vm17665_vm2, %v17666_v24 }
 0x34a   :  { %16590 = vmatprep.subr.bf16.mxu0 %v17664_v63 }
 0x34d   :  { %16592 = vmatpush3.bf16.msra.mxu0 %v17895_v28 }
 0x34e   :  { %16593 = vmatprep.subr.bf16.mxu0 %v17664_v63 }
 0x350   :  { %14987 = vmatmul.mubr.f32.vlgmr.msra.gmra.mrb[14].mxu0 %v18093_v57 }
 0x351   :  { %16595 = vmatpush3.bf16.msra.mxu0 %v17901_v29  ;;  %14997 = vmatprep.mubr.msk.f32.mxu0 %vm17665_vm2, %v17666_v24 }
 0x352   :  { %16596 = vmatprep.subr.bf16.mxu0 %v17664_v63 }
 0x355   :  { %16598 = vmatpush3.bf16.msra.mxu0 %v17906_v30 }
 0x356   :  { %16599 = vmatprep.subr.bf16.mxu0 %v17664_v63 }
 0x358   :  { %14998 = vmatmul.mubr.f32.vlgmr.msra.gmra.mrb[14].mxu0 %v18096_v60  ;;  %v18208_v60 = vld [vmem:[%s19400_s6] ss:$0 sm:$0xff] }
 0x359   :  { %16601 = vmatpush3.bf16.msra.mxu0 %v17866_v8  ;;  %15008 = vmatprep.mubr.msk.f32.mxu0 %vm17665_vm2, %v17666_v24 }
 0x35a   :  { %16602 = vmatprep.subr.bf16.mxu0 %v17664_v63 }
 0x35d   :  { %16604 = vmatpush3.bf16.msra.mxu0 %v17871_v12 }
 0x35e   :  { %16605 = vmatprep.subr.bf16.mxu0 %v17664_v63 }
 0x360   :  { %15009 = vmatmul.mubr.f32.vlgmr.msra.gmra.mrb[14].mxu0 %v18104_v61 }
 0x361   :  { %16607 = vmatpush3.bf16.msra.mxu0 %v17919_v31  ;;  %15019 = vmatprep.mubr.msk.f32.mxu0 %vm17665_vm2, %v17666_v24 }
 0x362   :  { %16608 = vmatprep.subr.bf16.mxu0 %v17664_v63 }
 0x365   :  { %16610 = vmatpush3.bf16.msra.mxu0 %v17924_v32 }
 0x366   :  { %16611 = vmatprep.subr.bf16.mxu0 %v17664_v63 }
 0x368   :  { %15020 = vmatmul.mubr.f32.vlgmr.msra.gmra.mrb[14].mxu0 %v18093_v57 }
 0x369   :  { %16613 = vmatpush3.bf16.msra.mxu0 %v17866_v8  ;;  %15030 = vmatprep.mubr.msk.f32.mxu0 %vm17665_vm2, %v17666_v24 }
 0x36a   :  { %16614 = vmatprep.subr.bf16.mxu0 %v17664_v63 }
 0x36d   :  { %16616 = vmatpush3.bf16.msra.mxu0 %v17871_v12 }
 0x36e   :  { %16653 = vmatprep.subr.bf16.mxu0 %v17664_v63 }
 0x370   :  { %15031 = vmatmul.mubr.f32.vlgmr.msra.gmra.mrb[14].mxu0 %v18093_v57 }
 0x371   :  { %16655 = vmatpush3.bf16.msra.mxu0 %v17987_v40  ;;  %15107 = vmatprep.mubr.msk.f32.mxu0 %vm17665_vm2, %v17666_v24 }
 0x372   :  { %16656 = vmatprep.subr.bf16.mxu0 %v17664_v63 }
 0x375   :  { %16658 = vmatpush3.bf16.msra.mxu0 %v18007_v4 }
 0x376   :  { %16665 = vmatprep.subr.bf16.mxu0 %v17664_v63 }
 0x3fb   :  { %v2019_v17 = vpop.f32.mrb[22].mxu1 }
 0x3fc   :  { %v14922_v18 = vpop.f32.mrb[23].mxu1 }
 0x403   :  { %v2176_v19 = vpop.f32.mrb[24].mxu1  ;;  %v1928_v22 = vpop.f32.mrb[8].mxu0 }
 0x404   :  { %v1929_v23 = vadd.f32 %v1928_v22, %v1845_v13  ;;  %v14944_v44 = vpop.f32.mrb[25].mxu1  ;;  %v14911_v45 = vpop.f32.mrb[9].mxu0 }
 0x406   :  { %v2020_v46 = vadd.f32 %v2019_v17, %v1929_v23 }
 0x40b   :  { %v2099_v47 = vpop.f32.mrb[10].mxu0  ;;  %v2334_v48 = vpop.f32.mrb[26].mxu1 }
 0x40c   :  { %v2100_v49 = vadd.f32 %v2099_v47, %v2020_v46  ;;  %v14933_v52 = vpop.f32.mrb[11].mxu0  ;;  %v14966_v53 = vpop.f32.mrb[27].mxu1 }
 0x40e   :  { %v2177_v54 = vadd.f32 %v2176_v19, %v2100_v49 }
 0x413   :  { %v2259_v55 = vpop.f32.mrb[12].mxu0 }
 0x414   :  { %v2260_v56 = vadd.f32 %v2259_v55, %v2177_v54  ;;  %v14955_v57 = vpop.f32.mrb[13].mxu0 }
 0x416   :  { %v2335_v9 = vadd.f32 %v2334_v48, %v2260_v56 }
 0x418   :  { %v2338_v61 = vadd.f32 %v18208_v60, %v2335_v9 }
 0x41a   :  { %17578 = vtanh.f32 %v2338_v61 }
 0x424   :  { %v17579_v62 = vpop.eup %17578 }
 0x425   :  { %2344 = vrot.lane.b32.xlu0 %v17579_v62, %s17667_s3  ;;  %v2340_v34 = vmul.f32 0.5, %v17579_v62 }
 0x427   :  { %v2341_v37 = vadd.f32 0.5, %v2340_v34 }
 0x429   :  { %v2342_v22 = vmul.f32 0.0, %v2341_v37 }
 0x443   :  { %v2847_v0 = vpop.f32.mrb[14].mxu0 }
 0x444   :  { %v2851_v20 = vadd.f32 %v17944_v42, %v2847_v0  ;;  %v15032_v26 = vpop.f32.mrb[15].mxu0 }
 0x446   :  { %17580 = vtanh.f32 %v2851_v20 }
 0x450   :  { %v17581_v33 = vpop.eup %17580 }
 0x451   :  { %2857 = vrot.lane.b32.xlu1 %v17581_v33, %s17667_s3  ;;  %v2853_v14 = vmul.f32 0.5, %v17581_v33 }
 0x453   :  { %v2854_v17 = vadd.f32 0.5, %v2853_v14 }
 0x455   :  { %v2855_v45 = vmul.f32 %v2854_v17, %v17964_v16 }
 0x497   :  { %v2345_v10 = vpop.permute.xlu0 %2344 }
 0x498   :  { %v2347_v13 = vmul.f32 %v2345_v10, %v2341_v37 }
 0x49a   :  { %2349 = vrot.lane.b32.xlu0 %v2347_v13, %s17667_s3 }
 0x4c3   :  { %v2858_v18 = vpop.permute.xlu1 %2857 }
 0x4c4   :  { %v2860_v19 = vmul.f32 %v2858_v18, %v2854_v17 }
 0x4c6   :  { %2862 = vrot.lane.b32.xlu1 %v2860_v19, %s17667_s3 }
 0x50c   :  { %v2350_v23 = vpop.permute.xlu0 %2349 }
 0x50d   :  { %v18216_v42 = vadd.f32 %v2350_v23, %v2342_v22 }
 0x50f   :  { %17582 = vtanh.f32 %v18216_v42 }
 0x519   :  { %v17583_v44 = vpop.eup %17582 }
 0x51a   :  { %2355 = vrot.lane.b32.xlu0 %v17583_v44, %s17667_s3 }
 0x538   :  { %v2863_v46 = vpop.permute.xlu1 %2862 }
 0x539   :  { %v18221_v47 = vadd.f32 %v2863_v46, %v2855_v45 }
 0x53b   :  { %17584 = vtanh.f32 %v18221_v47 }
 0x545   :  { %v17585_v48 = vpop.eup %17584 }
 0x546   :  { %2868 = vrot.lane.b32.xlu1 %v17585_v48, %s17667_s3 }
 0x58c   :  { %v2356_v49 = vpop.permute.xlu0 %2355 }
 0x58d   :  { %v2358_v52 = vmul.f32 %v2356_v49, %v2341_v37 }
 0x58f   :  { %2360 = vrot.lane.b32.xlu0 %v2358_v52, %s17668_s4 }
 0x5b8   :  { %v2869_v53 = vpop.permute.xlu1 %2868 }
 0x5b9   :  { %v2871_v54 = vmul.f32 %v2869_v53, %v2854_v17 }
 0x5bb   :  { %3360 = vrot.lane.b32.xlu1 %v2871_v54, %s17668_s4 }
 0x601   :  { %v2361_v55 = vpop.permute.xlu0 %2360 }
 0x602   :  { %2363 = vst.msk [vmem:[#allocation3] sm:$0xff] %vm853_vm3, %v2361_v55  ;;  %v2872_v16 = vsel %vm853_vm3, %v2361_v55, 0 }
 0x603   :  { %v2943_v56 = vand.u32 4294901760, %v2872_v16 }
 0x605   :  { %v2944_v57 = vsub.f32 %v2872_v16, %v2943_v56 }
 0x607   :  { %v2945_v9 = vand.u32 4294901760, %v2944_v57 }
 0x609   :  { %v2946_v61 = vsub.f32 %v2944_v57, %v2945_v9 }
 0x60b   :  { %v2947_v62 = vand.u32 4294901760, %v2946_v61 }
 0x60d   :  { %15042 = vmatmul.mubr.f32.vlgmr.msra.gmra.mrb[28].mxu1 %v2947_v62 }
 0x60e   :  { %16625 = vmatpush3.bf16.msra.mxu1 %v18004_v3  ;;  %15052 = vmatprep.mubr.msk.f32.mxu1 %vm17665_vm2, %v17666_v24 }
 0x60f   :  { %16626 = vmatprep.subr.bf16.mxu1 %v17664_v63 }
 0x612   :  { %16628 = vmatpush3.bf16.msra.mxu1 %v18010_v5 }
 0x613   :  { %16629 = vmatprep.subr.bf16.mxu1 %v17664_v63 }
 0x615   :  { %15053 = vmatmul.mubr.f32.vlgmr.msra.gmra.mrb[30].mxu1 %v2943_v56 }
 0x616   :  { %16631 = vmatpush3.bf16.msra.mxu1 %v18018_v6  ;;  %15063 = vmatprep.mubr.msk.f32.mxu1 %vm17665_vm2, %v17666_v24 }
 0x617   :  { %16632 = vmatprep.subr.bf16.mxu1 %v17664_v63 }
 0x61a   :  { %16634 = vmatpush3.bf16.msra.mxu1 %v18023_v7 }
 0x61b   :  { %16635 = vmatprep.subr.bf16.mxu1 %v17664_v63 }
 0x61d   :  { %15064 = vmatmul.mubr.f32.vlgmr.msra.gmra.mrb[32].mxu1 %v2944_v57 }
 0x61e   :  { %16637 = vmatpush3.bf16.msra.mxu1 %v17985_v35  ;;  %15074 = vmatprep.mubr.msk.f32.mxu1 %vm17665_vm2, %v17666_v24 }
 0x61f   :  { %16638 = vmatprep.subr.bf16.mxu1 %v17664_v63 }
 0x622   :  { %16640 = vmatpush3.bf16.msra.mxu1 %v17990_v41 }
 0x623   :  { %16641 = vmatprep.subr.bf16.mxu1 %v17664_v63 }
 0x625   :  { %15075 = vmatmul.mubr.f32.vlgmr.msra.gmra.mrb[34].mxu1 %v2945_v9 }
 0x626   :  { %16643 = vmatpush3.bf16.msra.mxu1 %v18038_v11  ;;  %15085 = vmatprep.mubr.msk.f32.mxu1 %vm17665_vm2, %v17666_v24 }
 0x627   :  { %16644 = vmatprep.subr.bf16.mxu1 %v17664_v63 }
 0x62a   :  { %16646 = vmatpush3.bf16.msra.mxu1 %v18046_v15 }
 0x62b   :  { %16647 = vmatprep.subr.bf16.mxu1 %v17664_v63 }
 0x62d   :  { %15086 = vmatmul.mubr.f32.vlgmr.msra.gmra.mrb[36].mxu1 %v2943_v56  ;;  %v3361_v0 = vpop.permute.xlu1 %3360 }
 0x62e   :  { %v3362_v20 = vsel %vm853_vm3, %v3361_v0, 0  ;;  %16649 = vmatpush3.bf16.msra.mxu1 %v17985_v35  ;;  %15096 = vmatprep.mubr.msk.f32.mxu1 %vm17665_vm2, %v17666_v24 }
 0x62f   :  { %v18257_v26 = vand.u32 4294901760, %v3362_v20  ;;  %16650 = vmatprep.subr.bf16.mxu1 %v17664_v63 }
 0x631   :  { %v3434_v33 = vsub.f32 %v3362_v20, %v18257_v26 }
 0x632   :  { %16652 = vmatpush3.bf16.msra.mxu1 %v17990_v41 }
 0x633   :  { %v18262_v34 = vand.u32 4294901760, %v3434_v33  ;;  %16659 = vmatprep.subr.bf16.mxu1 %v17664_v63 }
 0x635   :  { %15097 = vmatmul.mubr.f32.vlgmr.msra.gmra.mrb[38].mxu1 %v2943_v56  ;;  %v3436_v37 = vsub.f32 %v3434_v33, %v18262_v34 }
 0x636   :  { %16661 = vmatpush3.bf16.msra.mxu1 %v18078_v36  ;;  %15118 = vmatprep.mubr.msk.f32.mxu1 %vm17665_vm2, %v17666_v24 }
 0x637   :  { %16662 = vmatprep.subr.bf16.mxu1 %v17664_v63  ;;  %v3437_v10 = vand.u32 4294901760, %v3436_v37 }
 0x639   :  { %15108 = vmatmul.mubr.f32.vlgmr.msra.gmra.mrb[16].mxu0 %v3437_v10 }
 0x63a   :  { %16664 = vmatpush3.bf16.msra.mxu1 %v18083_v39  ;;  %16667 = vmatpush3.bf16.msra.mxu0 %v18111_v21 }
 0x63b   :  { %16668 = vmatprep.subr.bf16.mxu0 %v17664_v63  ;;  %16671 = vmatprep.subr.bf16.mxu1 %v17664_v63 }
 0x63c   :  { %15129 = vmatprep.mubr.msk.f32.mxu0 %vm17665_vm2, %v17666_v24 }
 0x63d   :  { %15119 = vmatmul.mubr.f32.vlgmr.msra.gmra.mrb[40].mxu1 %v18257_v26 }
 0x63e   :  { %16670 = vmatpush3.bf16.msra.mxu0 %v18119_v27  ;;  %16673 = vmatpush3.bf16.msra.mxu1 %v17987_v40 }
 0x63f   :  { %16674 = vmatprep.subr.bf16.mxu1 %v17664_v63  ;;  %16677 = vmatprep.subr.bf16.mxu0 %v17664_v63 }
 0x640   :  { %15140 = vmatprep.mubr.msk.f32.mxu1 %vm17665_vm2, %v17666_v24 }
 0x641   :  { %15130 = vmatmul.mubr.f32.vlgmr.msra.gmra.mrb[18].mxu0 %v3434_v33 }
 0x642   :  { %16676 = vmatpush3.bf16.msra.mxu1 %v18007_v4  ;;  %16679 = vmatpush3.bf16.msra.mxu0 %v18133_v38 }
 0x643   :  { %16680 = vmatprep.subr.bf16.mxu0 %v17664_v63  ;;  %16683 = vmatprep.subr.bf16.mxu1 %v17664_v63 }
 0x644   :  { %15151 = vmatprep.mubr.msk.f32.mxu0 %vm17665_vm2, %v17666_v24 }
 0x645   :  { %15141 = vmatmul.mubr.f32.vlgmr.msra.gmra.mrb[42].mxu1 %v18262_v34 }
 0x646   :  { %16682 = vmatpush3.bf16.msra.mxu0 %v18144_v43  ;;  %16685 = vmatpush3.bf16.msra.mxu1 %v17987_v40 }
 0x647   :  { %16686 = vmatprep.subr.bf16.mxu1 %v17664_v63  ;;  %16689 = vmatprep.subr.bf16.mxu0 %v17664_v63 }
 0x648   :  { %15162 = vmatprep.mubr.msk.f32.mxu1 %vm17665_vm2, %v17666_v24 }
 0x649   :  { %15152 = vmatmul.mubr.f32.vlgmr.msra.gmra.mrb[20].mxu0 %v18257_v26 }
 0x64a   :  { %16688 = vmatpush3.bf16.msra.mxu1 %v18007_v4  ;;  %16691 = vmatpush3.bf16.msra.mxu0 %v17866_v8 }
 0x64b   :  { %16692 = vmatprep.subr.bf16.mxu0 %v17664_v63  ;;  %15173 = vmatprep.mubr.msk.f32.mxu0 %vm17665_vm2, %v17666_v24 }
 0x64c   :  { %16725 = vmatprep.subr.bf16.mxu1 %v17664_v63 }
 0x64d   :  { %15163 = vmatmul.mubr.f32.vlgmr.msra.gmra.mrb[44].mxu1 %v18257_v26 }
 0x64e   :  { %16694 = vmatpush3.bf16.msra.mxu0 %v17871_v12  ;;  %16727 = vmatpush3.bf16.msra.mxu1 %v17985_v35 }
 0x64f   :  { %16695 = vmatprep.subr.bf16.mxu0 %v17664_v63  ;;  %16728 = vmatprep.subr.bf16.mxu1 %v17664_v63 }
 0x650   :  { %15239 = vmatprep.mubr.msk.f32.mxu1 %vm17665_vm2, %v17666_v24 }
 0x651   :  { %15174 = vmatmul.mubr.f32.vlgmr.msra.gmra.mrb[22].mxu0 %v3437_v10 }
 0x652   :  { %16697 = vmatpush3.bf16.msra.mxu0 %v17891_v25  ;;  %15184 = vmatprep.mubr.msk.f32.mxu0 %vm17665_vm2, %v17666_v24 }
 0x653   :  { %16698 = vmatprep.subr.bf16.mxu0 %v17664_v63  ;;  %16730 = vmatpush3.bf16.msra.mxu1 %v17990_v41 }
 0x654   :  { %16731 = vmatprep.subr.bf16.mxu1 %v17664_v63 }
 0x656   :  { %16700 = vmatpush3.bf16.msra.mxu0 %v17895_v28 }
 0x657   :  { %16701 = vmatprep.subr.bf16.mxu0 %v17664_v63 }
 0x659   :  { %15185 = vmatmul.mubr.f32.vlgmr.msra.gmra.mrb[22].mxu0 %v18257_v26 }
 0x65a   :  { %16703 = vmatpush3.bf16.msra.mxu0 %v17901_v29  ;;  %15195 = vmatprep.mubr.msk.f32.mxu0 %vm17665_vm2, %v17666_v24 }
 0x65b   :  { %16704 = vmatprep.subr.bf16.mxu0 %v17664_v63 }
 0x65e   :  { %16706 = vmatpush3.bf16.msra.mxu0 %v17906_v30 }
 0x65f   :  { %16707 = vmatprep.subr.bf16.mxu0 %v17664_v63 }
 0x661   :  { %15196 = vmatmul.mubr.f32.vlgmr.msra.gmra.mrb[22].mxu0 %v3434_v33 }
 0x662   :  { %16709 = vmatpush3.bf16.msra.mxu0 %v17866_v8  ;;  %15206 = vmatprep.mubr.msk.f32.mxu0 %vm17665_vm2, %v17666_v24 }
 0x663   :  { %16710 = vmatprep.subr.bf16.mxu0 %v17664_v63 }
 0x666   :  { %16712 = vmatpush3.bf16.msra.mxu0 %v17871_v12 }
 0x667   :  { %16713 = vmatprep.subr.bf16.mxu0 %v17664_v63 }
 0x669   :  { %15207 = vmatmul.mubr.f32.vlgmr.msra.gmra.mrb[22].mxu0 %v18262_v34 }
 0x66a   :  { %16715 = vmatpush3.bf16.msra.mxu0 %v17919_v31  ;;  %15217 = vmatprep.mubr.msk.f32.mxu0 %vm17665_vm2, %v17666_v24 }
 0x66b   :  { %16716 = vmatprep.subr.bf16.mxu0 %v17664_v63 }
 0x66e   :  { %16718 = vmatpush3.bf16.msra.mxu0 %v17924_v32 }
 0x66f   :  { %16719 = vmatprep.subr.bf16.mxu0 %v17664_v63 }
 0x671   :  { %15218 = vmatmul.mubr.f32.vlgmr.msra.gmra.mrb[22].mxu0 %v18257_v26 }
 0x672   :  { %16721 = vmatpush3.bf16.msra.mxu0 %v17866_v8  ;;  %15228 = vmatprep.mubr.msk.f32.mxu0 %vm17665_vm2, %v17666_v24 }
 0x673   :  { %16722 = vmatprep.subr.bf16.mxu0 %v17664_v63 }
 0x676   :  { %16724 = vmatpush3.bf16.msra.mxu0 %v17871_v12 }
 0x677   :  { %16761 = vmatprep.subr.bf16.mxu0 %v17664_v63 }
 0x679   :  { %15229 = vmatmul.mubr.f32.vlgmr.msra.gmra.mrb[22].mxu0 %v18257_v26 }
 0x67a   :  { %16763 = vmatpush3.bf16.msra.mxu0 %v17987_v40  ;;  %15305 = vmatprep.mubr.msk.f32.mxu0 %vm17665_vm2, %v17666_v24 }
 0x67b   :  { %16764 = vmatprep.subr.bf16.mxu0 %v17664_v63 }
 0x67e   :  { %16766 = vmatpush3.bf16.msra.mxu0 %v18007_v4 }
 0x67f   :  { %16773 = vmatprep.subr.bf16.mxu0 %v17664_v63 }
 0x6e0   :  { %v2949_v13 = vpop.f32.mrb[28].mxu1 }
 0x6e1   :  { %v15043_v14 = vpop.f32.mrb[29].mxu1 }
 0x6e8   :  { %v3040_v17 = vpop.f32.mrb[30].mxu1 }
 0x6e9   :  { %v3041_v18 = vadd.f32 %v3040_v17, %v2949_v13  ;;  %v15054_v19 = vpop.f32.mrb[31].mxu1 }
 0x6f0   :  { %v3120_v22 = vpop.f32.mrb[32].mxu1 }
 0x6f1   :  { %v3121_v23 = vadd.f32 %v3120_v22, %v3041_v18  ;;  %v15065_v44 = vpop.f32.mrb[33].mxu1 }
 0x6f8   :  { %v3197_v45 = vpop.f32.mrb[34].mxu1 }
 0x6f9   :  { %v3198_v46 = vadd.f32 %v3197_v45, %v3121_v23  ;;  %v15076_v48 = vpop.f32.mrb[35].mxu1 }
 0x700   :  { %v3280_v49 = vpop.f32.mrb[36].mxu1 }
 0x701   :  { %v3281_v52 = vadd.f32 %v3280_v49, %v3198_v46  ;;  %v15087_v53 = vpop.f32.mrb[37].mxu1 }
 0x708   :  { %v3355_v54 = vpop.f32.mrb[38].mxu1 }
 0x709   :  { %v3356_v55 = vadd.f32 %v3355_v54, %v3281_v52  ;;  %v15098_v16 = vpop.f32.mrb[39].mxu1 }
 0x70c   :  { %v3439_v56 = vpop.f32.mrb[16].mxu0 }
 0x70d   :  { %v3440_v57 = vadd.f32 %v3439_v56, %v3356_v55  ;;  %v15109_v9 = vpop.f32.mrb[17].mxu0 }
 0x710   :  { %v3530_v61 = vpop.f32.mrb[40].mxu1 }
 0x711   :  { %v3531_v62 = vadd.f32 %v3530_v61, %v3440_v57  ;;  %v15120_v0 = vpop.f32.mrb[41].mxu1 }
 0x714   :  { %v3610_v20 = vpop.f32.mrb[18].mxu0 }
 0x715   :  { %v3611_v26 = vadd.f32 %v3610_v20, %v3531_v62  ;;  %v15131_v33 = vpop.f32.mrb[19].mxu0 }
 0x718   :  { %v3687_v34 = vpop.f32.mrb[42].mxu1 }
 0x719   :  { %v3688_v37 = vadd.f32 %v3687_v34, %v3611_v26  ;;  %v15142_v10 = vpop.f32.mrb[43].mxu1 }
 0x71c   :  { %v3770_v13 = vpop.f32.mrb[20].mxu0 }
 0x71d   :  { %v3771_v14 = vadd.f32 %v3770_v13, %v3688_v37  ;;  %v15153_v17 = vpop.f32.mrb[21].mxu0 }
 0x720   :  { %v3845_v18 = vpop.f32.mrb[44].mxu1 }
 0x721   :  { %v3846_v19 = vadd.f32 %v3845_v18, %v3771_v14  ;;  %v15164_v22 = vpop.f32.mrb[45].mxu1 }
 0x723   :  { %v3849_v23 = vadd.f32 %v18208_v60, %v3846_v19 }
 0x725   :  { %17586 = vtanh.f32 %v3849_v23 }
 0x72f   :  { %v17587_v44 = vpop.eup %17586 }
 0x730   :  { %3855 = vrot.lane.b32.xlu0 %v17587_v44, %s17667_s3  ;;  %v3851_v52 = vmul.f32 0.5, %v17587_v44 }
 0x732   :  { %v3852_v53 = vadd.f32 0.5, %v3851_v52 }
 0x734   :  { %v3853_v61 = vmul.f32 %v3852_v53, %v18216_v42 }
 0x74c   :  { %v4359_v45 = vpop.f32.mrb[22].mxu0 }
 0x74d   :  { %v4363_v46 = vadd.f32 %v17948_v51, %v4359_v45  ;;  %v15230_v48 = vpop.f32.mrb[23].mxu0 }
 0x74f   :  { %17588 = vtanh.f32 %v4363_v46 }
 0x759   :  { %v17589_v49 = vpop.eup %17588 }
 0x75a   :  { %4369 = vrot.lane.b32.xlu1 %v17589_v49, %s17667_s3  ;;  %v4365_v16 = vmul.f32 0.5, %v17589_v49 }
 0x75c   :  { %v4366_v56 = vadd.f32 0.5, %v4365_v16 }
 0x75e   :  { %v4367_v20 = vmul.f32 %v4366_v56, %v18221_v47 }
 0x7a2   :  { %v3856_v54 = vpop.permute.xlu0 %3855 }
 0x7a3   :  { %v3858_v55 = vmul.f32 %v3856_v54, %v3852_v53 }
 0x7a5   :  { %3860 = vrot.lane.b32.xlu0 %v3858_v55, %s17667_s3 }
 0x7cc   :  { %v4370_v57 = vpop.permute.xlu1 %4369 }
 0x7cd   :  { %v4372_v9 = vmul.f32 %v4370_v57, %v4366_v56 }
 0x7cf   :  { %4374 = vrot.lane.b32.xlu1 %v4372_v9, %s17667_s3 }
 0x817   :  { %v3861_v51 = vpop.permute.xlu0 %3860 }
 0x818   :  { %v18359_v62 = vadd.f32 %v3861_v51, %v3853_v61 }
 0x81a   :  { %17590 = vtanh.f32 %v18359_v62 }
 0x824   :  { %v17591_v0 = vpop.eup %17590 }
 0x825   :  { %3866 = vrot.lane.b32.xlu0 %v17591_v0, %s17667_s3 }
 0x841   :  { %v4375_v26 = vpop.permute.xlu1 %4374 }
 0x842   :  { %v18364_v33 = vadd.f32 %v4375_v26, %v4367_v20 }
 0x844   :  { %17592 = vtanh.f32 %v18364_v33 }
 0x84e   :  { %v17593_v34 = vpop.eup %17592 }
 0x84f   :  { %4380 = vrot.lane.b32.xlu1 %v17593_v34, %s17667_s3 }
 0x897   :  { %v3867_v37 = vpop.permute.xlu0 %3866 }
 0x898   :  { %v3869_v42 = vmul.f32 %v3867_v37, %v3852_v53 }
 0x89a   :  { %3871 = vrot.lane.b32.xlu0 %v3869_v42, %s17668_s4 }
 0x8c1   :  { %v4381_v10 = vpop.permute.xlu1 %4380 }
 0x8c2   :  { %v4383_v13 = vmul.f32 %v4381_v10, %v4366_v56 }
 0x8c4   :  { %4872 = vrot.lane.b32.xlu1 %v4383_v13, %s17668_s4 }
 0x90c   :  { %v3872_v14 = vpop.permute.xlu0 %3871 }
 0x90d   :  { %3875 = vst.msk [vmem:[#allocation3 + $0x8] sm:$0xff] %vm853_vm3, %v3872_v14  ;;  %v4384_v47 = vsel %vm853_vm3, %v3872_v14, 0 }
 0x90e   :  { %v4455_v17 = vand.u32 4294901760, %v4384_v47 }
 0x910   :  { %v4456_v18 = vsub.f32 %v4384_v47, %v4455_v17 }
 0x912   :  { %v4457_v19 = vand.u32 4294901760, %v4456_v18 }
 0x914   :  { %v4458_v22 = vsub.f32 %v4456_v18, %v4457_v19 }
 0x916   :  { %v4459_v23 = vand.u32 4294901760, %v4458_v22 }
 0x918   :  { %15240 = vmatmul.mubr.f32.vlgmr.msra.gmra.mrb[46].mxu1 %v4459_v23 }
 0x919   :  { %16733 = vmatpush3.bf16.msra.mxu1 %v18004_v3  ;;  %15250 = vmatprep.mubr.msk.f32.mxu1 %vm17665_vm2, %v17666_v24 }
 0x91a   :  { %16734 = vmatprep.subr.bf16.mxu1 %v17664_v63 }
 0x91d   :  { %16736 = vmatpush3.bf16.msra.mxu1 %v18010_v5 }
 0x91e   :  { %16737 = vmatprep.subr.bf16.mxu1 %v17664_v63 }
 0x920   :  { %15251 = vmatmul.mubr.f32.vlgmr.msra.gmra.mrb[48].mxu1 %v4455_v17 }
 0x921   :  { %16739 = vmatpush3.bf16.msra.mxu1 %v18018_v6  ;;  %15261 = vmatprep.mubr.msk.f32.mxu1 %vm17665_vm2, %v17666_v24 }
 0x922   :  { %16740 = vmatprep.subr.bf16.mxu1 %v17664_v63 }
 0x925   :  { %16742 = vmatpush3.bf16.msra.mxu1 %v18023_v7 }
 0x926   :  { %16743 = vmatprep.subr.bf16.mxu1 %v17664_v63 }
 0x928   :  { %15262 = vmatmul.mubr.f32.vlgmr.msra.gmra.mrb[50].mxu1 %v4456_v18 }
 0x929   :  { %16745 = vmatpush3.bf16.msra.mxu1 %v17985_v35  ;;  %15272 = vmatprep.mubr.msk.f32.mxu1 %vm17665_vm2, %v17666_v24 }
 0x92a   :  { %16746 = vmatprep.subr.bf16.mxu1 %v17664_v63 }
 0x92d   :  { %16748 = vmatpush3.bf16.msra.mxu1 %v17990_v41 }
 0x92e   :  { %16749 = vmatprep.subr.bf16.mxu1 %v17664_v63 }
 0x930   :  { %15273 = vmatmul.mubr.f32.vlgmr.msra.gmra.mrb[52].mxu1 %v4457_v19 }
 0x931   :  { %16751 = vmatpush3.bf16.msra.mxu1 %v18038_v11  ;;  %15283 = vmatprep.mubr.msk.f32.mxu1 %vm17665_vm2, %v17666_v24 }
 0x932   :  { %16752 = vmatprep.subr.bf16.mxu1 %v17664_v63 }
 0x935   :  { %16754 = vmatpush3.bf16.msra.mxu1 %v18046_v15 }
 0x936   :  { %v4873_v44 = vpop.permute.xlu1 %4872  ;;  %16755 = vmatprep.subr.bf16.mxu1 %v17664_v63 }
 0x937   :  { %v4874_v45 = vsel %vm853_vm3, %v4873_v44, 0 }
 0x938   :  { %v18397_v46 = vand.u32 4294901760, %v4874_v45  ;;  %15284 = vmatmul.mubr.f32.vlgmr.msra.gmra.mrb[54].mxu1 %v4455_v17 }
 0x939   :  { %16757 = vmatpush3.bf16.msra.mxu1 %v17985_v35  ;;  %15294 = vmatprep.mubr.msk.f32.mxu1 %vm17665_vm2, %v17666_v24 }
 0x93a   :  { %v4946_v48 = vsub.f32 %v4874_v45, %v18397_v46  ;;  %16758 = vmatprep.subr.bf16.mxu1 %v17664_v63 }
 0x93c   :  { %v18404_v49 = vand.u32 4294901760, %v4946_v48 }
 0x93d   :  { %16760 = vmatpush3.bf16.msra.mxu1 %v17990_v41 }
 0x93e   :  { %16767 = vmatprep.subr.bf16.mxu1 %v17664_v63  ;;  %v4948_v52 = vsub.f32 %v4946_v48, %v18404_v49 }
 0x940   :  { %15295 = vmatmul.mubr.f32.vlgmr.msra.gmra.mrb[56].mxu1 %v4455_v17  ;;  %v4949_v53 = vand.u32 4294901760, %v4948_v52 }
 0x941   :  { %16769 = vmatpush3.bf16.msra.mxu1 %v18078_v36  ;;  %15316 = vmatprep.mubr.msk.f32.mxu1 %vm17665_vm2, %v17666_v24 }
 0x942   :  { %15306 = vmatmul.mubr.f32.vlgmr.msra.gmra.mrb[24].mxu0 %v4949_v53  ;;  %16770 = vmatprep.subr.bf16.mxu1 %v17664_v63 }
 0x943   :  { %16775 = vmatpush3.bf16.msra.mxu0 %v18111_v21  ;;  %15327 = vmatprep.mubr.msk.f32.mxu0 %vm17665_vm2, %v17666_v24 }
 0x944   :  { %16776 = vmatprep.subr.bf16.mxu0 %v17664_v63 }
 0x945   :  { %16772 = vmatpush3.bf16.msra.mxu1 %v18083_v39 }
 0x946   :  { %16779 = vmatprep.subr.bf16.mxu1 %v17664_v63 }
 0x947   :  { %16778 = vmatpush3.bf16.msra.mxu0 %v18119_v27 }
 0x948   :  { %15317 = vmatmul.mubr.f32.vlgmr.msra.gmra.mrb[58].mxu1 %v18397_v46  ;;  %16785 = vmatprep.subr.bf16.mxu0 %v17664_v63 }
 0x949   :  { %16781 = vmatpush3.bf16.msra.mxu1 %v17987_v40  ;;  %15338 = vmatprep.mubr.msk.f32.mxu1 %vm17665_vm2, %v17666_v24 }
 0x94a   :  { %15328 = vmatmul.mubr.f32.vlgmr.msra.gmra.mrb[26].mxu0 %v4946_v48  ;;  %16782 = vmatprep.subr.bf16.mxu1 %v17664_v63 }
 0x94b   :  { %16787 = vmatpush3.bf16.msra.mxu0 %v18133_v38  ;;  %15349 = vmatprep.mubr.msk.f32.mxu0 %vm17665_vm2, %v17666_v24 }
 0x94c   :  { %16788 = vmatprep.subr.bf16.mxu0 %v17664_v63 }
 0x94d   :  { %16784 = vmatpush3.bf16.msra.mxu1 %v18007_v4 }
 0x94e   :  { %16791 = vmatprep.subr.bf16.mxu1 %v17664_v63 }
 0x94f   :  { %16790 = vmatpush3.bf16.msra.mxu0 %v18144_v43 }
 0x950   :  { %15339 = vmatmul.mubr.f32.vlgmr.msra.gmra.mrb[60].mxu1 %v18404_v49  ;;  %16797 = vmatprep.subr.bf16.mxu0 %v17664_v63 }
 0x951   :  { %16793 = vmatpush3.bf16.msra.mxu1 %v17987_v40  ;;  %15360 = vmatprep.mubr.msk.f32.mxu1 %vm17665_vm2, %v17666_v24 }
 0x952   :  { %15350 = vmatmul.mubr.f32.vlgmr.msra.gmra.mrb[28].mxu0 %v18397_v46  ;;  %16794 = vmatprep.subr.bf16.mxu1 %v17664_v63 }
 0x953   :  { %16799 = vmatpush3.bf16.msra.mxu0 %v17866_v8  ;;  %15371 = vmatprep.mubr.msk.f32.mxu0 %vm17665_vm2, %v17666_v24 }
 0x954   :  { %16800 = vmatprep.subr.bf16.mxu0 %v17664_v63 }
 0x955   :  { %16796 = vmatpush3.bf16.msra.mxu1 %v18007_v4 }
 0x956   :  { %16833 = vmatprep.subr.bf16.mxu1 %v17664_v63 }
 0x957   :  { %16802 = vmatpush3.bf16.msra.mxu0 %v17871_v12 }
 0x958   :  { %15361 = vmatmul.mubr.f32.vlgmr.msra.gmra.mrb[62].mxu1 %v18397_v46  ;;  %16803 = vmatprep.subr.bf16.mxu0 %v17664_v63 }
 0x959   :  { %16835 = vmatpush3.bf16.msra.mxu1 %v17985_v35  ;;  %15437 = vmatprep.mubr.msk.f32.mxu1 %vm17665_vm2, %v17666_v24 }
 0x95a   :  { %15372 = vmatmul.mubr.f32.vlgmr.msra.gmra.mrb[30].mxu0 %v4949_v53  ;;  %16836 = vmatprep.subr.bf16.mxu1 %v17664_v63 }
 0x95b   :  { %16805 = vmatpush3.bf16.msra.mxu0 %v17891_v25  ;;  %15382 = vmatprep.mubr.msk.f32.mxu0 %vm17665_vm2, %v17666_v24 }
 0x95c   :  { %16806 = vmatprep.subr.bf16.mxu0 %v17664_v63 }
 0x95d   :  { %16838 = vmatpush3.bf16.msra.mxu1 %v17990_v41 }
 0x95e   :  { %16839 = vmatprep.subr.bf16.mxu1 %v17664_v63 }
 0x95f   :  { %16808 = vmatpush3.bf16.msra.mxu0 %v17895_v28 }
 0x960   :  { %16809 = vmatprep.subr.bf16.mxu0 %v17664_v63 }
 0x962   :  { %15383 = vmatmul.mubr.f32.vlgmr.msra.gmra.mrb[30].mxu0 %v18397_v46 }
 0x963   :  { %16811 = vmatpush3.bf16.msra.mxu0 %v17901_v29  ;;  %15393 = vmatprep.mubr.msk.f32.mxu0 %vm17665_vm2, %v17666_v24 }
 0x964   :  { %16812 = vmatprep.subr.bf16.mxu0 %v17664_v63 }
 0x967   :  { %16814 = vmatpush3.bf16.msra.mxu0 %v17906_v30 }
 0x968   :  { %16815 = vmatprep.subr.bf16.mxu0 %v17664_v63 }
 0x96a   :  { %15394 = vmatmul.mubr.f32.vlgmr.msra.gmra.mrb[30].mxu0 %v4946_v48 }
 0x96b   :  { %16817 = vmatpush3.bf16.msra.mxu0 %v17866_v8  ;;  %15404 = vmatprep.mubr.msk.f32.mxu0 %vm17665_vm2, %v17666_v24 }
 0x96c   :  { %16818 = vmatprep.subr.bf16.mxu0 %v17664_v63 }
 0x96f   :  { %16820 = vmatpush3.bf16.msra.mxu0 %v17871_v12 }
 0x970   :  { %16821 = vmatprep.subr.bf16.mxu0 %v17664_v63 }
 0x972   :  { %15405 = vmatmul.mubr.f32.vlgmr.msra.gmra.mrb[30].mxu0 %v18404_v49 }
 0x973   :  { %16823 = vmatpush3.bf16.msra.mxu0 %v17919_v31  ;;  %15415 = vmatprep.mubr.msk.f32.mxu0 %vm17665_vm2, %v17666_v24 }
 0x974   :  { %16824 = vmatprep.subr.bf16.mxu0 %v17664_v63 }
 0x977   :  { %16826 = vmatpush3.bf16.msra.mxu0 %v17924_v32 }
 0x978   :  { %16827 = vmatprep.subr.bf16.mxu0 %v17664_v63 }
 0x97a   :  { %15416 = vmatmul.mubr.f32.vlgmr.msra.gmra.mrb[30].mxu0 %v18397_v46 }
 0x97b   :  { %16829 = vmatpush3.bf16.msra.mxu0 %v17866_v8  ;;  %15426 = vmatprep.mubr.msk.f32.mxu0 %vm17665_vm2, %v17666_v24 }
 0x97c   :  { %16830 = vmatprep.subr.bf16.mxu0 %v17664_v63 }
 0x97f   :  { %16832 = vmatpush3.bf16.msra.mxu0 %v17871_v12 }
 0x980   :  { %16869 = vmatprep.subr.bf16.mxu0 %v17664_v63 }
 0x982   :  { %15427 = vmatmul.mubr.f32.vlgmr.msra.gmra.mrb[30].mxu0 %v18397_v46 }
 0x983   :  { %16871 = vmatpush3.bf16.msra.mxu0 %v17987_v40  ;;  %15503 = vmatprep.mubr.msk.f32.mxu0 %vm17665_vm2, %v17666_v24 }
 0x984   :  { %16872 = vmatprep.subr.bf16.mxu0 %v17664_v63 }
 0x987   :  { %16874 = vmatpush3.bf16.msra.mxu0 %v18007_v4 }
 0x988   :  { %16881 = vmatprep.subr.bf16.mxu0 %v17664_v63 }
 0x9eb   :  { %v4461_v54 = vpop.f32.mrb[46].mxu1 }
 0x9ec   :  { %v15241_v55 = vpop.f32.mrb[47].mxu1 }
 0x9f3   :  { %v4552_v16 = vpop.f32.mrb[48].mxu1 }
 0x9f4   :  { %v4553_v56 = vadd.f32 %v4552_v16, %v4461_v54  ;;  %v15252_v57 = vpop.f32.mrb[49].mxu1 }
 0x9fb   :  { %v4632_v9 = vpop.f32.mrb[50].mxu1 }
 0x9fc   :  { %v4633_v61 = vadd.f32 %v4632_v9, %v4553_v56  ;;  %v15263_v51 = vpop.f32.mrb[51].mxu1 }
 0xa03   :  { %v4709_v0 = vpop.f32.mrb[52].mxu1 }
 0xa04   :  { %v4710_v20 = vadd.f32 %v4709_v0, %v4633_v61  ;;  %v15274_v26 = vpop.f32.mrb[53].mxu1 }
 0xa0b   :  { %v4792_v34 = vpop.f32.mrb[54].mxu1 }
 0xa0c   :  { %v4793_v37 = vadd.f32 %v4792_v34, %v4710_v20  ;;  %v15285_v42 = vpop.f32.mrb[55].mxu1 }
 0xa13   :  { %v4867_v10 = vpop.f32.mrb[56].mxu1 }
 0xa14   :  { %v4868_v13 = vadd.f32 %v4867_v10, %v4793_v37  ;;  %v15296_v14 = vpop.f32.mrb[57].mxu1 }
 0xa15   :  { %v4951_v47 = vpop.f32.mrb[24].mxu0 }
 0xa16   :  { %v4952_v17 = vadd.f32 %v4951_v47, %v4868_v13  ;;  %v15307_v18 = vpop.f32.mrb[25].mxu0 }
 0xa1b   :  { %v5042_v19 = vpop.f32.mrb[58].mxu1 }
 0xa1c   :  { %v5043_v22 = vadd.f32 %v5042_v19, %v4952_v17  ;;  %v15318_v23 = vpop.f32.mrb[59].mxu1 }
 0xa1d   :  { %v5122_v44 = vpop.f32.mrb[26].mxu0 }
 0xa1e   :  { %v5123_v45 = vadd.f32 %v5122_v44, %v5043_v22  ;;  %v15329_v46 = vpop.f32.mrb[27].mxu0 }
 0xa23   :  { %v5199_v48 = vpop.f32.mrb[60].mxu1 }
 0xa24   :  { %v5200_v49 = vadd.f32 %v5199_v48, %v5123_v45  ;;  %v15340_v52 = vpop.f32.mrb[61].mxu1 }
 0xa25   :  { %v5282_v53 = vpop.f32.mrb[28].mxu0 }
 0xa26   :  { %v5283_v54 = vadd.f32 %v5282_v53, %v5200_v49  ;;  %v15351_v55 = vpop.f32.mrb[29].mxu0 }
 0xa2b   :  { %v5357_v16 = vpop.f32.mrb[62].mxu1 }
 0xa2c   :  { %v5358_v56 = vadd.f32 %v5357_v16, %v5283_v54  ;;  %v15362_v57 = vpop.f32.mrb[63].mxu1 }
 0xa2e   :  { %v5361_v9 = vadd.f32 %v18208_v60, %v5358_v56 }
 0xa30   :  { %17594 = vtanh.f32 %v5361_v9 }
 0xa3a   :  { %v17595_v61 = vpop.eup %17594 }
 0xa3b   :  { %5367 = vrot.lane.b32.xlu0 %v17595_v61, %s17667_s3  ;;  %v5363_v34 = vmul.f32 0.5, %v17595_v61 }
 0xa3d   :  { %v5364_v37 = vadd.f32 0.5, %v5363_v34 }
 0xa3f   :  { %v5365_v17 = vmul.f32 %v5364_v37, %v18359_v62 }
 0xa55   :  { %v5871_v51 = vpop.f32.mrb[30].mxu0 }
 0xa56   :  { %v5875_v0 = vadd.f32 %v17946_v50, %v5871_v51  ;;  %v15428_v20 = vpop.f32.mrb[31].mxu0 }
 0xa58   :  { %17596 = vtanh.f32 %v5875_v0 }
 0xa62   :  { %v17597_v26 = vpop.eup %17596 }
 0xa63   :  { %5881 = vrot.lane.b32.xlu1 %v17597_v26, %s17667_s3  ;;  %v5877_v13 = vmul.f32 0.5, %v17597_v26 }
 0xa65   :  { %v5878_v60 = vadd.f32 0.5, %v5877_v13 }
 0xa67   :  { %v5879_v22 = vmul.f32 %v5878_v60, %v18364_v33 }
 0xaad   :  { %v5368_v42 = vpop.permute.xlu0 %5367 }
 0xaae   :  { %v5370_v10 = vmul.f32 %v5368_v42, %v5364_v37 }
 0xab0   :  { %5372 = vrot.lane.b32.xlu0 %v5370_v10, %s17667_s3 }
 0xad5   :  { %v5882_v14 = vpop.permute.xlu1 %5881 }
 0xad6   :  { %v5884_v47 = vmul.f32 %v5882_v14, %v5878_v60 }
 0xad8   :  { %5886 = vrot.lane.b32.xlu1 %v5884_v47, %s17667_s3 }
 0xb22   :  { %v5373_v50 = vpop.permute.xlu0 %5372 }
 0xb23   :  { %v18502_v18 = vadd.f32 %v5373_v50, %v5365_v17 }
 0xb25   :  { %17598 = vtanh.f32 %v18502_v18 }
 0xb2f   :  { %v17599_v19 = vpop.eup %17598 }
 0xb30   :  { %5378 = vrot.lane.b32.xlu0 %v17599_v19, %s17667_s3 }
 0xb4a   :  { %v5887_v23 = vpop.permute.xlu1 %5886 }
 0xb4b   :  { %v18507_v44 = vadd.f32 %v5887_v23, %v5879_v22 }
 0xb4d   :  { %17600 = vtanh.f32 %v18507_v44 }
 0xb57   :  { %v17601_v45 = vpop.eup %17600 }
 0xb58   :  { %5892 = vrot.lane.b32.xlu1 %v17601_v45, %s17667_s3 }
 0xba2   :  { %v5379_v46 = vpop.permute.xlu0 %5378 }
 0xba3   :  { %v5381_v62 = vmul.f32 %v5379_v46, %v5364_v37 }
 0xba5   :  { %5383 = vrot.lane.b32.xlu0 %v5381_v62, %s17668_s4 }
 0xbca   :  { %v5893_v48 = vpop.permute.xlu1 %5892 }
 0xbcb   :  { %v5895_v49 = vmul.f32 %v5893_v48, %v5878_v60 }
 0xbcd   :  { %6384 = vrot.lane.b32.xlu1 %v5895_v49, %s17668_s4 }
 0xc17   :  { %v5384_v52 = vpop.permute.xlu0 %5383 }
 0xc18   :  { %5387 = vst.msk [vmem:[#allocation3 + $0x10] sm:$0xff] %vm853_vm3, %v5384_v52  ;;  %v5896_v33 = vsel %vm853_vm3, %v5384_v52, 0 }
 0xc19   :  { %v5967_v53 = vand.u32 4294901760, %v5896_v33 }
 0xc1b   :  { %v5968_v54 = vsub.f32 %v5896_v33, %v5967_v53 }
 0xc1d   :  { %v5969_v55 = vand.u32 4294901760, %v5968_v54 }
 0xc1f   :  { %v5970_v16 = vsub.f32 %v5968_v54, %v5969_v55 }
 0xc21   :  { %v5971_v56 = vand.u32 4294901760, %v5970_v16 }
 0xc23   :  { %15438 = vmatmul.mubr.f32.vlgmr.msra.gmra.mrb[64].mxu1 %v5971_v56 }
 0xc24   :  { %16841 = vmatpush3.bf16.msra.mxu1 %v18004_v3  ;;  %15448 = vmatprep.mubr.msk.f32.mxu1 %vm17665_vm2, %v17666_v24 }
 0xc25   :  { %16842 = vmatprep.subr.bf16.mxu1 %v17664_v63 }
 0xc28   :  { %16844 = vmatpush3.bf16.msra.mxu1 %v18010_v5 }
 0xc29   :  { %16845 = vmatprep.subr.bf16.mxu1 %v17664_v63 }
 0xc2b   :  { %15449 = vmatmul.mubr.f32.vlgmr.msra.gmra.mrb[66].mxu1 %v5967_v53 }
 0xc2c   :  { %16847 = vmatpush3.bf16.msra.mxu1 %v18018_v6  ;;  %15459 = vmatprep.mubr.msk.f32.mxu1 %vm17665_vm2, %v17666_v24 }
 0xc2d   :  { %16848 = vmatprep.subr.bf16.mxu1 %v17664_v63 }
 0xc30   :  { %16850 = vmatpush3.bf16.msra.mxu1 %v18023_v7 }
 0xc31   :  { %16851 = vmatprep.subr.bf16.mxu1 %v17664_v63 }
 0xc33   :  { %15460 = vmatmul.mubr.f32.vlgmr.msra.gmra.mrb[68].mxu1 %v5968_v54 }
 0xc34   :  { %16853 = vmatpush3.bf16.msra.mxu1 %v17985_v35  ;;  %15470 = vmatprep.mubr.msk.f32.mxu1 %vm17665_vm2, %v17666_v24 }
 0xc35   :  { %16854 = vmatprep.subr.bf16.mxu1 %v17664_v63 }
 0xc38   :  { %16856 = vmatpush3.bf16.msra.mxu1 %v17990_v41 }
 0xc39   :  { %16857 = vmatprep.subr.bf16.mxu1 %v17664_v63 }
 0xc3b   :  { %15471 = vmatmul.mubr.f32.vlgmr.msra.gmra.mrb[70].mxu1 %v5969_v55 }
 0xc3c   :  { %16859 = vmatpush3.bf16.msra.mxu1 %v18038_v11  ;;  %15481 = vmatprep.mubr.msk.f32.mxu1 %vm17665_vm2, %v17666_v24 }
 0xc3d   :  { %16860 = vmatprep.subr.bf16.mxu1 %v17664_v63 }
 0xc3f   :  { %v6385_v57 = vpop.permute.xlu1 %6384 }
 0xc40   :  { %v6386_v9 = vsel %vm853_vm3, %v6385_v57, 0  ;;  %16862 = vmatpush3.bf16.msra.mxu1 %v18046_v15 }
 0xc41   :  { %v18539_v61 = vand.u32 4294901760, %v6386_v9  ;;  %16863 = vmatprep.subr.bf16.mxu1 %v17664_v63 }
 0xc43   :  { %v18543_v51 = vsub.f32 %v6386_v9, %v18539_v61  ;;  %15482 = vmatmul.mubr.f32.vlgmr.msra.gmra.mrb[72].mxu1 %v5967_v53 }
 0xc44   :  { %16865 = vmatpush3.bf16.msra.mxu1 %v17985_v35  ;;  %15492 = vmatprep.mubr.msk.f32.mxu1 %vm17665_vm2, %v17666_v24 }
 0xc45   :  { %v18549_v0 = vand.u32 4294901760, %v18543_v51  ;;  %16866 = vmatprep.subr.bf16.mxu1 %v17664_v63 }
 0xc47   :  { %v6460_v20 = vsub.f32 %v18543_v51, %v18549_v0 }
 0xc48   :  { %16868 = vmatpush3.bf16.msra.mxu1 %v17990_v41 }
 0xc49   :  { %16875 = vmatprep.subr.bf16.mxu1 %v17664_v63  ;;  %v6461_v26 = vand.u32 4294901760, %v6460_v20 }
 0xc4b   :  { %15493 = vmatmul.mubr.f32.vlgmr.msra.gmra.mrb[74].mxu1 %v5967_v53  ;;  %15504 = vmatmul.mubr.f32.vlgmr.msra.gmra.mrb[32].mxu0 %v6461_v26 }
 0xc4c   :  { %16877 = vmatpush3.bf16.msra.mxu1 %v18078_v36  ;;  %16883 = vmatpush3.bf16.msra.mxu0 %v18111_v21 }
 0xc4d   :  { %16878 = vmatprep.subr.bf16.mxu1 %v17664_v63  ;;  %16884 = vmatprep.subr.bf16.mxu0 %v17664_v63 }
 0xc4e   :  { %15514 = vmatprep.mubr.msk.f32.mxu1 %vm17665_vm2, %v17666_v24  ;;  %15525 = vmatprep.mubr.msk.f32.mxu0 %vm17665_vm2, %v17666_v24 }
 0xc50   :  { %16880 = vmatpush3.bf16.msra.mxu1 %v18083_v39  ;;  %16886 = vmatpush3.bf16.msra.mxu0 %v18119_v27 }
 0xc51   :  { %16887 = vmatprep.subr.bf16.mxu1 %v17664_v63  ;;  %16893 = vmatprep.subr.bf16.mxu0 %v17664_v63 }
 0xc53   :  { %15515 = vmatmul.mubr.f32.vlgmr.msra.gmra.mrb[76].mxu1 %v18539_v61  ;;  %15526 = vmatmul.mubr.f32.vlgmr.msra.gmra.mrb[34].mxu0 %v18543_v51 }
 0xc54   :  { %16889 = vmatpush3.bf16.msra.mxu1 %v17987_v40  ;;  %16895 = vmatpush3.bf16.msra.mxu0 %v18133_v38 }
 0xc55   :  { %16890 = vmatprep.subr.bf16.mxu1 %v17664_v63  ;;  %16896 = vmatprep.subr.bf16.mxu0 %v17664_v63 }
 0xc56   :  { %15536 = vmatprep.mubr.msk.f32.mxu1 %vm17665_vm2, %v17666_v24  ;;  %15547 = vmatprep.mubr.msk.f32.mxu0 %vm17665_vm2, %v17666_v24 }
 0xc58   :  { %16892 = vmatpush3.bf16.msra.mxu1 %v18007_v4  ;;  %16898 = vmatpush3.bf16.msra.mxu0 %v18144_v43 }
 0xc59   :  { %16899 = vmatprep.subr.bf16.mxu1 %v17664_v63  ;;  %16905 = vmatprep.subr.bf16.mxu0 %v17664_v63 }
 0xc5b   :  { %15537 = vmatmul.mubr.f32.vlgmr.msra.gmra.mrb[78].mxu1 %v18549_v0  ;;  %15548 = vmatmul.mubr.f32.vlgmr.msra.gmra.mrb[36].mxu0 %v18539_v61 }
 0xc5c   :  { %16901 = vmatpush3.bf16.msra.mxu1 %v17987_v40  ;;  %16907 = vmatpush3.bf16.msra.mxu0 %v17866_v8 }
 0xc5d   :  { %16902 = vmatprep.subr.bf16.mxu1 %v17664_v63  ;;  %16908 = vmatprep.subr.bf16.mxu0 %v17664_v63 }
 0xc5e   :  { %15558 = vmatprep.mubr.msk.f32.mxu1 %vm17665_vm2, %v17666_v24  ;;  %15569 = vmatprep.mubr.msk.f32.mxu0 %vm17665_vm2, %v17666_v24 }
 0xc60   :  { %16904 = vmatpush3.bf16.msra.mxu1 %v18007_v4  ;;  %16910 = vmatpush3.bf16.msra.mxu0 %v17871_v12 }
 0xc61   :  { %16911 = vmatprep.subr.bf16.mxu0 %v17664_v63  ;;  %16941 = vmatprep.subr.bf16.mxu1 %v17664_v63 }
 0xc63   :  { %15559 = vmatmul.mubr.f32.vlgmr.msra.gmra.mrb[80].mxu1 %v18539_v61  ;;  %15570 = vmatmul.mubr.f32.vlgmr.msra.gmra.mrb[38].mxu0 %v6461_v26 }
 0xc64   :  { %16913 = vmatpush3.bf16.msra.mxu0 %v17891_v25  ;;  %15580 = vmatprep.mubr.msk.f32.mxu0 %vm17665_vm2, %v17666_v24 }
 0xc65   :  { %16914 = vmatprep.subr.bf16.mxu0 %v17664_v63  ;;  %16943 = vmatpush3.bf16.msra.mxu1 %v17985_v35 }
 0xc66   :  { %16944 = vmatprep.subr.bf16.mxu1 %v17664_v63  ;;  %15635 = vmatprep.mubr.msk.f32.mxu1 %vm17665_vm2, %v17666_v24 }
 0xc68   :  { %16916 = vmatpush3.bf16.msra.mxu0 %v17895_v28 }
 0xc69   :  { %16917 = vmatprep.subr.bf16.mxu0 %v17664_v63  ;;  %16946 = vmatpush3.bf16.msra.mxu1 %v17990_v41 }
 0xc6a   :  { %16947 = vmatprep.subr.bf16.mxu1 %v17664_v63 }
 0xc6b   :  { %15581 = vmatmul.mubr.f32.vlgmr.msra.gmra.mrb[38].mxu0 %v18539_v61 }
 0xc6c   :  { %16919 = vmatpush3.bf16.msra.mxu0 %v17901_v29  ;;  %15591 = vmatprep.mubr.msk.f32.mxu0 %vm17665_vm2, %v17666_v24 }
 0xc6d   :  { %16920 = vmatprep.subr.bf16.mxu0 %v17664_v63 }
 0xc70   :  { %16922 = vmatpush3.bf16.msra.mxu0 %v17906_v30 }
 0xc71   :  { %16923 = vmatprep.subr.bf16.mxu0 %v17664_v63 }
 0xc73   :  { %15592 = vmatmul.mubr.f32.vlgmr.msra.gmra.mrb[38].mxu0 %v18543_v51 }
 0xc74   :  { %16925 = vmatpush3.bf16.msra.mxu0 %v17866_v8  ;;  %15602 = vmatprep.mubr.msk.f32.mxu0 %vm17665_vm2, %v17666_v24 }
 0xc75   :  { %16926 = vmatprep.subr.bf16.mxu0 %v17664_v63 }
 0xc78   :  { %16928 = vmatpush3.bf16.msra.mxu0 %v17871_v12 }
 0xc79   :  { %16929 = vmatprep.subr.bf16.mxu0 %v17664_v63 }
 0xc7b   :  { %15603 = vmatmul.mubr.f32.vlgmr.msra.gmra.mrb[38].mxu0 %v18549_v0 }
 0xc7c   :  { %16931 = vmatpush3.bf16.msra.mxu0 %v17919_v31  ;;  %15613 = vmatprep.mubr.msk.f32.mxu0 %vm17665_vm2, %v17666_v24 }
 0xc7d   :  { %16932 = vmatprep.subr.bf16.mxu0 %v17664_v63 }
 0xc80   :  { %16934 = vmatpush3.bf16.msra.mxu0 %v17924_v32 }
 0xc81   :  { %16935 = vmatprep.subr.bf16.mxu0 %v17664_v63 }
 0xc83   :  { %15614 = vmatmul.mubr.f32.vlgmr.msra.gmra.mrb[38].mxu0 %v18539_v61 }
 0xc84   :  { %16937 = vmatpush3.bf16.msra.mxu0 %v17866_v8  ;;  %15624 = vmatprep.mubr.msk.f32.mxu0 %vm17665_vm2, %v17666_v24 }
 0xc85   :  { %16938 = vmatprep.subr.bf16.mxu0 %v17664_v63 }
 0xc88   :  { %16940 = vmatpush3.bf16.msra.mxu0 %v17871_v12 }
 0xc89   :  { %16977 = vmatprep.subr.bf16.mxu0 %v17664_v63 }
 0xc8b   :  { %15625 = vmatmul.mubr.f32.vlgmr.msra.gmra.mrb[38].mxu0 %v18539_v61 }
 0xc8c   :  { %16979 = vmatpush3.bf16.msra.mxu0 %v17987_v40  ;;  %15701 = vmatprep.mubr.msk.f32.mxu0 %vm17665_vm2, %v17666_v24 }
 0xc8d   :  { %16980 = vmatprep.subr.bf16.mxu0 %v17664_v63 }
 0xc90   :  { %16982 = vmatpush3.bf16.msra.mxu0 %v18007_v4 }
 0xc91   :  { %16989 = vmatprep.subr.bf16.mxu0 %v17664_v63 }
 0xcf6   :  { %v5973_v34 = vpop.f32.mrb[64].mxu1 }
 0xcf7   :  { %v15439_v37 = vpop.f32.mrb[65].mxu1 }
 0xcfe   :  { %v6064_v42 = vpop.f32.mrb[66].mxu1 }
 0xcff   :  { %v6065_v10 = vadd.f32 %v6064_v42, %v5973_v34  ;;  %v15450_v13 = vpop.f32.mrb[67].mxu1 }
 0xd06   :  { %v6144_v60 = vpop.f32.mrb[68].mxu1 }
 0xd07   :  { %v6145_v14 = vadd.f32 %v6144_v60, %v6065_v10  ;;  %v15461_v47 = vpop.f32.mrb[69].mxu1  ;;  %v18647_v10 = vld [vmem:[%s19400_s6] ss:$0 sm:$0xff] }
 0xd0e   :  { %v6221_v17 = vpop.f32.mrb[70].mxu1 }
 0xd0f   :  { %v6222_v50 = vadd.f32 %v6221_v17, %v6145_v14  ;;  %v15472_v19 = vpop.f32.mrb[71].mxu1 }
 0xd16   :  { %v6304_v22 = vpop.f32.mrb[72].mxu1 }
 0xd17   :  { %v6305_v23 = vadd.f32 %v6304_v22, %v6222_v50  ;;  %v15483_v45 = vpop.f32.mrb[73].mxu1 }
 0xd1e   :  { %v6379_v46 = vpop.f32.mrb[74].mxu1  ;;  %v6463_v62 = vpop.f32.mrb[32].mxu0 }
 0xd1f   :  { %v6380_v48 = vadd.f32 %v6379_v46, %v6305_v23  ;;  %v15494_v49 = vpop.f32.mrb[75].mxu1  ;;  %v15505_v52 = vpop.f32.mrb[33].mxu0 }
 0xd21   :  { %v6464_v33 = vadd.f32 %v6463_v62, %v6380_v48 }
 0xd26   :  { %v6554_v53 = vpop.f32.mrb[76].mxu1  ;;  %v6634_v54 = vpop.f32.mrb[34].mxu0 }
 0xd27   :  { %v6555_v55 = vadd.f32 %v6554_v53, %v6464_v33  ;;  %v15516_v16 = vpop.f32.mrb[77].mxu1  ;;  %v15527_v56 = vpop.f32.mrb[35].mxu0 }
 0xd29   :  { %v6635_v57 = vadd.f32 %v6634_v54, %v6555_v55 }
 0xd2e   :  { %v6711_v9 = vpop.f32.mrb[78].mxu1  ;;  %v6794_v61 = vpop.f32.mrb[36].mxu0 }
 0xd2f   :  { %v6712_v51 = vadd.f32 %v6711_v9, %v6635_v57  ;;  %v15538_v0 = vpop.f32.mrb[79].mxu1  ;;  %v15549_v20 = vpop.f32.mrb[37].mxu0 }
 0xd31   :  { %v6795_v26 = vadd.f32 %v6794_v61, %v6712_v51 }
 0xd36   :  { %v6869_v34 = vpop.f32.mrb[80].mxu1 }
 0xd37   :  { %v6870_v37 = vadd.f32 %v6869_v34, %v6795_v26  ;;  %v15560_v42 = vpop.f32.mrb[81].mxu1 }
 0xd39   :  { %v6873_v13 = vadd.f32 %v18647_v10, %v6870_v37 }
 0xd3b   :  { %17602 = vtanh.f32 %v6873_v13 }
 0xd45   :  { %v17603_v60 = vpop.eup %17602 }
 0xd46   :  { %6879 = vrot.lane.b32.xlu0 %v17603_v60, %s17667_s3  ;;  %v6875_v19 = vmul.f32 0.5, %v17603_v60 }
 0xd48   :  { %v6876_v22 = vadd.f32 0.5, %v6875_v19 }
 0xd4a   :  { %v6877_v52 = vmul.f32 %v6876_v22, %v18502_v18 }
 0xd5e   :  { %v7383_v14 = vpop.f32.mrb[38].mxu0 }
 0xd5f   :  { %v7387_v47 = vadd.f32 %v17952_v59, %v7383_v14  ;;  %v15626_v17 = vpop.f32.mrb[39].mxu0 }
 0xd61   :  { %17604 = vtanh.f32 %v7387_v47 }
 0xd6b   :  { %v17605_v50 = vpop.eup %17604 }
 0xd6c   :  { %7393 = vrot.lane.b32.xlu1 %v17605_v50, %s17667_s3  ;;  %v7389_v46 = vmul.f32 0.5, %v17605_v50 }
 0xd6e   :  { %v7390_v62 = vadd.f32 0.5, %v7389_v46 }
 0xd70   :  { %v7391_v54 = vmul.f32 %v7390_v62, %v18507_v44 }
 0xdb8   :  { %v6880_v23 = vpop.permute.xlu0 %6879 }
 0xdb9   :  { %v6882_v45 = vmul.f32 %v6880_v23, %v6876_v22 }
 0xdbb   :  { %6884 = vrot.lane.b32.xlu0 %v6882_v45, %s17667_s3 }
 0xdde   :  { %v7394_v48 = vpop.permute.xlu1 %7393 }
 0xddf   :  { %v7396_v49 = vmul.f32 %v7394_v48, %v7390_v62 }
 0xde1   :  { %7398 = vrot.lane.b32.xlu1 %v7396_v49, %s17667_s3 }
 0xe2d   :  { %v6885_v59 = vpop.permute.xlu0 %6884 }
 0xe2e   :  { %v18656_v33 = vadd.f32 %v6885_v59, %v6877_v52 }
 0xe30   :  { %17606 = vtanh.f32 %v18656_v33 }
 0xe3a   :  { %v17607_v53 = vpop.eup %17606 }
 0xe3b   :  { %6890 = vrot.lane.b32.xlu0 %v17607_v53, %s17667_s3 }
 0xe53   :  { %v7399_v55 = vpop.permute.xlu1 %7398 }
 0xe54   :  { %v18661_v16 = vadd.f32 %v7399_v55, %v7391_v54 }
 0xe56   :  { %17608 = vtanh.f32 %v18661_v16 }
 0xe60   :  { %v17609_v56 = vpop.eup %17608 }
 0xe61   :  { %7404 = vrot.lane.b32.xlu1 %v17609_v56, %s17667_s3 }
 0xead   :  { %v6891_v57 = vpop.permute.xlu0 %6890 }
 0xeae   :  { %v6893_v18 = vmul.f32 %v6891_v57, %v6876_v22 }
 0xeb0   :  { %6895 = vrot.lane.b32.xlu0 %v6893_v18, %s17668_s4 }
 0xed3   :  { %v7405_v9 = vpop.permute.xlu1 %7404 }
 0xed4   :  { %v7407_v61 = vmul.f32 %v7405_v9, %v7390_v62 }
 0xed6   :  { %7896 = vrot.lane.b32.xlu1 %v7407_v61, %s17668_s4 }
 0xf22   :  { %v6896_v51 = vpop.permute.xlu0 %6895 }
 0xf23   :  { %6899 = vst.msk [vmem:[#allocation3 + $0x18] sm:$0xff] %vm853_vm3, %v6896_v51  ;;  %v7408_v44 = vsel %vm853_vm3, %v6896_v51, 0 }
 0xf24   :  { %v7479_v0 = vand.u32 4294901760, %v7408_v44 }
 0xf26   :  { %v7480_v20 = vsub.f32 %v7408_v44, %v7479_v0 }
 0xf28   :  { %v7481_v26 = vand.u32 4294901760, %v7480_v20 }
 0xf2a   :  { %v7482_v34 = vsub.f32 %v7480_v20, %v7481_v26 }
 0xf2c   :  { %v7483_v37 = vand.u32 4294901760, %v7482_v34 }
 0xf2e   :  { %15636 = vmatmul.mubr.f32.vlgmr.msra.gmra.mrb[82].mxu1 %v7483_v37 }
 0xf2f   :  { %16949 = vmatpush3.bf16.msra.mxu1 %v18004_v3  ;;  %15646 = vmatprep.mubr.msk.f32.mxu1 %vm17665_vm2, %v17666_v24 }
 0xf30   :  { %16950 = vmatprep.subr.bf16.mxu1 %v17664_v63 }
 0xf33   :  { %16952 = vmatpush3.bf16.msra.mxu1 %v18010_v5 }
 0xf34   :  { %16953 = vmatprep.subr.bf16.mxu1 %v17664_v63 }
 0xf36   :  { %15647 = vmatmul.mubr.f32.vlgmr.msra.gmra.mrb[84].mxu1 %v7479_v0 }
 0xf37   :  { %16955 = vmatpush3.bf16.msra.mxu1 %v18018_v6  ;;  %15657 = vmatprep.mubr.msk.f32.mxu1 %vm17665_vm2, %v17666_v24 }
 0xf38   :  { %16956 = vmatprep.subr.bf16.mxu1 %v17664_v63 }
 0xf3b   :  { %16958 = vmatpush3.bf16.msra.mxu1 %v18023_v7 }
 0xf3c   :  { %16959 = vmatprep.subr.bf16.mxu1 %v17664_v63 }
 0xf3e   :  { %15658 = vmatmul.mubr.f32.vlgmr.msra.gmra.mrb[86].mxu1 %v7480_v20 }
 0xf3f   :  { %16961 = vmatpush3.bf16.msra.mxu1 %v17985_v35  ;;  %15668 = vmatprep.mubr.msk.f32.mxu1 %vm17665_vm2, %v17666_v24 }
 0xf40   :  { %16962 = vmatprep.subr.bf16.mxu1 %v17664_v63 }
 0xf43   :  { %16964 = vmatpush3.bf16.msra.mxu1 %v17990_v41 }
 0xf44   :  { %16965 = vmatprep.subr.bf16.mxu1 %v17664_v63 }
 0xf46   :  { %15669 = vmatmul.mubr.f32.vlgmr.msra.gmra.mrb[88].mxu1 %v7481_v26 }
 0xf47   :  { %16967 = vmatpush3.bf16.msra.mxu1 %v18038_v11  ;;  %15679 = vmatprep.mubr.msk.f32.mxu1 %vm17665_vm2, %v17666_v24 }
 0xf48   :  { %v7897_v42 = vpop.permute.xlu1 %7896  ;;  %16968 = vmatprep.subr.bf16.mxu1 %v17664_v63 }
 0xf49   :  { %v7898_v13 = vsel %vm853_vm3, %v7897_v42, 0 }
 0xf4a   :  { %v18692_v60 = vand.u32 4294901760, %v7898_v13 }
 0xf4b   :  { %16970 = vmatpush3.bf16.msra.mxu1 %v18046_v15 }
 0xf4c   :  { %v18696_v14 = vsub.f32 %v7898_v13, %v18692_v60  ;;  %16971 = vmatprep.subr.bf16.mxu1 %v17664_v63 }
 0xf4e   :  { %v18700_v47 = vand.u32 4294901760, %v18696_v14  ;;  %15680 = vmatmul.mubr.f32.vlgmr.msra.gmra.mrb[90].mxu1 %v7479_v0 }
 0xf4f   :  { %16973 = vmatpush3.bf16.msra.mxu1 %v17985_v35  ;;  %15690 = vmatprep.mubr.msk.f32.mxu1 %vm17665_vm2, %v17666_v24 }
 0xf50   :  { %16974 = vmatprep.subr.bf16.mxu1 %v17664_v63  ;;  %v7972_v17 = vsub.f32 %v18696_v14, %v18700_v47 }
 0xf52   :  { %v7973_v50 = vand.u32 4294901760, %v7972_v17 }
 0xf53   :  { %16976 = vmatpush3.bf16.msra.mxu1 %v17990_v41 }
 0xf54   :  { %15702 = vmatmul.mubr.f32.vlgmr.msra.gmra.mrb[40].mxu0 %v7973_v50  ;;  %16983 = vmatprep.subr.bf16.mxu1 %v17664_v63 }
 0xf55   :  { %16991 = vmatpush3.bf16.msra.mxu0 %v18111_v21  ;;  %15723 = vmatprep.mubr.msk.f32.mxu0 %vm17665_vm2, %v17666_v24 }
 0xf56   :  { %15691 = vmatmul.mubr.f32.vlgmr.msra.gmra.mrb[92].mxu1 %v7479_v0  ;;  %16992 = vmatprep.subr.bf16.mxu0 %v17664_v63 }
 0xf57   :  { %16985 = vmatpush3.bf16.msra.mxu1 %v18078_v36  ;;  %15712 = vmatprep.mubr.msk.f32.mxu1 %vm17665_vm2, %v17666_v24 }
 0xf58   :  { %16986 = vmatprep.subr.bf16.mxu1 %v17664_v63 }
 0xf59   :  { %16994 = vmatpush3.bf16.msra.mxu0 %v18119_v27 }
 0xf5a   :  { %17001 = vmatprep.subr.bf16.mxu0 %v17664_v63 }
 0xf5b   :  { %16988 = vmatpush3.bf16.msra.mxu1 %v18083_v39 }
 0xf5c   :  { %15724 = vmatmul.mubr.f32.vlgmr.msra.gmra.mrb[42].mxu0 %v18696_v14  ;;  %16995 = vmatprep.subr.bf16.mxu1 %v17664_v63 }
 0xf5d   :  { %17003 = vmatpush3.bf16.msra.mxu0 %v18133_v38  ;;  %15745 = vmatprep.mubr.msk.f32.mxu0 %vm17665_vm2, %v17666_v24 }
 0xf5e   :  { %15713 = vmatmul.mubr.f32.vlgmr.msra.gmra.mrb[94].mxu1 %v18692_v60  ;;  %17004 = vmatprep.subr.bf16.mxu0 %v17664_v63 }
 0xf5f   :  { %16997 = vmatpush3.bf16.msra.mxu1 %v17987_v40  ;;  %15734 = vmatprep.mubr.msk.f32.mxu1 %vm17665_vm2, %v17666_v24 }
 0xf60   :  { %16998 = vmatprep.subr.bf16.mxu1 %v17664_v63 }
 0xf61   :  { %17006 = vmatpush3.bf16.msra.mxu0 %v18144_v43 }
 0xf62   :  { %17013 = vmatprep.subr.bf16.mxu0 %v17664_v63 }
 0xf63   :  { %17000 = vmatpush3.bf16.msra.mxu1 %v18007_v4 }
 0xf64   :  { %15746 = vmatmul.mubr.f32.vlgmr.msra.gmra.mrb[44].mxu0 %v18692_v60  ;;  %17007 = vmatprep.subr.bf16.mxu1 %v17664_v63 }
 0xf65   :  { %17015 = vmatpush3.bf16.msra.mxu0 %v17866_v8  ;;  %15767 = vmatprep.mubr.msk.f32.mxu0 %vm17665_vm2, %v17666_v24 }
 0xf66   :  { %15735 = vmatmul.mubr.f32.vlgmr.msra.gmra.mrb[96].mxu1 %v18700_v47  ;;  %17016 = vmatprep.subr.bf16.mxu0 %v17664_v63 }
 0xf67   :  { %17009 = vmatpush3.bf16.msra.mxu1 %v17987_v40  ;;  %15756 = vmatprep.mubr.msk.f32.mxu1 %vm17665_vm2, %v17666_v24 }
 0xf68   :  { %17010 = vmatprep.subr.bf16.mxu1 %v17664_v63 }
 0xf69   :  { %17018 = vmatpush3.bf16.msra.mxu0 %v17871_v12 }
 0xf6a   :  { %17019 = vmatprep.subr.bf16.mxu0 %v17664_v63 }
 0xf6b   :  { %17012 = vmatpush3.bf16.msra.mxu1 %v18007_v4 }
 0xf6c   :  { %15768 = vmatmul.mubr.f32.vlgmr.msra.gmra.mrb[46].mxu0 %v7973_v50  ;;  %17049 = vmatprep.subr.bf16.mxu1 %v17664_v63 }
 0xf6d   :  { %17021 = vmatpush3.bf16.msra.mxu0 %v17891_v25  ;;  %15778 = vmatprep.mubr.msk.f32.mxu0 %vm17665_vm2, %v17666_v24 }
 0xf6e   :  { %15757 = vmatmul.mubr.f32.vlgmr.msra.gmra.mrb[98].mxu1 %v18692_v60  ;;  %17022 = vmatprep.subr.bf16.mxu0 %v17664_v63 }
 0xf6f   :  { %17051 = vmatpush3.bf16.msra.mxu1 %v17985_v35  ;;  %15833 = vmatprep.mubr.msk.f32.mxu1 %vm17665_vm2, %v17666_v24 }
 0xf70   :  { %17052 = vmatprep.subr.bf16.mxu1 %v17664_v63 }
 0xf71   :  { %17024 = vmatpush3.bf16.msra.mxu0 %v17895_v28 }
 0xf72   :  { %17025 = vmatprep.subr.bf16.mxu0 %v17664_v63 }
 0xf73   :  { %17054 = vmatpush3.bf16.msra.mxu1 %v17990_v41 }
 0xf74   :  { %15779 = vmatmul.mubr.f32.vlgmr.msra.gmra.mrb[46].mxu0 %v18692_v60  ;;  %17055 = vmatprep.subr.bf16.mxu1 %v17664_v63 }
 0xf75   :  { %17027 = vmatpush3.bf16.msra.mxu0 %v17901_v29  ;;  %15789 = vmatprep.mubr.msk.f32.mxu0 %vm17665_vm2, %v17666_v24 }
 0xf76   :  { %17028 = vmatprep.subr.bf16.mxu0 %v17664_v63 }
 0xf79   :  { %17030 = vmatpush3.bf16.msra.mxu0 %v17906_v30 }
 0xf7a   :  { %17031 = vmatprep.subr.bf16.mxu0 %v17664_v63 }
 0xf7c   :  { %15790 = vmatmul.mubr.f32.vlgmr.msra.gmra.mrb[46].mxu0 %v18696_v14 }
 0xf7d   :  { %17033 = vmatpush3.bf16.msra.mxu0 %v17866_v8  ;;  %15800 = vmatprep.mubr.msk.f32.mxu0 %vm17665_vm2, %v17666_v24 }
 0xf7e   :  { %17034 = vmatprep.subr.bf16.mxu0 %v17664_v63 }
 0xf81   :  { %17036 = vmatpush3.bf16.msra.mxu0 %v17871_v12 }
 0xf82   :  { %17037 = vmatprep.subr.bf16.mxu0 %v17664_v63 }
 0xf84   :  { %15801 = vmatmul.mubr.f32.vlgmr.msra.gmra.mrb[46].mxu0 %v18700_v47 }
 0xf85   :  { %17039 = vmatpush3.bf16.msra.mxu0 %v17919_v31  ;;  %15811 = vmatprep.mubr.msk.f32.mxu0 %vm17665_vm2, %v17666_v24 }
 0xf86   :  { %17040 = vmatprep.subr.bf16.mxu0 %v17664_v63 }
 0xf89   :  { %17042 = vmatpush3.bf16.msra.mxu0 %v17924_v32 }
 0xf8a   :  { %17043 = vmatprep.subr.bf16.mxu0 %v17664_v63 }
 0xf8c   :  { %15812 = vmatmul.mubr.f32.vlgmr.msra.gmra.mrb[46].mxu0 %v18692_v60 }
 0xf8d   :  { %17045 = vmatpush3.bf16.msra.mxu0 %v17866_v8  ;;  %15822 = vmatprep.mubr.msk.f32.mxu0 %vm17665_vm2, %v17666_v24 }
 0xf8e   :  { %17046 = vmatprep.subr.bf16.mxu0 %v17664_v63 }
 0xf91   :  { %17048 = vmatpush3.bf16.msra.mxu0 %v17871_v12 }
 0xf92   :  { %17085 = vmatprep.subr.bf16.mxu0 %v17664_v63 }
 0xf94   :  { %15823 = vmatmul.mubr.f32.vlgmr.msra.gmra.mrb[46].mxu0 %v18692_v60 }
 0xf95   :  { %17087 = vmatpush3.bf16.msra.mxu0 %v17987_v40  ;;  %15899 = vmatprep.mubr.msk.f32.mxu0 %vm17665_vm2, %v17666_v24 }
 0xf96   :  { %17088 = vmatprep.subr.bf16.mxu0 %v17664_v63 }
 0xf99   :  { %17090 = vmatpush3.bf16.msra.mxu0 %v18007_v4 }
 0xf9a   :  { %17097 = vmatprep.subr.bf16.mxu0 %v17664_v63 }
0x1001   :  { %v7485_v19 = vpop.f32.mrb[82].mxu1 }
0x1002   :  { %v15637_v22 = vpop.f32.mrb[83].mxu1 }
0x1009   :  { %v7576_v23 = vpop.f32.mrb[84].mxu1 }
0x100a   :  { %v7577_v45 = vadd.f32 %v7576_v23, %v7485_v19  ;;  %v15648_v46 = vpop.f32.mrb[85].mxu1 }
0x1011   :  { %v7656_v62 = vpop.f32.mrb[86].mxu1 }
0x1012   :  { %v7657_v48 = vadd.f32 %v7656_v62, %v7577_v45  ;;  %v15659_v49 = vpop.f32.mrb[87].mxu1 }
0x1019   :  { %v7733_v52 = vpop.f32.mrb[88].mxu1 }
0x101a   :  { %v7734_v59 = vadd.f32 %v7733_v52, %v7657_v48  ;;  %v15670_v53 = vpop.f32.mrb[89].mxu1 }
0x1021   :  { %v7816_v54 = vpop.f32.mrb[90].mxu1 }
0x1022   :  { %v7817_v55 = vadd.f32 %v7816_v54, %v7734_v59  ;;  %v15681_v56 = vpop.f32.mrb[91].mxu1 }
0x1027   :  { %v7975_v57 = vpop.f32.mrb[40].mxu0 }
0x1028   :  { %v15703_v18 = vpop.f32.mrb[41].mxu0 }
0x1029   :  { %v7891_v9 = vpop.f32.mrb[92].mxu1 }
0x102a   :  { %v7892_v61 = vadd.f32 %v7891_v9, %v7817_v55  ;;  %v15692_v51 = vpop.f32.mrb[93].mxu1 }
0x102c   :  { %v7976_v44 = vadd.f32 %v7975_v57, %v7892_v61 }
0x102f   :  { %v8146_v0 = vpop.f32.mrb[42].mxu0 }
0x1030   :  { %v15725_v20 = vpop.f32.mrb[43].mxu0 }
0x1031   :  { %v8066_v26 = vpop.f32.mrb[94].mxu1 }
0x1032   :  { %v8067_v34 = vadd.f32 %v8066_v26, %v7976_v44  ;;  %v15714_v37 = vpop.f32.mrb[95].mxu1 }
0x1034   :  { %v8147_v42 = vadd.f32 %v8146_v0, %v8067_v34 }
0x1037   :  { %v8306_v13 = vpop.f32.mrb[44].mxu0 }
0x1038   :  { %v15747_v60 = vpop.f32.mrb[45].mxu0 }
0x1039   :  { %v8223_v14 = vpop.f32.mrb[96].mxu1 }
0x103a   :  { %v8224_v47 = vadd.f32 %v8223_v14, %v8147_v42  ;;  %v15736_v17 = vpop.f32.mrb[97].mxu1 }
0x103c   :  { %v8307_v50 = vadd.f32 %v8306_v13, %v8224_v47 }
0x1041   :  { %v8381_v19 = vpop.f32.mrb[98].mxu1 }
0x1042   :  { %v8382_v22 = vadd.f32 %v8381_v19, %v8307_v50  ;;  %v15758_v23 = vpop.f32.mrb[99].mxu1 }
0x1044   :  { %v8385_v45 = vadd.f32 %v18647_v10, %v8382_v22 }
0x1046   :  { %17610 = vtanh.f32 %v8385_v45 }
0x1050   :  { %v17611_v46 = vpop.eup %17610 }
0x1051   :  { %8391 = vrot.lane.b32.xlu0 %v17611_v46, %s17667_s3  ;;  %v8387_v59 = vmul.f32 0.5, %v17611_v46 }
0x1053   :  { %v8388_v53 = vadd.f32 0.5, %v8387_v59 }
0x1055   :  { %v8389_v61 = vmul.f32 %v8388_v53, %v18656_v33 }
0x1067   :  { %v8895_v62 = vpop.f32.mrb[46].mxu0 }
0x1068   :  { %v8899_v48 = vadd.f32 %v17950_v58, %v8895_v62  ;;  %v15824_v49 = vpop.f32.mrb[47].mxu0 }
0x106a   :  { %17612 = vtanh.f32 %v8899_v48 }
0x1074   :  { %v17613_v52 = vpop.eup %17612 }
0x1075   :  { %8905 = vrot.lane.b32.xlu1 %v17613_v52, %s17667_s3  ;;  %v8901_v56 = vmul.f32 0.5, %v17613_v52 }
0x1077   :  { %v8902_v57 = vadd.f32 0.5, %v8901_v56 }
0x1079   :  { %v8903_v0 = vmul.f32 %v8902_v57, %v18661_v16 }
0x10c3   :  { %v8392_v54 = vpop.permute.xlu0 %8391 }
0x10c4   :  { %v8394_v55 = vmul.f32 %v8392_v54, %v8388_v53 }
0x10c6   :  { %8396 = vrot.lane.b32.xlu0 %v8394_v55, %s17667_s3 }
0x10e7   :  { %v8906_v18 = vpop.permute.xlu1 %8905 }
0x10e8   :  { %v8908_v9 = vmul.f32 %v8906_v18, %v8902_v57 }
0x10ea   :  { %8910 = vrot.lane.b32.xlu1 %v8908_v9, %s17667_s3 }
0x1138   :  { %v8397_v58 = vpop.permute.xlu0 %8396 }
0x1139   :  { %v18805_v51 = vadd.f32 %v8397_v58, %v8389_v61 }
0x113b   :  { %17614 = vtanh.f32 %v18805_v51 }
0x1145   :  { %v17615_v44 = vpop.eup %17614 }
0x1146   :  { %8402 = vrot.lane.b32.xlu0 %v17615_v44, %s17667_s3 }
0x115c   :  { %v8911_v20 = vpop.permute.xlu1 %8910 }
0x115d   :  { %v18810_v26 = vadd.f32 %v8911_v20, %v8903_v0 }
0x115f   :  { %17616 = vtanh.f32 %v18810_v26 }
0x1169   :  { %v17617_v34 = vpop.eup %17616 }
0x116a   :  { %8916 = vrot.lane.b32.xlu1 %v17617_v34, %s17667_s3 }
0x11b8   :  { %v8403_v37 = vpop.permute.xlu0 %8402 }
0x11b9   :  { %v8405_v33 = vmul.f32 %v8403_v37, %v8388_v53 }
0x11bb   :  { %8407 = vrot.lane.b32.xlu0 %v8405_v33, %s17668_s4 }
0x11dc   :  { %v8917_v42 = vpop.permute.xlu1 %8916 }
0x11dd   :  { %v8919_v13 = vmul.f32 %v8917_v42, %v8902_v57 }
0x11df   :  { %9408 = vrot.lane.b32.xlu1 %v8919_v13, %s17668_s4 }
0x122d   :  { %v8408_v60 = vpop.permute.xlu0 %8407 }
0x122e   :  { %8411 = vst.msk [vmem:[#allocation3 + $0x20] sm:$0xff] %vm853_vm3, %v8408_v60  ;;  %v8920_v16 = vsel %vm853_vm3, %v8408_v60, 0 }
0x122f   :  { %v8991_v14 = vand.u32 4294901760, %v8920_v16 }
0x1231   :  { %v8992_v47 = vsub.f32 %v8920_v16, %v8991_v14 }
0x1233   :  { %v8993_v17 = vand.u32 4294901760, %v8992_v47 }
0x1235   :  { %v8994_v50 = vsub.f32 %v8992_v47, %v8993_v17 }
0x1237   :  { %v8995_v19 = vand.u32 4294901760, %v8994_v50 }
0x1239   :  { %15834 = vmatmul.mubr.f32.vlgmr.msra.gmra.mrb[100].mxu1 %v8995_v19 }
0x123a   :  { %17057 = vmatpush3.bf16.msra.mxu1 %v18004_v3  ;;  %15844 = vmatprep.mubr.msk.f32.mxu1 %vm17665_vm2, %v17666_v24 }
0x123b   :  { %17058 = vmatprep.subr.bf16.mxu1 %v17664_v63 }
0x123e   :  { %17060 = vmatpush3.bf16.msra.mxu1 %v18010_v5 }
0x123f   :  { %17061 = vmatprep.subr.bf16.mxu1 %v17664_v63 }
0x1241   :  { %15845 = vmatmul.mubr.f32.vlgmr.msra.gmra.mrb[102].mxu1 %v8991_v14 }
0x1242   :  { %17063 = vmatpush3.bf16.msra.mxu1 %v18018_v6  ;;  %15855 = vmatprep.mubr.msk.f32.mxu1 %vm17665_vm2, %v17666_v24 }
0x1243   :  { %17064 = vmatprep.subr.bf16.mxu1 %v17664_v63 }
0x1246   :  { %17066 = vmatpush3.bf16.msra.mxu1 %v18023_v7 }
0x1247   :  { %17067 = vmatprep.subr.bf16.mxu1 %v17664_v63 }
0x1249   :  { %15856 = vmatmul.mubr.f32.vlgmr.msra.gmra.mrb[104].mxu1 %v8992_v47 }
0x124a   :  { %17069 = vmatpush3.bf16.msra.mxu1 %v17985_v35  ;;  %15866 = vmatprep.mubr.msk.f32.mxu1 %vm17665_vm2, %v17666_v24 }
0x124b   :  { %17070 = vmatprep.subr.bf16.mxu1 %v17664_v63 }
0x124e   :  { %17072 = vmatpush3.bf16.msra.mxu1 %v17990_v41 }
0x124f   :  { %17073 = vmatprep.subr.bf16.mxu1 %v17664_v63 }
0x1251   :  { %15867 = vmatmul.mubr.f32.vlgmr.msra.gmra.mrb[106].mxu1 %v8993_v17  ;;  %v9409_v22 = vpop.permute.xlu1 %9408 }
0x1252   :  { %v9410_v23 = vsel %vm853_vm3, %v9409_v22, 0  ;;  %17075 = vmatpush3.bf16.msra.mxu1 %v18038_v11  ;;  %15877 = vmatprep.mubr.msk.f32.mxu1 %vm17665_vm2, %v17666_v24 }
0x1253   :  { %v18840_v45 = vand.u32 4294901760, %v9410_v23  ;;  %17076 = vmatprep.subr.bf16.mxu1 %v17664_v63 }
0x1255   :  { %v18844_v46 = vsub.f32 %v9410_v23, %v18840_v45 }
0x1256   :  { %17078 = vmatpush3.bf16.msra.mxu1 %v18046_v15 }
0x1257   :  { %v18848_v62 = vand.u32 4294901760, %v18844_v46  ;;  %17079 = vmatprep.subr.bf16.mxu1 %v17664_v63 }
0x1259   :  { %15878 = vmatmul.mubr.f32.vlgmr.msra.gmra.mrb[108].mxu1 %v8991_v14  ;;  %v9484_v48 = vsub.f32 %v18844_v46, %v18848_v62 }
0x125a   :  { %17081 = vmatpush3.bf16.msra.mxu1 %v17985_v35  ;;  %15888 = vmatprep.mubr.msk.f32.mxu1 %vm17665_vm2, %v17666_v24 }
0x125b   :  { %17082 = vmatprep.subr.bf16.mxu1 %v17664_v63  ;;  %v9485_v49 = vand.u32 4294901760, %v9484_v48 }
0x125d   :  { %15900 = vmatmul.mubr.f32.vlgmr.msra.gmra.mrb[48].mxu0 %v9485_v49 }
0x125e   :  { %17084 = vmatpush3.bf16.msra.mxu1 %v17990_v41  ;;  %17099 = vmatpush3.bf16.msra.mxu0 %v18111_v21 }
0x125f   :  { %17091 = vmatprep.subr.bf16.mxu1 %v17664_v63  ;;  %17100 = vmatprep.subr.bf16.mxu0 %v17664_v63 }
0x1260   :  { %15921 = vmatprep.mubr.msk.f32.mxu0 %vm17665_vm2, %v17666_v24 }
0x1261   :  { %15889 = vmatmul.mubr.f32.vlgmr.msra.gmra.mrb[110].mxu1 %v8991_v14 }
0x1262   :  { %17093 = vmatpush3.bf16.msra.mxu1 %v18078_v36  ;;  %17102 = vmatpush3.bf16.msra.mxu0 %v18119_v27 }
0x1263   :  { %17094 = vmatprep.subr.bf16.mxu1 %v17664_v63  ;;  %17109 = vmatprep.subr.bf16.mxu0 %v17664_v63 }
0x1264   :  { %15910 = vmatprep.mubr.msk.f32.mxu1 %vm17665_vm2, %v17666_v24 }
0x1265   :  { %15922 = vmatmul.mubr.f32.vlgmr.msra.gmra.mrb[50].mxu0 %v18844_v46 }
0x1266   :  { %17096 = vmatpush3.bf16.msra.mxu1 %v18083_v39  ;;  %17111 = vmatpush3.bf16.msra.mxu0 %v18133_v38 }
0x1267   :  { %17103 = vmatprep.subr.bf16.mxu1 %v17664_v63  ;;  %17112 = vmatprep.subr.bf16.mxu0 %v17664_v63 }
0x1268   :  { %15943 = vmatprep.mubr.msk.f32.mxu0 %vm17665_vm2, %v17666_v24 }
0x1269   :  { %15911 = vmatmul.mubr.f32.vlgmr.msra.gmra.mrb[112].mxu1 %v18840_v45 }
0x126a   :  { %17105 = vmatpush3.bf16.msra.mxu1 %v17987_v40  ;;  %17114 = vmatpush3.bf16.msra.mxu0 %v18144_v43 }
0x126b   :  { %17106 = vmatprep.subr.bf16.mxu1 %v17664_v63  ;;  %17121 = vmatprep.subr.bf16.mxu0 %v17664_v63 }
0x126c   :  { %15932 = vmatprep.mubr.msk.f32.mxu1 %vm17665_vm2, %v17666_v24 }
0x126d   :  { %15944 = vmatmul.mubr.f32.vlgmr.msra.gmra.mrb[52].mxu0 %v18840_v45 }
0x126e   :  { %17108 = vmatpush3.bf16.msra.mxu1 %v18007_v4  ;;  %17123 = vmatpush3.bf16.msra.mxu0 %v17866_v8 }
0x126f   :  { %17115 = vmatprep.subr.bf16.mxu1 %v17664_v63  ;;  %17124 = vmatprep.subr.bf16.mxu0 %v17664_v63 }
0x1270   :  { %15965 = vmatprep.mubr.msk.f32.mxu0 %vm17665_vm2, %v17666_v24 }
0x1271   :  { %15933 = vmatmul.mubr.f32.vlgmr.msra.gmra.mrb[114].mxu1 %v18848_v62 }
0x1272   :  { %17117 = vmatpush3.bf16.msra.mxu1 %v17987_v40  ;;  %17126 = vmatpush3.bf16.msra.mxu0 %v17871_v12 }
0x1273   :  { %17118 = vmatprep.subr.bf16.mxu1 %v17664_v63  ;;  %17127 = vmatprep.subr.bf16.mxu0 %v17664_v63 }
0x1274   :  { %15954 = vmatprep.mubr.msk.f32.mxu1 %vm17665_vm2, %v17666_v24 }
0x1275   :  { %15966 = vmatmul.mubr.f32.vlgmr.msra.gmra.mrb[54].mxu0 %v9485_v49 }
0x1276   :  { %17120 = vmatpush3.bf16.msra.mxu1 %v18007_v4  ;;  %17129 = vmatpush3.bf16.msra.mxu0 %v17891_v25 }
0x1277   :  { %17130 = vmatprep.subr.bf16.mxu0 %v17664_v63  ;;  %15976 = vmatprep.mubr.msk.f32.mxu0 %vm17665_vm2, %v17666_v24 }
0x1278   :  { %17157 = vmatprep.subr.bf16.mxu1 %v17664_v63 }
0x1279   :  { %15955 = vmatmul.mubr.f32.vlgmr.msra.gmra.mrb[116].mxu1 %v18840_v45 }
0x127a   :  { %17132 = vmatpush3.bf16.msra.mxu0 %v17895_v28  ;;  %17159 = vmatpush3.bf16.msra.mxu1 %v17985_v35 }
0x127b   :  { %17133 = vmatprep.subr.bf16.mxu0 %v17664_v63  ;;  %17160 = vmatprep.subr.bf16.mxu1 %v17664_v63 }
0x127c   :  { %16031 = vmatprep.mubr.msk.f32.mxu1 %vm17665_vm2, %v17666_v24 }
0x127d   :  { %15977 = vmatmul.mubr.f32.vlgmr.msra.gmra.mrb[54].mxu0 %v18840_v45 }
0x127e   :  { %17135 = vmatpush3.bf16.msra.mxu0 %v17901_v29  ;;  %15987 = vmatprep.mubr.msk.f32.mxu0 %vm17665_vm2, %v17666_v24 }
0x127f   :  { %17136 = vmatprep.subr.bf16.mxu0 %v17664_v63  ;;  %17162 = vmatpush3.bf16.msra.mxu1 %v17990_v41 }
0x1280   :  { %17163 = vmatprep.subr.bf16.mxu1 %v17664_v63 }
0x1282   :  { %17138 = vmatpush3.bf16.msra.mxu0 %v17906_v30 }
0x1283   :  { %17139 = vmatprep.subr.bf16.mxu0 %v17664_v63 }
0x1285   :  { %15988 = vmatmul.mubr.f32.vlgmr.msra.gmra.mrb[54].mxu0 %v18844_v46 }
0x1286   :  { %17141 = vmatpush3.bf16.msra.mxu0 %v17866_v8  ;;  %15998 = vmatprep.mubr.msk.f32.mxu0 %vm17665_vm2, %v17666_v24 }
0x1287   :  { %17142 = vmatprep.subr.bf16.mxu0 %v17664_v63 }
0x128a   :  { %17144 = vmatpush3.bf16.msra.mxu0 %v17871_v12 }
0x128b   :  { %17145 = vmatprep.subr.bf16.mxu0 %v17664_v63 }
0x128d   :  { %15999 = vmatmul.mubr.f32.vlgmr.msra.gmra.mrb[54].mxu0 %v18848_v62 }
0x128e   :  { %17147 = vmatpush3.bf16.msra.mxu0 %v17919_v31  ;;  %16009 = vmatprep.mubr.msk.f32.mxu0 %vm17665_vm2, %v17666_v24 }
0x128f   :  { %17148 = vmatprep.subr.bf16.mxu0 %v17664_v63 }
0x1292   :  { %17150 = vmatpush3.bf16.msra.mxu0 %v17924_v32 }
0x1293   :  { %17151 = vmatprep.subr.bf16.mxu0 %v17664_v63 }
0x1295   :  { %16010 = vmatmul.mubr.f32.vlgmr.msra.gmra.mrb[54].mxu0 %v18840_v45 }
0x1296   :  { %17153 = vmatpush3.bf16.msra.mxu0 %v17866_v8  ;;  %16020 = vmatprep.mubr.msk.f32.mxu0 %vm17665_vm2, %v17666_v24 }
0x1297   :  { %17154 = vmatprep.subr.bf16.mxu0 %v17664_v63 }
0x129a   :  { %17156 = vmatpush3.bf16.msra.mxu0 %v17871_v12 }
0x129b   :  { %17193 = vmatprep.subr.bf16.mxu0 %v17664_v63 }
0x129d   :  { %16021 = vmatmul.mubr.f32.vlgmr.msra.gmra.mrb[54].mxu0 %v18840_v45 }
0x129e   :  { %17195 = vmatpush3.bf16.msra.mxu0 %v17987_v40  ;;  %16097 = vmatprep.mubr.msk.f32.mxu0 %vm17665_vm2, %v17666_v24 }
0x129f   :  { %17196 = vmatprep.subr.bf16.mxu0 %v17664_v63 }
0x12a2   :  { %17198 = vmatpush3.bf16.msra.mxu0 %v18007_v4 }
0x12a3   :  { %17205 = vmatprep.subr.bf16.mxu0 %v17664_v63 }
0x130c   :  { %v8997_v52 = vpop.f32.mrb[100].mxu1 }
0x130d   :  { %v15835_v59 = vpop.f32.mrb[101].mxu1 }
0x1314   :  { %v9088_v53 = vpop.f32.mrb[102].mxu1 }
0x1315   :  { %v9089_v54 = vadd.f32 %v9088_v53, %v8997_v52  ;;  %v15846_v55 = vpop.f32.mrb[103].mxu1 }
0x131c   :  { %v9168_v56 = vpop.f32.mrb[104].mxu1 }
0x131d   :  { %v9169_v57 = vadd.f32 %v9168_v56, %v9089_v54  ;;  %v15857_v18 = vpop.f32.mrb[105].mxu1 }
0x1324   :  { %v9245_v9 = vpop.f32.mrb[106].mxu1 }
0x1325   :  { %v9246_v61 = vadd.f32 %v9245_v9, %v9169_v57  ;;  %v15868_v58 = vpop.f32.mrb[107].mxu1 }
0x132c   :  { %v9328_v44 = vpop.f32.mrb[108].mxu1 }
0x132d   :  { %v9329_v0 = vadd.f32 %v9328_v44, %v9246_v61  ;;  %v15879_v20 = vpop.f32.mrb[109].mxu1 }
0x1330   :  { %v9487_v34 = vpop.f32.mrb[48].mxu0 }
0x1331   :  { %v15901_v37 = vpop.f32.mrb[49].mxu0 }
0x1334   :  { %v9403_v33 = vpop.f32.mrb[110].mxu1 }
0x1335   :  { %v9404_v42 = vadd.f32 %v9403_v33, %v9329_v0  ;;  %v15890_v13 = vpop.f32.mrb[111].mxu1 }
0x1337   :  { %v9488_v60 = vadd.f32 %v9487_v34, %v9404_v42 }
0x1338   :  { %v9658_v16 = vpop.f32.mrb[50].mxu0 }
0x1339   :  { %v15923_v14 = vpop.f32.mrb[51].mxu0 }
0x133c   :  { %v9578_v47 = vpop.f32.mrb[112].mxu1 }
0x133d   :  { %v9579_v17 = vadd.f32 %v9578_v47, %v9488_v60  ;;  %v15912_v50 = vpop.f32.mrb[113].mxu1 }
0x133f   :  { %v9659_v19 = vadd.f32 %v9658_v16, %v9579_v17 }
0x1340   :  { %v9818_v22 = vpop.f32.mrb[52].mxu0 }
0x1341   :  { %v15945_v23 = vpop.f32.mrb[53].mxu0 }
0x1344   :  { %v9735_v45 = vpop.f32.mrb[114].mxu1 }
0x1345   :  { %v9736_v46 = vadd.f32 %v9735_v45, %v9659_v19  ;;  %v15934_v62 = vpop.f32.mrb[115].mxu1 }
0x1347   :  { %v9819_v48 = vadd.f32 %v9818_v22, %v9736_v46 }
0x134c   :  { %v9893_v49 = vpop.f32.mrb[116].mxu1 }
0x134d   :  { %v9894_v52 = vadd.f32 %v9893_v49, %v9819_v48  ;;  %v15956_v59 = vpop.f32.mrb[117].mxu1 }
0x134f   :  { %v9897_v53 = vadd.f32 %v18647_v10, %v9894_v52 }
0x1351   :  { %17618 = vtanh.f32 %v9897_v53 }
0x135b   :  { %v17619_v54 = vpop.eup %17618 }
0x135c   :  { %9903 = vrot.lane.b32.xlu0 %v17619_v54, %s17667_s3  ;;  %v9899_v9 = vmul.f32 0.5, %v17619_v54 }
0x135e   :  { %v9900_v61 = vadd.f32 0.5, %v9899_v9 }
0x1360   :  { %v9901_v37 = vmul.f32 %v9900_v61, %v18805_v51 }
0x1370   :  { %v10407_v55 = vpop.f32.mrb[54].mxu0 }
0x1371   :  { %v10411_v56 = vadd.f32 %v17956_v2, %v10407_v55  ;;  %v16022_v57 = vpop.f32.mrb[55].mxu0 }
0x1373   :  { %17620 = vtanh.f32 %v10411_v56 }
0x137d   :  { %v17621_v18 = vpop.eup %17620 }
0x137e   :  { %10417 = vrot.lane.b32.xlu1 %v17621_v18, %s17667_s3  ;;  %v10413_v0 = vmul.f32 0.5, %v17621_v18 }
0x1380   :  { %v10414_v10 = vadd.f32 0.5, %v10413_v0 }
0x1382   :  { %v10415_v13 = vmul.f32 %v10414_v10, %v18810_v26 }
0x13ce   :  { %v9904_v58 = vpop.permute.xlu0 %9903 }
0x13cf   :  { %v9906_v44 = vmul.f32 %v9904_v58, %v9900_v61 }
0x13d1   :  { %9908 = vrot.lane.b32.xlu0 %v9906_v44, %s17667_s3 }
0x13f0   :  { %v10418_v20 = vpop.permute.xlu1 %10417 }
0x13f1   :  { %v10420_v34 = vmul.f32 %v10418_v20, %v10414_v10 }
0x13f3   :  { %10422 = vrot.lane.b32.xlu1 %v10420_v34, %s17667_s3 }
0x1443   :  { %v9909_v2 = vpop.permute.xlu0 %9908 }
0x1444   :  { %v18954_v33 = vadd.f32 %v9909_v2, %v9901_v37 }
0x1446   :  { %17622 = vtanh.f32 %v18954_v33 }
0x1450   :  { %v17623_v42 = vpop.eup %17622 }
0x1451   :  { %9914 = vrot.lane.b32.xlu0 %v17623_v42, %s17667_s3 }
0x1465   :  { %v10423_v60 = vpop.permute.xlu1 %10422 }
0x1466   :  { %v18959_v16 = vadd.f32 %v10423_v60, %v10415_v13 }
0x1468   :  { %17624 = vtanh.f32 %v18959_v16 }
0x1472   :  { %v17625_v14 = vpop.eup %17624 }
0x1473   :  { %10428 = vrot.lane.b32.xlu1 %v17625_v14, %s17667_s3 }
0x14c3   :  { %v9915_v47 = vpop.permute.xlu0 %9914 }
0x14c4   :  { %v9917_v51 = vmul.f32 %v9915_v47, %v9900_v61 }
0x14c6   :  { %9919 = vrot.lane.b32.xlu0 %v9917_v51, %s17668_s4 }
0x14e5   :  { %v10429_v17 = vpop.permute.xlu1 %10428 }
0x14e6   :  { %v10431_v50 = vmul.f32 %v10429_v17, %v10414_v10 }
0x14e8   :  { %10920 = vrot.lane.b32.xlu1 %v10431_v50, %s17668_s4 }
0x1538   :  { %v9920_v19 = vpop.permute.xlu0 %9919 }
0x1539   :  { %9923 = vst.msk [vmem:[#allocation3 + $0x28] sm:$0xff] %vm853_vm3, %v9920_v19  ;;  %v10432_v26 = vsel %vm853_vm3, %v9920_v19, 0 }
0x153a   :  { %v10503_v22 = vand.u32 4294901760, %v10432_v26 }
0x153c   :  { %v10504_v23 = vsub.f32 %v10432_v26, %v10503_v22 }
0x153e   :  { %v10505_v45 = vand.u32 4294901760, %v10504_v23 }
0x1540   :  { %v10506_v46 = vsub.f32 %v10504_v23, %v10505_v45 }
0x1542   :  { %v10507_v62 = vand.u32 4294901760, %v10506_v46 }
0x1544   :  { %16032 = vmatmul.mubr.f32.vlgmr.msra.gmra.mrb[118].mxu1 %v10507_v62  ;;  %v19099_v62 = vld [vmem:[%s19400_s6] ss:$0 sm:$0xff] }
0x1545   :  { %17165 = vmatpush3.bf16.msra.mxu1 %v18004_v3  ;;  %16042 = vmatprep.mubr.msk.f32.mxu1 %vm17665_vm2, %v17666_v24 }
0x1546   :  { %17166 = vmatprep.subr.bf16.mxu1 %v17664_v63 }
0x1549   :  { %17168 = vmatpush3.bf16.msra.mxu1 %v18010_v5 }
0x154a   :  { %17169 = vmatprep.subr.bf16.mxu1 %v17664_v63 }
0x154c   :  { %16043 = vmatmul.mubr.f32.vlgmr.msra.gmra.mrb[120].mxu1 %v10503_v22 }
0x154d   :  { %17171 = vmatpush3.bf16.msra.mxu1 %v18018_v6  ;;  %16053 = vmatprep.mubr.msk.f32.mxu1 %vm17665_vm2, %v17666_v24 }
0x154e   :  { %17172 = vmatprep.subr.bf16.mxu1 %v17664_v63 }
0x1551   :  { %17174 = vmatpush3.bf16.msra.mxu1 %v18023_v7 }
0x1552   :  { %17175 = vmatprep.subr.bf16.mxu1 %v17664_v63 }
0x1554   :  { %16054 = vmatmul.mubr.f32.vlgmr.msra.gmra.mrb[122].mxu1 %v10504_v23 }
0x1555   :  { %17177 = vmatpush3.bf16.msra.mxu1 %v17985_v35  ;;  %16064 = vmatprep.mubr.msk.f32.mxu1 %vm17665_vm2, %v17666_v24 }
0x1556   :  { %17178 = vmatprep.subr.bf16.mxu1 %v17664_v63 }
0x1559   :  { %17180 = vmatpush3.bf16.msra.mxu1 %v17990_v41 }
0x155a   :  { %v10921_v48 = vpop.permute.xlu1 %10920  ;;  %17181 = vmatprep.subr.bf16.mxu1 %v17664_v63 }
0x155b   :  { %v10922_v49 = vsel %vm853_vm3, %v10921_v48, 0 }
0x155c   :  { %v18986_v52 = vand.u32 4294901760, %v10922_v49  ;;  %16065 = vmatmul.mubr.f32.vlgmr.msra.gmra.mrb[124].mxu1 %v10505_v45 }
0x155d   :  { %17183 = vmatpush3.bf16.msra.mxu1 %v18038_v11  ;;  %16075 = vmatprep.mubr.msk.f32.mxu1 %vm17665_vm2, %v17666_v24 }
0x155e   :  { %v18992_v59 = vsub.f32 %v10922_v49, %v18986_v52  ;;  %17184 = vmatprep.subr.bf16.mxu1 %v17664_v63 }
0x1560   :  { %v18996_v53 = vand.u32 4294901760, %v18992_v59 }
0x1561   :  { %17186 = vmatpush3.bf16.msra.mxu1 %v18046_v15 }
0x1562   :  { %17187 = vmatprep.subr.bf16.mxu1 %v17664_v63  ;;  %v10996_v54 = vsub.f32 %v18992_v59, %v18996_v53 }
0x1564   :  { %16076 = vmatmul.mubr.f32.vlgmr.msra.gmra.mrb[126].mxu1 %v10503_v22  ;;  %v10997_v55 = vand.u32 4294901760, %v10996_v54 }
0x1565   :  { %17189 = vmatpush3.bf16.msra.mxu1 %v17985_v35  ;;  %16086 = vmatprep.mubr.msk.f32.mxu1 %vm17665_vm2, %v17666_v24 }
0x1566   :  { %16098 = vmatmul.mubr.f32.vlgmr.msra.gmra.mrb[56].mxu0 %v10997_v55  ;;  %17190 = vmatprep.subr.bf16.mxu1 %v17664_v63 }
0x1567   :  { %17207 = vmatpush3.bf16.msra.mxu0 %v18111_v21  ;;  %16119 = vmatprep.mubr.msk.f32.mxu0 %vm17665_vm2, %v17666_v24 }
0x1568   :  { %17208 = vmatprep.subr.bf16.mxu0 %v17664_v63 }
0x1569   :  { %17192 = vmatpush3.bf16.msra.mxu1 %v17990_v41 }
0x156a   :  { %17199 = vmatprep.subr.bf16.mxu1 %v17664_v63 }
0x156b   :  { %17210 = vmatpush3.bf16.msra.mxu0 %v18119_v27 }
0x156c   :  { %16087 = vmatmul.mubr.f32.vlgmr.msra.gmra.mrb[128].mxu1 %v10503_v22  ;;  %17217 = vmatprep.subr.bf16.mxu0 %v17664_v63 }
0x156d   :  { %17201 = vmatpush3.bf16.msra.mxu1 %v18078_v36  ;;  %16108 = vmatprep.mubr.msk.f32.mxu1 %vm17665_vm2, %v17666_v24 }
0x156e   :  { %16120 = vmatmul.mubr.f32.vlgmr.msra.gmra.mrb[58].mxu0 %v18992_v59  ;;  %17202 = vmatprep.subr.bf16.mxu1 %v17664_v63 }
0x156f   :  { %17219 = vmatpush3.bf16.msra.mxu0 %v18133_v38  ;;  %16141 = vmatprep.mubr.msk.f32.mxu0 %vm17665_vm2, %v17666_v24 }
0x1570   :  { %17220 = vmatprep.subr.bf16.mxu0 %v17664_v63 }
0x1571   :  { %17204 = vmatpush3.bf16.msra.mxu1 %v18083_v39 }
0x1572   :  { %17211 = vmatprep.subr.bf16.mxu1 %v17664_v63 }
0x1573   :  { %17222 = vmatpush3.bf16.msra.mxu0 %v18144_v43 }
0x1574   :  { %16109 = vmatmul.mubr.f32.vlgmr.msra.gmra.mrb[130].mxu1 %v18986_v52  ;;  %17229 = vmatprep.subr.bf16.mxu0 %v17664_v63 }
0x1575   :  { %17213 = vmatpush3.bf16.msra.mxu1 %v17987_v40  ;;  %16130 = vmatprep.mubr.msk.f32.mxu1 %vm17665_vm2, %v17666_v24 }
0x1576   :  { %16142 = vmatmul.mubr.f32.vlgmr.msra.gmra.mrb[60].mxu0 %v18986_v52  ;;  %17214 = vmatprep.subr.bf16.mxu1 %v17664_v63 }
0x1577   :  { %17231 = vmatpush3.bf16.msra.mxu0 %v17866_v8  ;;  %16163 = vmatprep.mubr.msk.f32.mxu0 %vm17665_vm2, %v17666_v24 }
0x1578   :  { %17232 = vmatprep.subr.bf16.mxu0 %v17664_v63 }
0x1579   :  { %17216 = vmatpush3.bf16.msra.mxu1 %v18007_v4 }
0x157a   :  { %17223 = vmatprep.subr.bf16.mxu1 %v17664_v63 }
0x157b   :  { %17234 = vmatpush3.bf16.msra.mxu0 %v17871_v12 }
0x157c   :  { %16131 = vmatmul.mubr.f32.vlgmr.msra.gmra.mrb[132].mxu1 %v18996_v53  ;;  %17235 = vmatprep.subr.bf16.mxu0 %v17664_v63 }
0x157d   :  { %17225 = vmatpush3.bf16.msra.mxu1 %v17987_v40  ;;  %16152 = vmatprep.mubr.msk.f32.mxu1 %vm17665_vm2, %v17666_v24 }
0x157e   :  { %16164 = vmatmul.mubr.f32.vlgmr.msra.gmra.mrb[62].mxu0 %v10997_v55  ;;  %17226 = vmatprep.subr.bf16.mxu1 %v17664_v63 }
0x157f   :  { %17237 = vmatpush3.bf16.msra.mxu0 %v17891_v25  ;;  %16174 = vmatprep.mubr.msk.f32.mxu0 %vm17665_vm2, %v17666_v24 }
0x1580   :  { %17238 = vmatprep.subr.bf16.mxu0 %v17664_v63 }
0x1581   :  { %17228 = vmatpush3.bf16.msra.mxu1 %v18007_v4 }
0x1582   :  { %17265 = vmatprep.subr.bf16.mxu1 %v17664_v63 }
0x1583   :  { %17240 = vmatpush3.bf16.msra.mxu0 %v17895_v28 }
0x1584   :  { %16153 = vmatmul.mubr.f32.vlgmr.msra.gmra.mrb[134].mxu1 %v18986_v52  ;;  %17241 = vmatprep.subr.bf16.mxu0 %v17664_v63 }
0x1585   :  { %17267 = vmatpush3.bf16.msra.mxu1 %v17985_v35  ;;  %16229 = vmatprep.mubr.msk.f32.mxu1 %vm17665_vm2, %v17666_v24 }
0x1586   :  { %16175 = vmatmul.mubr.f32.vlgmr.msra.gmra.mrb[62].mxu0 %v18986_v52  ;;  %17268 = vmatprep.subr.bf16.mxu1 %v17664_v63 }
0x1587   :  { %17243 = vmatpush3.bf16.msra.mxu0 %v17901_v29  ;;  %16185 = vmatprep.mubr.msk.f32.mxu0 %vm17665_vm2, %v17666_v24 }
0x1588   :  { %17244 = vmatprep.subr.bf16.mxu0 %v17664_v63 }
0x1589   :  { %17270 = vmatpush3.bf16.msra.mxu1 %v17990_v41 }
0x158a   :  { %17271 = vmatprep.subr.bf16.mxu1 %v17664_v63 }
0x158b   :  { %17246 = vmatpush3.bf16.msra.mxu0 %v17906_v30 }
0x158c   :  { %17247 = vmatprep.subr.bf16.mxu0 %v17664_v63 }
0x158e   :  { %16186 = vmatmul.mubr.f32.vlgmr.msra.gmra.mrb[62].mxu0 %v18992_v59 }
0x158f   :  { %17249 = vmatpush3.bf16.msra.mxu0 %v17866_v8  ;;  %16196 = vmatprep.mubr.msk.f32.mxu0 %vm17665_vm2, %v17666_v24 }
0x1590   :  { %17250 = vmatprep.subr.bf16.mxu0 %v17664_v63 }
0x1593   :  { %17252 = vmatpush3.bf16.msra.mxu0 %v17871_v12 }
0x1594   :  { %17253 = vmatprep.subr.bf16.mxu0 %v17664_v63 }
0x1596   :  { %16197 = vmatmul.mubr.f32.vlgmr.msra.gmra.mrb[62].mxu0 %v18996_v53 }
0x1597   :  { %17255 = vmatpush3.bf16.msra.mxu0 %v17919_v31  ;;  %16207 = vmatprep.mubr.msk.f32.mxu0 %vm17665_vm2, %v17666_v24 }
0x1598   :  { %17256 = vmatprep.subr.bf16.mxu0 %v17664_v63 }
0x159b   :  { %17258 = vmatpush3.bf16.msra.mxu0 %v17924_v32 }
0x159c   :  { %17259 = vmatprep.subr.bf16.mxu0 %v17664_v63 }
0x159e   :  { %16208 = vmatmul.mubr.f32.vlgmr.msra.gmra.mrb[62].mxu0 %v18986_v52 }
0x159f   :  { %17261 = vmatpush3.bf16.msra.mxu0 %v17866_v8  ;;  %16218 = vmatprep.mubr.msk.f32.mxu0 %vm17665_vm2, %v17666_v24 }
0x15a0   :  { %17262 = vmatprep.subr.bf16.mxu0 %v17664_v63 }
0x15a3   :  { %17264 = vmatpush3.bf16.msra.mxu0 %v17871_v12 }
0x15a4   :  { %17301 = vmatprep.subr.bf16.mxu0 %v17664_v63 }
0x15a6   :  { %16219 = vmatmul.mubr.f32.vlgmr.msra.gmra.mrb[62].mxu0 %v18986_v52 }
0x15a7   :  { %17303 = vmatpush3.bf16.msra.mxu0 %v17987_v40  ;;  %16295 = vmatprep.mubr.msk.f32.mxu0 %vm17665_vm2, %v17666_v24 }
0x15a8   :  { %17304 = vmatprep.subr.bf16.mxu0 %v17664_v63 }
0x15ab   :  { %17306 = vmatpush3.bf16.msra.mxu0 %v18007_v4 }
0x15ac   :  { %17313 = vmatprep.subr.bf16.mxu0 %v17664_v63 }
0x1617   :  { %v10509_v8 = vpop.f32.mrb[118].mxu1 }
0x1618   :  { %v16033_v25 = vpop.f32.mrb[119].mxu1 }
0x161f   :  { %v10600_v28 = vpop.f32.mrb[120].mxu1 }
0x1620   :  { %v10601_v29 = vadd.f32 %v10600_v28, %v10509_v8  ;;  %v16044_v12 = vpop.f32.mrb[121].mxu1 }
0x1627   :  { %v10680_v30 = vpop.f32.mrb[122].mxu1 }
0x1628   :  { %v10681_v31 = vadd.f32 %v10680_v30, %v10601_v29  ;;  %v16055_v32 = vpop.f32.mrb[123].mxu1 }
0x162f   :  { %v10757_v56 = vpop.f32.mrb[124].mxu1 }
0x1630   :  { %v10758_v57 = vadd.f32 %v10757_v56, %v10681_v31  ;;  %v16066_v18 = vpop.f32.mrb[125].mxu1 }
0x1637   :  { %v10840_v9 = vpop.f32.mrb[126].mxu1 }
0x1638   :  { %v10841_v61 = vadd.f32 %v10840_v9, %v10758_v57  ;;  %v16077_v58 = vpop.f32.mrb[127].mxu1 }
0x1639   :  { %v10999_v44 = vpop.f32.mrb[56].mxu0 }
0x163a   :  { %v16099_v0 = vpop.f32.mrb[57].mxu0 }
0x163f   :  { %v10915_v10 = vpop.f32.mrb[128].mxu1 }
0x1640   :  { %v10916_v20 = vadd.f32 %v10915_v10, %v10841_v61  ;;  %v16088_v34 = vpop.f32.mrb[129].mxu1 }
0x1641   :  { %v11170_v37 = vpop.f32.mrb[58].mxu0 }
0x1642   :  { %v16121_v2 = vpop.f32.mrb[59].mxu0  ;;  %v11000_v42 = vadd.f32 %v10999_v44, %v10916_v20 }
0x1647   :  { %v11090_v13 = vpop.f32.mrb[130].mxu1 }
0x1648   :  { %v11091_v60 = vadd.f32 %v11090_v13, %v11000_v42  ;;  %v16110_v14 = vpop.f32.mrb[131].mxu1 }
0x1649   :  { %v11330_v47 = vpop.f32.mrb[60].mxu0  ;;  %v12948_v14 = vld [vmem:[#allocation3] sm:$0xff] }
0x164a   :  { %v16143_v51 = vpop.f32.mrb[61].mxu0  ;;  %v11171_v17 = vadd.f32 %v11170_v37, %v11091_v60 }
0x164b   :  { %v12968_v51 = vsel %vm853_vm3, %v12948_v14, 0 }
0x164f   :  { %v11247_v50 = vpop.f32.mrb[132].mxu1 }
0x1650   :  { %v11248_v19 = vadd.f32 %v11247_v50, %v11171_v17  ;;  %v16132_v26 = vpop.f32.mrb[133].mxu1  ;;  %v12949_v50 = vld [vmem:[#allocation3 + $0x8] sm:$0xff] }
0x1652   :  { %v11331_v22 = vadd.f32 %v11330_v47, %v11248_v19  ;;  %v12950_v19 = vld [vmem:[#allocation3 + $0x10] sm:$0xff] }
0x1653   :  { %v12974_v26 = vsel %vm853_vm3, %v12950_v19, 0 }
0x1657   :  { %v11405_v23 = vpop.f32.mrb[134].mxu1 }
0x1658   :  { %v11406_v45 = vadd.f32 %v11405_v23, %v11331_v22  ;;  %v16154_v46 = vpop.f32.mrb[135].mxu1  ;;  %v12951_v23 = vld [vmem:[#allocation3 + $0x18] sm:$0xff] }
0x165a   :  { %v11409_v48 = vadd.f32 %v19099_v62, %v11406_v45  ;;  %v12952_v45 = vld [vmem:[#allocation3 + $0x20] sm:$0xff] }
0x165c   :  { %17626 = vtanh.f32 %v11409_v48 }
0x1666   :  { %v17627_v49 = vpop.eup %17626 }
0x1667   :  { %11415 = vrot.lane.b32.xlu0 %v17627_v49, %s17667_s3  ;;  %v11411_v55 = vmul.f32 0.5, %v17627_v49 }
0x1669   :  { %v11412_v8 = vadd.f32 0.5, %v11411_v55  ;;  %v12953_v55 = vld [vmem:[#allocation3 + $0x28] sm:$0xff] }
0x166b   :  { %v11413_v32 = vmul.f32 %v11412_v8, %v18954_v33 }
0x1679   :  { %v11919_v52 = vpop.f32.mrb[62].mxu0 }
0x167a   :  { %v11923_v59 = vadd.f32 %v17954_v1, %v11919_v52  ;;  %v16220_v53 = vpop.f32.mrb[63].mxu0  ;;  %v19191_v52 = vand.u32 4294901760, %v12974_v26 }
0x167b   :  { %v19205_v53 = vld [vmem:[%s19401_s7 + $0x18] sm:$0xff] }
0x167c   :  { %17628 = vtanh.f32 %v11923_v59  ;;  %v12977_v59 = vsel %vm853_vm3, %v12951_v23, 0 }
0x1686   :  { %v17629_v54 = vpop.eup %17628 }
0x1687   :  { %11929 = vrot.lane.b32.xlu1 %v17629_v54, %s17667_s3  ;;  %v11925_v29 = vmul.f32 0.5, %v17629_v54  ;;  %v12980_v54 = vsel %vm853_vm3, %v12952_v45, 0 }
0x1689   :  { %v11926_v12 = vadd.f32 0.5, %v11925_v29  ;;  %v19222_v29 = vsub.f32 %v12974_v26, %v19191_v52 }
0x168b   :  { %v11927_v18 = vmul.f32 %v11926_v12, %v18959_v16 }
0x16d9   :  { %v11416_v25 = vpop.permute.xlu0 %11415 }
0x16da   :  { %v11418_v28 = vmul.f32 %v11416_v25, %v11412_v8 }
0x16dc   :  { %11420 = vrot.lane.b32.xlu0 %v11418_v28, %s17667_s3 }
0x16f9   :  { %v11930_v30 = vpop.permute.xlu1 %11929 }
0x16fa   :  { %v11932_v31 = vmul.f32 %v11930_v30, %v11926_v12  ;;  %v19232_v30 = vand.u32 4294901760, %v12980_v54 }
0x16fc   :  { %11934 = vrot.lane.b32.xlu1 %v11932_v31, %s17667_s3  ;;  %v12983_v31 = vsel %vm853_vm3, %v12953_v55, 0 }
0x174e   :  { %v11421_v1 = vpop.permute.xlu0 %11420 }
0x174f   :  { %v19108_v56 = vadd.f32 %v11421_v1, %v11413_v32 }
0x1751   :  { %17630 = vtanh.f32 %v19108_v56 }
0x175b   :  { %v17631_v57 = vpop.eup %17630 }
0x175c   :  { %11426 = vrot.lane.b32.xlu0 %v17631_v57, %s17667_s3 }
0x176e   :  { %v11935_v9 = vpop.permute.xlu1 %11934 }
0x176f   :  { %v11937_v61 = vadd.f32 %v11935_v9, %v11927_v18  ;;  %v19247_v9 = vand.u32 4294901760, %v12983_v31 }
0x1771   :  { %17632 = vtanh.f32 %v11937_v61 }
0x177b   :  { %v17633_v58 = vpop.eup %17632 }
0x177c   :  { %11940 = vrot.lane.b32.xlu1 %v17633_v58, %s17667_s3 }
0x17ce   :  { %v11427_v44 = vpop.permute.xlu0 %11426 }
0x17cf   :  { %v11429_v0 = vmul.f32 %v11427_v44, %v11412_v8 }
0x17d1   :  { %11431 = vrot.lane.b32.xlu0 %v11429_v0, %s17668_s4 }
0x17ee   :  { %v11941_v33 = vpop.permute.xlu1 %11940 }
0x17ef   :  { %v11943_v10 = vmul.f32 %v11941_v33, %v11926_v12  ;;  %v13001_v12 = vand.u32 4294901760, %v19205_v53 }
0x17f1   :  { %12432 = vrot.lane.b32.xlu1 %v11943_v10, %s17668_s4  ;;  %v19271_v10 = vsub.f32 %v12983_v31, %v19247_v9 }
0x1843   :  { %v11432_v20 = vpop.permute.xlu0 %11431 }
0x1844   :  { %11435 = vst.msk [vmem:[#allocation3 + $0x30] sm:$0xff] %vm853_vm3, %v11432_v20  ;;  %v11944_v34 = vsel %vm853_vm3, %v11432_v20, 0 }
0x1845   :  { %v19118_v16 = vand.u32 4294901760, %v11944_v34 }
0x1847   :  { %v12016_v37 = vsub.f32 %v11944_v34, %v19118_v16 }
0x1849   :  { %v12017_v2 = vand.u32 4294901760, %v12016_v37 }
0x184b   :  { %v12018_v42 = vsub.f32 %v12016_v37, %v12017_v2  ;;  %v12954_v8 = vld [vmem:[#allocation3 + $0x30] sm:$0xff] }
0x184c   :  { %v12986_v1 = vsel %vm853_vm3, %v12954_v8, 0 }
0x184d   :  { %v12019_v13 = vand.u32 4294901760, %v12018_v42  ;;  %v19259_v58 = vand.u32 4294901760, %v12986_v1  ;;  %v13112_v42 = vand.u32 4294901760, %v19271_v10 }
0x184f   :  { %16230 = vmatmul.mubr.f32.vlgmr.msra.gmra.mrb[136].mxu1 %v12019_v13 }
0x1850   :  { %17273 = vmatpush3.bf16.msra.mxu1 %v18004_v3  ;;  %16240 = vmatprep.mubr.msk.f32.mxu1 %vm17665_vm2, %v17666_v24 }
0x1851   :  { %17274 = vmatprep.subr.bf16.mxu1 %v17664_v63 }
0x1854   :  { %17276 = vmatpush3.bf16.msra.mxu1 %v18010_v5 }
0x1855   :  { %17277 = vmatprep.subr.bf16.mxu1 %v17664_v63 }
0x1857   :  { %16241 = vmatmul.mubr.f32.vlgmr.msra.gmra.mrb[138].mxu1 %v19118_v16 }
0x1858   :  { %17279 = vmatpush3.bf16.msra.mxu1 %v18018_v6  ;;  %16251 = vmatprep.mubr.msk.f32.mxu1 %vm17665_vm2, %v17666_v24 }
0x1859   :  { %17280 = vmatprep.subr.bf16.mxu1 %v17664_v63 }
0x185c   :  { %17282 = vmatpush3.bf16.msra.mxu1 %v18023_v7 }
0x185d   :  { %17283 = vmatprep.subr.bf16.mxu1 %v17664_v63 }
0x185f   :  { %16252 = vmatmul.mubr.f32.vlgmr.msra.gmra.mrb[140].mxu1 %v12016_v37 }
0x1860   :  { %17285 = vmatpush3.bf16.msra.mxu1 %v17985_v35  ;;  %16262 = vmatprep.mubr.msk.f32.mxu1 %vm17665_vm2, %v17666_v24 }
0x1861   :  { %17286 = vmatprep.subr.bf16.mxu1 %v17664_v63 }
0x1863   :  { %v12433_v3 = vpop.permute.xlu1 %12432 }
0x1864   :  { %v12434_v5 = vsel %vm853_vm3, %v12433_v3, 0  ;;  %17288 = vmatpush3.bf16.msra.mxu1 %v17990_v41 }
0x1865   :  { %v19140_v6 = vand.u32 4294901760, %v12434_v5  ;;  %17289 = vmatprep.subr.bf16.mxu1 %v17664_v63 }
0x1867   :  { %v19144_v7 = vsub.f32 %v12434_v5, %v19140_v6  ;;  %16263 = vmatmul.mubr.f32.vlgmr.msra.gmra.mrb[142].mxu1 %v12017_v2 }
0x1868   :  { %17291 = vmatpush3.bf16.msra.mxu1 %v18038_v11  ;;  %16273 = vmatprep.mubr.msk.f32.mxu1 %vm17665_vm2, %v17666_v24  ;;  %v19158_v11 = vand.u32 4294901760, %v12968_v51 }
0x1869   :  { %v12507_v60 = vand.u32 4294901760, %v19144_v7  ;;  %17292 = vmatprep.subr.bf16.mxu1 %v17664_v63 }
0x186a   :  { %v19181_v22 = vsub.f32 %v12968_v51, %v19158_v11 }
0x186b   :  { %v12508_v47 = vsub.f32 %v19144_v7, %v12507_v60 }
0x186c   :  { %17294 = vmatpush3.bf16.msra.mxu1 %v18046_v15  ;;  %v19171_v15 = vld [vmem:[%s19401_s7] sm:$0xff] }
0x186d   :  { %v12509_v17 = vand.u32 4294901760, %v12508_v47  ;;  %17295 = vmatprep.subr.bf16.mxu1 %v17664_v63  ;;  %v12992_v46 = vand.u32 4294901760, %v19171_v15  ;;  %v13113_v47 = vsub.f32 %v19271_v10, %v13112_v42 }
0x186f   :  { %16274 = vmatmul.mubr.f32.vlgmr.msra.gmra.mrb[144].mxu1 %v19118_v16  ;;  %16296 = vmatmul.mubr.f32.vlgmr.msra.gmra.mrb[64].mxu0 %v12509_v17 }
0x1870   :  { %17297 = vmatpush3.bf16.msra.mxu1 %v17985_v35  ;;  %17315 = vmatpush3.bf16.msra.mxu0 %v18111_v21  ;;  %v19176_v35 = vld [vmem:[%s19401_s7 + $0x8] sm:$0xff]  ;;  %v12971_v21 = vsel %vm853_vm3, %v12949_v50, 0 }
0x1871   :  { %17298 = vmatprep.subr.bf16.mxu1 %v17664_v63  ;;  %17316 = vmatprep.subr.bf16.mxu0 %v17664_v63  ;;  %v12995_v48 = vand.u32 4294901760, %v19176_v35  ;;  %v19189_v49 = vand.u32 4294901760, %v12971_v21 }
0x1872   :  { %16284 = vmatprep.mubr.msk.f32.mxu1 %vm17665_vm2, %v17666_v24  ;;  %16317 = vmatprep.mubr.msk.f32.mxu0 %vm17665_vm2, %v17666_v24 }
0x1873   :  { %v19216_v25 = vpack.c.bf16 %v12995_v48, %v12992_v46  ;;  %v19219_v28 = vsub.f32 %v12971_v21, %v19189_v49 }
0x1874   :  { %17300 = vmatpush3.bf16.msra.mxu1 %v17990_v41  ;;  %17318 = vmatpush3.bf16.msra.mxu0 %v18119_v27  ;;  %v13062_v41 = vand.u32 4294901760, %v19181_v22  ;;  %v19200_v27 = vld [vmem:[%s19401_s7 + $0x10] sm:$0xff] }
0x1875   :  { %17307 = vmatprep.subr.bf16.mxu1 %v17664_v63  ;;  %17325 = vmatprep.subr.bf16.mxu0 %v17664_v63  ;;  %v13072_v57 = vand.u32 4294901760, %v19219_v28 }
0x1876   :  { %v13063_v32 = vsub.f32 %v19181_v22, %v13062_v41 }
0x1877   :  { %16285 = vmatmul.mubr.f32.vlgmr.msra.gmra.mrb[146].mxu1 %v19118_v16  ;;  %16318 = vmatmul.mubr.f32.vlgmr.msra.gmra.mrb[66].mxu0 %v19144_v7  ;;  %v13073_v0 = vsub.f32 %v19219_v28, %v13072_v57  ;;  %v19281_v16 = vsub.f32 %v12986_v1, %v19259_v58 }
0x1878   :  { %17309 = vmatpush3.bf16.msra.mxu1 %v18078_v36  ;;  %17327 = vmatpush3.bf16.msra.mxu0 %v18133_v38  ;;  %v19224_v36 = vand.u32 4294901760, %v12977_v59  ;;  %v12998_v38 = vand.u32 4294901760, %v19200_v27  ;;  %v13064_v44 = vand.u32 4294901760, %v13063_v32 }
0x1879   :  { %17310 = vmatprep.subr.bf16.mxu1 %v17664_v63  ;;  %17328 = vmatprep.subr.bf16.mxu0 %v17664_v63  ;;  %v13074_v37 = vand.u32 4294901760, %v13073_v0  ;;  %v13122_v5 = vand.u32 4294901760, %v19281_v16 }
0x187a   :  { %16306 = vmatprep.mubr.msk.f32.mxu1 %vm17665_vm2, %v17666_v24  ;;  %16339 = vmatprep.mubr.msk.f32.mxu0 %vm17665_vm2, %v17666_v24  ;;  %v19245_v18 = vsub.f32 %v12977_v59, %v19224_v36  ;;  %v19253_v61 = vpack.c.bf16 %v13001_v12, %v12998_v38 }
0x187b   :  { %v13123_v7 = vsub.f32 %v19281_v16, %v13122_v5 }
0x187c   :  { %17312 = vmatpush3.bf16.msra.mxu1 %v18083_v39  ;;  %17330 = vmatpush3.bf16.msra.mxu0 %v18144_v43  ;;  %v13082_v39 = vand.u32 4294901760, %v19222_v29  ;;  %v19257_v43 = vsub.f32 %v12980_v54, %v19232_v30  ;;  %v13092_v33 = vand.u32 4294901760, %v19245_v18 }
0x187d   :  { %17319 = vmatprep.subr.bf16.mxu1 %v17664_v63  ;;  %17338 = vmatprep.subr.bf16.mxu0 %v19216_v25 }
0x187e   :  { %v13083_v20 = vsub.f32 %v19222_v29, %v13082_v39  ;;  %v13102_v34 = vand.u32 4294901760, %v19257_v43  ;;  %v13093_v2 = vsub.f32 %v19245_v18, %v13092_v33 }
0x187f   :  { %16307 = vmatmul.mubr.f32.vlgmr.msra.gmra.mrb[148].mxu1 %v19140_v6  ;;  %16340 = vmatmul.mubr.f32.vlgmr.msra.gmra.mrb[68].mxu0 %v19140_v6 }
0x1880   :  { %17321 = vmatpush3.bf16.msra.mxu1 %v17987_v40  ;;  %17340 = vmatpush3.bf16.msra.mxu0 %v19216_v25  ;;  %v13084_v13 = vand.u32 4294901760, %v13083_v20  ;;  %v13103_v3 = vsub.f32 %v19257_v43, %v13102_v34  ;;  %v13094_v14 = vand.u32 4294901760, %v13093_v2 }
0x1881   :  { %16361 = vmatprep.mubr.f32.mxu0 %v13064_v44  ;;  %17322 = vmatprep.subr.bf16.mxu1 %v17664_v63 }
0x1882   :  { %17342 = vmatprep.subr.bf16.mxu0 %v19253_v61  ;;  %16328 = vmatprep.mubr.msk.f32.mxu1 %vm17665_vm2, %v17666_v24  ;;  %v13104_v51 = vand.u32 4294901760, %v13103_v3 }
0x1884   :  { %17324 = vmatpush3.bf16.msra.mxu1 %v18007_v4  ;;  %17344 = vmatpush3.bf16.msra.mxu0 %v19253_v61 }
0x1885   :  { %17331 = vmatprep.subr.bf16.mxu1 %v17664_v63 }
0x1887   :  { %16329 = vmatmul.mubr.f32.vlgmr.msra.gmra.mrb[150].mxu1 %v12507_v60  ;;  %16362 = vmatmul.mubr.f32.vlgmr.msra.gmra.mrb[70].mxu0 %v13074_v37  ;;  %v13124_v60 = vand.u32 4294901760, %v13123_v7 }
0x1888   :  { %17333 = vmatpush3.bf16.msra.mxu1 %v17987_v40  ;;  %16364 = vmatprep.mubr.f32.mxu0 %v13084_v13  ;;  %v13114_v40 = vand.u32 4294901760, %v13113_v47 }
0x1889   :  { %17334 = vmatprep.subr.bf16.mxu1 %v17664_v63  ;;  %16350 = vmatprep.mubr.msk.f32.mxu1 %vm17665_vm2, %v17666_v24 }
0x188b   :  { %16365 = vmatmul.mubr.f32.gmra.mrb[72].mxu0 %v13094_v14 }
0x188c   :  { %17336 = vmatpush3.bf16.msra.mxu1 %v18007_v4  ;;  %16367 = vmatprep.mubr.f32.mxu0 %v13104_v51 }
0x188f   :  { %16351 = vmatmul.mubr.f32.vlgmr.msra.gmra.mrb[152].mxu1 %v19140_v6  ;;  %16368 = vmatmul.mubr.f32.gmra.mrb[74].mxu0 %v13114_v40 }
0x1890   :  { %16370 = vmatprep.mubr.f32.mxu0 %v13124_v60 }
0x1922   :  { %v12021_v63 = vpop.f32.mrb[136].mxu1 }
0x1923   :  { %v16231_v24 = vpop.f32.mrb[137].mxu1 }
0x192a   :  { %v12112_v17 = vpop.f32.mrb[138].mxu1 }
0x192b   :  { %v12113_v50 = vadd.f32 %v12112_v17, %v12021_v63  ;;  %v16242_v19 = vpop.f32.mrb[139].mxu1 }
0x1932   :  { %v12192_v21 = vpop.f32.mrb[140].mxu1 }
0x1933   :  { %v12193_v26 = vadd.f32 %v12192_v21, %v12113_v50  ;;  %v16253_v23 = vpop.f32.mrb[141].mxu1 }
0x193a   :  { %v12269_v45 = vpop.f32.mrb[142].mxu1 }
0x193b   :  { %v12270_v59 = vadd.f32 %v12269_v45, %v12193_v26  ;;  %v16264_v54 = vpop.f32.mrb[143].mxu1 }
0x1942   :  { %v12352_v55 = vpop.f32.mrb[144].mxu1  ;;  %v12511_v4 = vpop.f32.mrb[64].mxu0 }
0x1943   :  { %v12353_v8 = vadd.f32 %v12352_v55, %v12270_v59  ;;  %v16275_v31 = vpop.f32.mrb[145].mxu1  ;;  %v16297_v32 = vpop.f32.mrb[65].mxu0 }
0x1944   :  { %v13149_v31 = vsub.f32 %v19176_v35, %v12995_v48  ;;  %v13156_v32 = vsub.f32 %v19200_v27, %v12998_v38 }
0x194a   :  { %v12427_v1 = vpop.f32.mrb[146].mxu1  ;;  %v12682_v6 = vpop.f32.mrb[66].mxu0 }
0x194b   :  { %v12428_v44 = vadd.f32 %v12427_v1, %v12353_v8  ;;  %v16286_v0 = vpop.f32.mrb[147].mxu1  ;;  %v16319_v20 = vpop.f32.mrb[67].mxu0 }
0x194d   :  { %v12512_v37 = vadd.f32 %v12511_v4, %v12428_v44  ;;  %v13157_v44 = vand.u32 4294901760, %v13156_v32 }
0x1952   :  { %v12602_v2 = vpop.f32.mrb[148].mxu1  ;;  %v12842_v13 = vpop.f32.mrb[68].mxu0 }
0x1953   :  { %v12603_v3 = vadd.f32 %v12602_v2, %v12512_v37  ;;  %v16308_v14 = vpop.f32.mrb[149].mxu1  ;;  %v16341_v47 = vpop.f32.mrb[69].mxu0  ;;  %v13158_v2 = vsub.f32 %v13156_v32, %v13157_v44 }
0x1955   :  { %v12683_v51 = vadd.f32 %v12682_v6, %v12603_v3  ;;  %v13150_v6 = vand.u32 4294901760, %v13149_v31  ;;  %v13159_v3 = vand.u32 4294901760, %v13158_v2 }
0x1957   :  { %v13151_v37 = vsub.f32 %v13149_v31, %v13150_v6 }
0x195a   :  { %v12759_v7 = vpop.f32.mrb[150].mxu1 }
0x195b   :  { %v12760_v40 = vadd.f32 %v12759_v7, %v12683_v51  ;;  %v16330_v60 = vpop.f32.mrb[151].mxu1 }
0x195d   :  { %v12843_v63 = vadd.f32 %v12842_v13, %v12760_v40  ;;  %v13152_v13 = vand.u32 4294901760, %v13151_v37 }
0x1962   :  { %v12917_v24 = vpop.f32.mrb[152].mxu1 }
0x1963   :  { %v12918_v17 = vadd.f32 %v12917_v24, %v12843_v63  ;;  %v16352_v50 = vpop.f32.mrb[153].mxu1 }
0x1965   :  { %v12921_v19 = vadd.f32 %v19099_v62, %v12918_v17  ;;  %v13142_v62 = vsub.f32 %v19171_v15, %v12992_v46 }
0x1967   :  { %17634 = vtanh.f32 %v12921_v19  ;;  %v13143_v1 = vand.u32 4294901760, %v13142_v62 }
0x1969   :  { %v13144_v20 = vsub.f32 %v13142_v62, %v13143_v1 }
0x196b   :  { %v13145_v46 = vand.u32 4294901760, %v13144_v20 }
0x196d   :  { %v17345_v48 = vpack.c.bf16 %v13152_v13, %v13145_v46 }
0x196f   :  { %17346 = vmatprep.subr.bf16.mxu0 %v17345_v48 }
0x1970   :  { %17348 = vmatpush3.bf16.msra.mxu0 %v17345_v48 }
0x1971   :  { %v17635_v21 = vpop.eup %17634 }
0x1972   :  { %12927 = vrot.lane.b32.xlu0 %v17635_v21, %s17667_s3  ;;  %v12923_v26 = vmul.f32 0.5, %v17635_v21 }
0x1974   :  { %v12924_v23 = vadd.f32 0.5, %v12923_v26 }
0x1976   :  { %v12925_v54 = vmul.f32 %v12924_v23, %v19108_v56  ;;  %v13163_v56 = vsub.f32 %v19205_v53, %v13001_v12  ;;  %v17353_v53 = vpack.c.bf16 %v13149_v31, %v13142_v62  ;;  %v17369_v12 = vpack.c.bf16 %v13150_v6, %v13143_v1 }
0x1978   :  { %v13164_v0 = vand.u32 4294901760, %v13163_v56  ;;  %v17357_v38 = vpack.c.bf16 %v13163_v56, %v13156_v32 }
0x197a   :  { %v13165_v15 = vsub.f32 %v13163_v56, %v13164_v0  ;;  %v17373_v51 = vpack.c.bf16 %v13164_v0, %v13157_v44 }
0x197c   :  { %v13166_v35 = vand.u32 4294901760, %v13165_v15 }
0x197e   :  { %v17349_v14 = vpack.c.bf16 %v13166_v35, %v13159_v3 }
0x1980   :  { %17350 = vmatprep.subr.bf16.mxu0 %v17349_v14 }
0x1981   :  { %17352 = vmatpush3.bf16.msra.mxu0 %v17349_v14 }
0x1982   :  { %17354 = vmatprep.subr.bf16.mxu0 %v17353_v53 }
0x19e4   :  { %v12928_v45 = vpop.permute.xlu0 %12927 }
0x19e5   :  { %v12930_v59 = vmul.f32 %v12928_v45, %v12924_v23 }
0x19e7   :  { %12932 = vrot.lane.b32.xlu1 %v12930_v59, %s17667_s3 }
0x1a59   :  { %v12933_v55 = vpop.permute.xlu1 %12932 }
0x1a5a   :  { %v12935_v4 = vadd.f32 %v12933_v55, %v12925_v54 }
0x1a5c   :  { %17636 = vtanh.f32 %v12935_v4 }
0x1a66   :  { %v17637_v8 = vpop.eup %17636 }
0x1a67   :  { %12938 = vrot.lane.b32.xlu0 %v17637_v8, %s17667_s3 }
0x1ad9   :  { %v12939_v47 = vpop.permute.xlu0 %12938 }
0x1ada   :  { %v12941_v27 = vmul.f32 %v12939_v47, %v12924_v23 }
0x1adc   :  { %12943 = vrot.lane.b32.xlu1 %v12941_v27, %s17668_s4 }
0x1b4e   :  { %v12944_v7 = vpop.permute.xlu1 %12943 }
0x1b4f   :  { %12947 = vst.msk [vmem:[#allocation3 + $0x38] sm:$0xff] %vm853_vm3, %v12944_v7 }
0x1b56   :  { %v12955_v40 = vld [vmem:[#allocation3 + $0x38] sm:$0xff] }
0x1b57   :  { %v12989_v60 = vsel %vm853_vm3, %v12955_v40, 0 }
0x1b58   :  { %v13130_v63 = vand.u32 4294901760, %v12989_v60 }
0x1b5a   :  { %v13131_v24 = vsub.f32 %v12989_v60, %v13130_v63 }
0x1b5c   :  { %v13132_v17 = vand.u32 4294901760, %v13131_v24 }
0x1b5e   :  { %v13133_v50 = vsub.f32 %v13131_v24, %v13132_v17 }
0x1b60   :  { %v13134_v19 = vand.u32 4294901760, %v13133_v50 }
0x1b62   :  { %16371 = vmatmul.mubr.f32.gmra.mrb[76].mxu0 %v13134_v19 }
0x1b63   :  { %16381 = vmatprep.mubr.f32.mxu0 %v19158_v11 }
0x1b66   :  { %16382 = vmatmul.mubr.f32.vlgmr.msra.gmra.mrb[70].mxu0 %v19189_v49 }
0x1b67   :  { %17356 = vmatpush3.bf16.msra.mxu0 %v17353_v53  ;;  %16384 = vmatprep.mubr.f32.mxu0 %v19191_v52 }
0x1b68   :  { %17358 = vmatprep.subr.bf16.mxu0 %v17357_v38 }
0x1b6a   :  { %16385 = vmatmul.mubr.f32.gmra.mrb[72].mxu0 %v19224_v36 }
0x1b6b   :  { %16387 = vmatprep.mubr.f32.mxu0 %v19232_v30  ;;  %17360 = vmatpush3.bf16.msra.mxu0 %v17357_v38 }
0x1b6c   :  { %17362 = vmatprep.subr.bf16.mxu0 %v19216_v25 }
0x1b6e   :  { %16388 = vmatmul.mubr.f32.gmra.mrb[74].mxu0 %v19247_v9 }
0x1b6f   :  { %16390 = vmatprep.mubr.f32.mxu0 %v19259_v58 }
0x1b72   :  { %16391 = vmatmul.mubr.f32.gmra.mrb[76].mxu0 %v13130_v63 }
0x1b73   :  { %16401 = vmatprep.mubr.f32.mxu0 %v19181_v22  ;;  %v13838_v22 = vld [vmem:[%s19402_s8] ss:$0 sm:$0xff]  ;;  %s17673_s8 = smov 4  }
0x1b76   :  { %16402 = vmatmul.mubr.f32.vlgmr.msra.gmra.mrb[70].mxu0 %v19219_v28 }
0x1b77   :  { %17364 = vmatpush3.bf16.msra.mxu0 %v19216_v25  ;;  %16404 = vmatprep.mubr.f32.mxu0 %v19222_v29 }
0x1b78   :  { %17366 = vmatprep.subr.bf16.mxu0 %v19253_v61 }
0x1b7a   :  { %16405 = vmatmul.mubr.f32.gmra.mrb[72].mxu0 %v19245_v18 }
0x1b7b   :  { %16407 = vmatprep.mubr.f32.mxu0 %v19257_v43  ;;  %17368 = vmatpush3.bf16.msra.mxu0 %v19253_v61 }
0x1b7c   :  { %17370 = vmatprep.subr.bf16.mxu0 %v17369_v12 }
0x1b7e   :  { %16408 = vmatmul.mubr.f32.gmra.mrb[74].mxu0 %v19271_v10 }
0x1b7f   :  { %16410 = vmatprep.mubr.f32.mxu0 %v19281_v16 }
0x1b82   :  { %16411 = vmatmul.mubr.f32.gmra.mrb[76].mxu0 %v13131_v24 }
0x1b83   :  { %16421 = vmatprep.mubr.f32.mxu0 %v13062_v41 }
0x1b86   :  { %16422 = vmatmul.mubr.f32.vlgmr.msra.gmra.mrb[70].mxu0 %v13072_v57 }
0x1b87   :  { %17372 = vmatpush3.bf16.msra.mxu0 %v17369_v12  ;;  %16424 = vmatprep.mubr.f32.mxu0 %v13082_v39 }
0x1b88   :  { %17374 = vmatprep.subr.bf16.mxu0 %v17373_v51 }
0x1b8a   :  { %16425 = vmatmul.mubr.f32.gmra.mrb[72].mxu0 %v13092_v33 }
0x1b8b   :  { %16427 = vmatprep.mubr.f32.mxu0 %v13102_v34  ;;  %17376 = vmatpush3.bf16.msra.mxu0 %v17373_v51 }
0x1b8c   :  { %17378 = vmatprep.subr.bf16.mxu0 %v19216_v25 }
0x1b8e   :  { %16428 = vmatmul.mubr.f32.gmra.mrb[74].mxu0 %v13112_v42 }
0x1b8f   :  { %16430 = vmatprep.mubr.f32.mxu0 %v13122_v5 }
0x1b92   :  { %16431 = vmatmul.mubr.f32.gmra.mrb[76].mxu0 %v13132_v17 }
0x1b93   :  { %16441 = vmatprep.mubr.f32.mxu0 %v19158_v11 }
0x1b96   :  { %16442 = vmatmul.mubr.f32.vlgmr.msra.gmra.mrb[70].mxu0 %v19189_v49 }
0x1b97   :  { %17380 = vmatpush3.bf16.msra.mxu0 %v19216_v25  ;;  %16444 = vmatprep.mubr.f32.mxu0 %v19191_v52 }
0x1b98   :  { %17382 = vmatprep.subr.bf16.mxu0 %v19253_v61 }
0x1b9a   :  { %16445 = vmatmul.mubr.f32.gmra.mrb[72].mxu0 %v19224_v36 }
0x1b9b   :  { %16447 = vmatprep.mubr.f32.mxu0 %v19232_v30  ;;  %17384 = vmatpush3.bf16.msra.mxu0 %v19253_v61 }
0x1b9e   :  { %16448 = vmatmul.mubr.f32.gmra.mrb[74].mxu0 %v19247_v9 }
0x1b9f   :  { %16450 = vmatprep.mubr.f32.mxu0 %v19259_v58 }
0x1ba2   :  { %16451 = vmatmul.mubr.f32.gmra.mrb[76].mxu0 %v13130_v63 }
0x1ba3   :  { %16461 = vmatprep.mubr.f32.mxu0 %v19158_v11 }
0x1ba6   :  { %16462 = vmatmul.mubr.f32.vlgmr.msra.gmra.mrb[70].mxu0 %v19189_v49 }
0x1ba7   :  { %16464 = vmatprep.mubr.f32.mxu0 %v19191_v52 }
0x1baa   :  { %16465 = vmatmul.mubr.f32.gmra.mrb[72].mxu0 %v19224_v36 }
0x1bab   :  { %16467 = vmatprep.mubr.f32.mxu0 %v19232_v30 }
0x1bae   :  { %16468 = vmatmul.mubr.f32.gmra.mrb[74].mxu0 %v19247_v9 }
0x1baf   :  { %16470 = vmatprep.mubr.f32.mxu0 %v19259_v58 }
0x1bb2   :  { %16471 = vmatmul.mubr.f32.gmra.mrb[76].mxu0 %v13130_v63 }
0x1c79   :  { %v16463_v41 = vpop.f32.mrb[70].mxu0 }
0x1c7a   :  { %v17401_v25 = vadd.f32 %v16463_v41, %v13838_v22  ;;  %v13731_v11 = vpop.f32.mrb[71].mxu0 }
0x1c7b   :  { %v17402_v28 = vadd.f32 %v13838_v22, %v13731_v11 }
0x1c7c   :  { %13778 = vrot.lane.b32.xlu0 %v17401_v25, %s17669_s1 }
0x1c7d   :  { %v16466_v49 = vpop.f32.mrb[72].mxu0 }
0x1c7e   :  { %v17403_v52 = vadd.f32 %v16466_v49, %v13838_v22  ;;  %v13743_v29 = vpop.f32.mrb[73].mxu0 }
0x1c7f   :  { %v17404_v36 = vadd.f32 %v13838_v22, %v13743_v29 }
0x1c80   :  { %13786 = vrot.lane.b32.xlu0 %v17403_v52, %s17670_s17 }
0x1c81   :  { %v16469_v30 = vpop.f32.mrb[74].mxu0  ;;  %13782 = vrot.lane.b32.xlu1 %v17404_v36, %s17671_s18 }
0x1c82   :  { %v17405_v57 = vadd.f32 %v16469_v30, %v13838_v22  ;;  %v13755_v18 = vpop.f32.mrb[75].mxu0 }
0x1c83   :  { %v17406_v9 = vadd.f32 %v13838_v22, %v13755_v18 }
0x1c84   :  { %13794 = vrot.lane.b32.xlu0 %v17405_v57, %s17672_s19 }
0x1c85   :  { %v16472_v61 = vpop.f32.mrb[76].mxu0  ;;  %13790 = vrot.lane.b32.xlu1 %v17406_v9, %s17673_s8 }
0x1c86   :  { %v17407_v39 = vadd.f32 %v16472_v61, %v13838_v22  ;;  %v13767_v43 = vpop.f32.mrb[77].mxu0 }
0x1c87   :  { %v17408_v58 = vadd.f32 %v13838_v22, %v13767_v43 }
0x1c88   :  { %13802 = vrot.lane.b32.xlu0 %v17407_v39, %s17674_s20 }
0x1c89   :  { %13798 = vrot.lane.b32.xlu1 %v17408_v58, %s17675_s21 }
0x1cee   :  { %v13779_v33 = vpop.permute.xlu0 %13778 }
0x1cef   :  { %v13806_v34 = vsel %vm13805_vm4, %v17402_v28, %v13779_v33 }
0x1cf2   :  { %v13787_v10 = vpop.permute.xlu0 %13786 }
0x1cf3   :  { %v13783_v16 = vpop.permute.xlu1 %13782 }
0x1cf4   :  { %v13808_v42 = vsel %vm13807_vm5, %v13806_v34, %v13783_v16 }
0x1cf5   :  { %v13810_v26 = vsel %vm13809_vm6, %v13808_v42, %v13787_v10 }
0x1cf6   :  { %v13795_v5 = vpop.permute.xlu0 %13794 }
0x1cf7   :  { %v13791_v21 = vpop.permute.xlu1 %13790 }
0x1cf8   :  { %v13811_v23 = vsel %vm61_vm1, %v13810_v26, %v13791_v21 }
0x1cf9   :  { %v13813_v59 = vsel %vm13812_vm7, %v13811_v23, %v13795_v5 }
0x1cfa   :  { %v13803_v54 = vpop.permute.xlu0 %13802 }
0x1cfb   :  { %v13799_v45 = vpop.permute.xlu1 %13798 }
0x1cfc   :  { %v13815_v55 = vsel %vm13814_vm8, %v13813_v59, %v13799_v45 }
0x1cfd   :  { %v13817_v4 = vsel %vm13816_vm9, %v13815_v55, %v13803_v54 }
0x1cfe   :  { %v13819_v8 = vsel %vm13818_vm10, %v13817_v4, %v13803_v54 }
0x1cff   :  { %13821 = vst.msk [vmem:[#allocation4] sm:$0xff] %vm13820_vm11, %v13819_v8 }
0x1d00   :  { %17651 = shalt.err (!%p17648_p4)
}
0x1d01   :  { %s17652_s0 = scalar_lea.hbm %s19403_s9, 128 }
0x1d02   :  { %p17653_p5 = scmp.ne.s32.totalorder %s19403_s9, %s17652_s0  ;;  %p17656_p6 = scmp.lt.u32.totalorder %s17652_s0, %s19403_s9 }
0x1d04   :  { %p17658_p7 = pnand %p17656_p6, %p17653_p5 }
0x1d06   :  { %17661 = shalt.err (!%p17658_p7)
}
0x1d07   :  { %13831 = dma.vmem_to_hbm [thread:$0]  %s13829_s23, 128, %s19403_s9, [#allocation5]  }
0x1d08   :  { %17662 = dma.done.wait [#allocation5], 128  }
0x1d09   :  { %17663 = vsyncadd [#allocation5], 4294967168 }
0x1d0a   :  { %13835 = vsyncpa [#allocation5], 1 }

</bundles_post_ra>
